<compile_context>
chip_gen: v6e
topology: v6e:2x2x1
jax: 0.10.0
libtpu: 0.0.40
codegen_flags: <defaults>
</compile_context>

<pallas_src>
import functools

import jax
import jax.numpy as jnp
from jax.experimental import pallas as pl
from jax.experimental.pallas import tpu as pltpu


# ----------------------------- fused kernel -----------------------------

def _daare_kernel(*refs, comp_cfgs, H, W, KH, KW, ph, pw, Wp, in_ch, out_ch):
    """Fully fused DAARE forward for one batch element.

    refs layout:
      refs[0]              x_ref    (1, in_ch, H, W)                      VMEM
      refs[1 : 1+2L]       per-layer (wtab_ref, btab_ref) pairs           VMEM
      refs[1+2L]           o_ref    (1, out_ch, H, W)                     VMEM
      refs[2+2L]           xrep_ref scratch (C_in_max, Hp, seg_max+KW-1)  VMEM

    wtab_ref for a layer has shape (KH*KW*C_in, C_out*Wp): row r=(kh*KW+kw)*C_in+ci
    holds w[co, ci, kh, kw] replicated across lane segment [co*Wp, (co+1)*Wp).
    btab_ref has shape (1, C_out*Wp) with b[co] replicated over segment co.
    """
    n_layers = sum(len(c) for c in comp_cfgs)
    x_ref = refs[0]
    param_refs = refs[1:1 + 2 * n_layers]
    o_ref = refs[1 + 2 * n_layers]
    xrep_ref = refs[2 + 2 * n_layers]

    # Zero the padded/replicated scratch once per grid step; the pad border (and the
    # never-read gap lanes) must read as zero. Interiors are overwritten every layer.
    xrep_ref[...] = jnp.zeros(xrep_ref.shape, jnp.float32)

    # Re-nest the flat (w, b) ref list per component.
    flat = list(zip(param_refs[0::2], param_refs[1::2]))
    comp_params, idx = [], 0
    for cfg in comp_cfgs:
        comp_params.append(flat[idx:idx + len(cfg)])
        idx += len(cfg)

    def run_cdae(chans, cfgs, params):
        cur = chans  # list of (H, W) f32 values (input channels)
        for (C_in, C_out, is_last), (w_ref, b_ref) in zip(cfgs, params):
            SEG = C_out * Wp
            # Write each input channel, replicated C_out times along the lane axis,
            # into the zero-padded scratch: segment s of channel ci == xpad[ci].
            for ci in range(C_in):
                for s in range(C_out):
                    off = s * Wp + pw
                    xrep_ref[ci, ph:ph + H, off:off + W] = cur[ci]
            # Load each padded channel once; all KH*KW taps and all C_out output
            # channels reuse it (window slicing hoisted out of the co loop).
            xc = [xrep_ref[ci] for ci in range(C_in)]

            acc = jnp.zeros((H, SEG), jnp.float32)
            for kh in range(KH):
                for kw in range(KW):
                    for ci in range(C_in):
                        r = (kh * KW + kw) * C_in + ci
                        # Shifted window, replicated per output-channel segment.
                        win = xc[ci][kh:kh + H, kw:kw + SEG]
                        # One lane-dense FMA covers all C_out output channels.
                        acc = acc + w_ref[r:r + 1, :] * win
            acc = acc + b_ref[0:1, :]

            if is_last:
                act = jnp.tanh(acc)                  # EUP
            else:
                act = jnp.maximum(acc, 0.2 * acc)    # LeakyReLU(0.2), 2 VALU ops
            # Split the packed accumulator back into per-channel (H, W) values.
            cur = [act[:, co * Wp:co * Wp + W] for co in range(C_out)]
        return cur

    x_chans = [x_ref[0, c].astype(jnp.float32) for c in range(in_ch)]

    # DAARE stacking: z = C0(x); then x_inter -= z; z = Ck(cat([x, x_inter])); ...
    z = run_cdae(x_chans, comp_cfgs[0], comp_params[0])
    x_inter = x_chans
    for k in range(1, len(comp_cfgs)):
        x_inter = [xi - zi for xi, zi in zip(x_inter, z)]
        z = run_cdae(x_chans + x_inter, comp_cfgs[k], comp_params[k])

    out = [xi - zi for xi, zi in zip(x_inter, z)]
    for c in range(out_ch):
        o_ref[0, c] = out[c].astype(o_ref.dtype)


# ----------------------------- host-side wrapper -----------------------------

def _make_wtab(w, Wp):
    """(C_out, C_in, KH, KW) -> (KH*KW*C_in, C_out*Wp) lane-weight table (f32)."""
    C_out, C_in, KH, KW = w.shape
    wt = jnp.transpose(w.astype(jnp.float32), (2, 3, 1, 0)).reshape(KH * KW * C_in, C_out)
    return jnp.repeat(wt, Wp, axis=1)


def _make_btab(b, Wp):
    """(C_out,) -> (1, C_out*Wp) lane-bias row (f32)."""
    return jnp.repeat(b.astype(jnp.float32), Wp)[None, :]


def daare_forward(x, components):
    """x: (N, in_ch, H, W); components: list (per CDAE) of list of (w, b, is_last)."""
    N, in_ch, H, W = x.shape
    out_ch = int(components[0][-1][0].shape[0])
    KH, KW = (int(components[0][0][0].shape[2]), int(components[0][0][0].shape[3]))
    ph, pw = KH // 2, KW // 2
    Hp, Wp = H + 2 * ph, W + 2 * pw
    # The DAARE residual arithmetic (x_inter - z) requires matching channel counts.
    assert in_ch == out_ch, "DAARE residual arithmetic needs in_channels == out_channels"

    comp_cfgs = []
    flat_params = []
    in_specs = [pl.BlockSpec((1, in_ch, H, W), lambda n: (n, 0, 0, 0))]
    c_in_max, seg_max = 1, Wp
    for comp in components:
        cfg = []
        for (w, b, is_last) in comp:
            C_out, C_in, kh_, kw_ = (int(s) for s in w.shape)
            assert (kh_, kw_) == (KH, KW)
            cfg.append((C_in, C_out, bool(is_last)))
            c_in_max = max(c_in_max, C_in)
            seg_max = max(seg_max, C_out * Wp)
            wt, bt = _make_wtab(w, Wp), _make_btab(b, Wp)
            flat_params += [wt, bt]
            # Full-array blocks (exempt from the (8,128) rule), resident across the grid.
            in_specs += [pl.BlockSpec(wt.shape, lambda n: (0, 0)),
                         pl.BlockSpec(bt.shape, lambda n: (0, 0))]
        comp_cfgs.append(tuple(cfg))

    kern = functools.partial(
        _daare_kernel, comp_cfgs=tuple(comp_cfgs),
        H=H, W=W, KH=KH, KW=KW, ph=ph, pw=pw, Wp=Wp, in_ch=in_ch, out_ch=out_ch)

    return pl.pallas_call(
        kern,
        out_shape=jax.ShapeDtypeStruct((N, out_ch, H, W), jnp.float32),
        grid=(N,),
        in_specs=in_specs,
        out_specs=pl.BlockSpec((1, out_ch, H, W), lambda n: (n, 0, 0, 0)),
        scratch_shapes=[pltpu.VMEM((c_in_max, Hp, seg_max + KW - 1), jnp.float32)],
        # Keep a parallel batch axis so both TensorCores on v7x get work; on
        # single-TC v5e/v6e this is just a cheap 2-iteration loop.
        compiler_params=pltpu.CompilerParams(dimension_semantics=("parallel",)),
    )(x.astype(jnp.float32), *flat_params)


# ----------------------------- parameter init -----------------------------

def init_cdae(key, depth, hidden, kernel, in_ch, out_ch):
    layers = []
    for d in range(depth):
        cin = in_ch if d == 0 else hidden
        cout = out_ch if d == depth - 1 else hidden
        key, k_w, k_b = jax.random.split(key, 3)
        w = 0.1 * jax.random.normal(k_w, (cout, cin, kernel[0], kernel[1]), jnp.float32)
        b = 0.01 * jax.random.normal(k_b, (cout,), jnp.float32)
        layers.append((w, b, d == depth - 1))  # last layer -> Tanh
    return layers, key


# ----------------------- pure-JAX reference for checking -----------------------

def _conv_ref(x, w, b, padding):
    out = jax.lax.conv_general_dilated(
        x, w, window_strides=(1, 1),
        padding=[(padding[0], padding[0]), (padding[1], padding[1])],
        dimension_numbers=("NCHW", "OIHW", "NCHW"),
        precision=jax.lax.Precision.HIGHEST)
    return out + b[None, :, None, None]


def _cdae_ref(x, layers, padding):
    h = x
    for (w, b, is_last) in layers:
        h = _conv_ref(h, w, b, padding)
        h = jnp.tanh(h) if is_last else jnp.where(h >= 0, h, 0.2 * h)
    return h


def _daare_ref(x, components, padding):
    x_inter = x
    z_inter = _cdae_ref(x, components[0], padding)
    for comp in components[1:]:
        x_inter = x_inter - z_inter
        z_inter = _cdae_ref(jnp.concatenate([x, x_inter], axis=1), comp, padding)
    return x_inter - z_inter


if __name__ == "__main__":
    # Small DAARE config: depth=3, hidden_channels=4, kernel=(3,3), img=(16,16),
    # in_channels=1, out_channels=1, two stacked CDAE components
    # (first added with residual=False, second with residual=True).
    depth, hidden = 3, 4
    kernel = (3, 3)
    padding = (kernel[0] // 2, kernel[1] // 2)
    img_size = (16, 16)
    in_ch, out_ch = 1, 1
    n_components = 2

    key = jax.random.PRNGKey(0)
    key, kx = jax.random.split(key)
    x = jax.random.normal(kx, (2, in_ch, img_size[0], img_size[1]), jnp.float32)

    components = []
    for c in range(n_components):
        cin = in_ch if c == 0 else in_ch + out_ch
        layers, key = init_cdae(key, depth, hidden, kernel, cin, out_ch)
        components.append(layers)

    out = daare_forward(x, components)
    out = jax.block_until_ready(out)

    ref = _daare_ref(x, components, padding)
    assert out.shape == (2, out_ch, img_size[0], img_size[1]), out.shape
    max_err = float(jnp.max(jnp.abs(out - ref)))
    assert max_err < 1e-3, f"mismatch vs JAX reference: max abs err = {max_err}"

    print("KERNEL_OK")
</pallas_src>

<mosaic_0001>
module attributes {stable_mosaic.version = 11 : i64} {
  func.func @_daare_kernel(%arg0: i32, %arg1: memref<1x1x16x16xf32, #tpu.memory_space<vmem>>, %arg2: memref<9x72xf32, #tpu.memory_space<vmem>>, %arg3: memref<1x72xf32, #tpu.memory_space<vmem>>, %arg4: memref<36x72xf32, #tpu.memory_space<vmem>>, %arg5: memref<1x72xf32, #tpu.memory_space<vmem>>, %arg6: memref<36x18xf32, #tpu.memory_space<vmem>>, %arg7: memref<1x18xf32, #tpu.memory_space<vmem>>, %arg8: memref<18x72xf32, #tpu.memory_space<vmem>>, %arg9: memref<1x72xf32, #tpu.memory_space<vmem>>, %arg10: memref<36x72xf32, #tpu.memory_space<vmem>>, %arg11: memref<1x72xf32, #tpu.memory_space<vmem>>, %arg12: memref<36x18xf32, #tpu.memory_space<vmem>>, %arg13: memref<1x18xf32, #tpu.memory_space<vmem>>, %arg14: memref<1x1x16x16xf32, #tpu.memory_space<vmem>>, %arg15: memref<4x18x74xf32, #tpu.memory_space<vmem>>) attributes {dimension_semantics = [#tpu.dimension_semantics<parallel>], iteration_bounds = array<i64: 2>, scalar_prefetch = 0 : i64, scratch_operands = 1 : i64, tpu.core_type = #tpu.core_type<tc>, window_params = [{transform_indices = @transform_0, window_bounds = array<i64: 1, 1, 16, 16>}, {pipeline_mode = #tpu.pipeline_mode<synchronous>, transform_indices = @transform_1, window_bounds = array<i64: 9, 72>}, {pipeline_mode = #tpu.pipeline_mode<synchronous>, transform_indices = @transform_2, window_bounds = array<i64: 1, 72>}, {pipeline_mode = #tpu.pipeline_mode<synchronous>, transform_indices = @transform_3, window_bounds = array<i64: 36, 72>}, {pipeline_mode = #tpu.pipeline_mode<synchronous>, transform_indices = @transform_4, window_bounds = array<i64: 1, 72>}, {pipeline_mode = #tpu.pipeline_mode<synchronous>, transform_indices = @transform_5, window_bounds = array<i64: 36, 18>}, {pipeline_mode = #tpu.pipeline_mode<synchronous>, transform_indices = @transform_6, window_bounds = array<i64: 1, 18>}, {pipeline_mode = #tpu.pipeline_mode<synchronous>, transform_indices = @transform_7, window_bounds = array<i64: 18, 72>}, {pipeline_mode = #tpu.pipeline_mode<synchronous>, transform_indices = @transform_8, window_bounds = array<i64: 1, 72>}, {pipeline_mode = #tpu.pipeline_mode<synchronous>, transform_indices = @transform_9, window_bounds = array<i64: 36, 72>}, {pipeline_mode = #tpu.pipeline_mode<synchronous>, transform_indices = @transform_10, window_bounds = array<i64: 1, 72>}, {pipeline_mode = #tpu.pipeline_mode<synchronous>, transform_indices = @transform_11, window_bounds = array<i64: 36, 18>}, {pipeline_mode = #tpu.pipeline_mode<synchronous>, transform_indices = @transform_12, window_bounds = array<i64: 1, 18>}, {transform_indices = @transform_13, window_bounds = array<i64: 1, 1, 16, 16>}]} {
    %cst = arith.constant 0.000000e+00 : f32
    %0 = vector.broadcast %cst : f32 to vector<4x18x74xf32>
    %c0 = arith.constant 0 : index
    %c0_0 = arith.constant 0 : index
    %c0_1 = arith.constant 0 : index
    %1 = vector.load %arg15[%c0, %c0_0, %c0_1] : memref<4x18x74xf32, #tpu.memory_space<vmem>>, vector<4x18x74xf32>
    tpu.vector_store %arg15[%c0, %c0_0, %c0_1], %0 {strides = array<i32>} : memref<4x18x74xf32, #tpu.memory_space<vmem>>, vector<4x18x74xf32>,
    %c0_2 = arith.constant 0 : index
    %c0_3 = arith.constant 0 : index
    %c0_4 = arith.constant 0 : index
    %c0_5 = arith.constant 0 : index
    %2 = vector.load %arg1[%c0_2, %c0_3, %c0_4, %c0_5] : memref<1x1x16x16xf32, #tpu.memory_space<vmem>>, vector<1x1x16x16xf32>
    %3 = vector.shape_cast %2 : vector<1x1x16x16xf32> to vector<16x16xf32>
    %c0_6 = arith.constant 0 : index
    %c1 = arith.constant 1 : index
    %c1_7 = arith.constant 1 : index
    %4 = vector.load %arg15[%c0_6, %c1, %c1_7] : memref<4x18x74xf32, #tpu.memory_space<vmem>>, vector<1x16x16xf32>
    %5 = vector.shape_cast %4 : vector<1x16x16xf32> to vector<16x16xf32>
    %6 = vector.shape_cast %3 : vector<16x16xf32> to vector<1x16x16xf32>
    tpu.vector_store %arg15[%c0_6, %c1, %c1_7], %6 {strides = array<i32>} : memref<4x18x74xf32, #tpu.memory_space<vmem>>, vector<1x16x16xf32>,
    %c0_8 = arith.constant 0 : index
    %c1_9 = arith.constant 1 : index
    %c19 = arith.constant 19 : index
    %7 = vector.load %arg15[%c0_8, %c1_9, %c19] : memref<4x18x74xf32, #tpu.memory_space<vmem>>, vector<1x16x16xf32>
    %8 = vector.shape_cast %7 : vector<1x16x16xf32> to vector<16x16xf32>
    %9 = vector.shape_cast %3 : vector<16x16xf32> to vector<1x16x16xf32>
    tpu.vector_store %arg15[%c0_8, %c1_9, %c19], %9 {strides = array<i32>} : memref<4x18x74xf32, #tpu.memory_space<vmem>>, vector<1x16x16xf32>,
    %c0_10 = arith.constant 0 : index
    %c1_11 = arith.constant 1 : index
    %c37 = arith.constant 37 : index
    %10 = vector.load %arg15[%c0_10, %c1_11, %c37] : memref<4x18x74xf32, #tpu.memory_space<vmem>>, vector<1x16x16xf32>
    %11 = vector.shape_cast %10 : vector<1x16x16xf32> to vector<16x16xf32>
    %12 = vector.shape_cast %3 : vector<16x16xf32> to vector<1x16x16xf32>
    tpu.vector_store %arg15[%c0_10, %c1_11, %c37], %12 {strides = array<i32>} : memref<4x18x74xf32, #tpu.memory_space<vmem>>, vector<1x16x16xf32>,
    %c0_12 = arith.constant 0 : index
    %c1_13 = arith.constant 1 : index
    %c55 = arith.constant 55 : index
    %13 = vector.load %arg15[%c0_12, %c1_13, %c55] : memref<4x18x74xf32, #tpu.memory_space<vmem>>, vector<1x16x16xf32>
    %14 = vector.shape_cast %13 : vector<1x16x16xf32> to vector<16x16xf32>
    %15 = vector.shape_cast %3 : vector<16x16xf32> to vector<1x16x16xf32>
    tpu.vector_store %arg15[%c0_12, %c1_13, %c55], %15 {strides = array<i32>} : memref<4x18x74xf32, #tpu.memory_space<vmem>>, vector<1x16x16xf32>,
    %c0_14 = arith.constant 0 : index
    %c0_15 = arith.constant 0 : index
    %c0_16 = arith.constant 0 : index
    %16 = vector.load %arg15[%c0_14, %c0_15, %c0_16] : memref<4x18x74xf32, #tpu.memory_space<vmem>>, vector<1x18x74xf32>
    %17 = vector.shape_cast %16 : vector<1x18x74xf32> to vector<18x74xf32>
    %cst_17 = arith.constant 0.000000e+00 : f32
    %18 = vector.broadcast %cst_17 : f32 to vector<16x72xf32>
    %19 = vector.extract_strided_slice %17 {offsets = [0, 0], sizes = [16, 72], strides = [1, 1]} : vector<18x74xf32> to vector<16x72xf32>
    %c0_18 = arith.constant 0 : index
    %c0_19 = arith.constant 0 : index
    %20 = vector.load %arg2[%c0_18, %c0_19] : memref<9x72xf32, #tpu.memory_space<vmem>>, vector<1x72xf32>
    %21 = vector.broadcast %20 : vector<1x72xf32> to vector<16x72xf32>
    %22 = arith.mulf %21, %19 : vector<16x72xf32>
    %23 = arith.addf %18, %22 : vector<16x72xf32>
    %24 = vector.extract_strided_slice %17 {offsets = [0, 1], sizes = [16, 72], strides = [1, 1]} : vector<18x74xf32> to vector<16x72xf32>
    %c1_20 = arith.constant 1 : index
    %c0_21 = arith.constant 0 : index
    %25 = vector.load %arg2[%c1_20, %c0_21] : memref<9x72xf32, #tpu.memory_space<vmem>>, vector<1x72xf32>
    %26 = vector.broadcast %25 : vector<1x72xf32> to vector<16x72xf32>
    %27 = arith.mulf %26, %24 : vector<16x72xf32>
    %28 = arith.addf %23, %27 : vector<16x72xf32>
    %29 = vector.extract_strided_slice %17 {offsets = [0, 2], sizes = [16, 72], strides = [1, 1]} : vector<18x74xf32> to vector<16x72xf32>
    %c2 = arith.constant 2 : index
    %c0_22 = arith.constant 0 : index
    %30 = vector.load %arg2[%c2, %c0_22] : memref<9x72xf32, #tpu.memory_space<vmem>>, vector<1x72xf32>
    %31 = vector.broadcast %30 : vector<1x72xf32> to vector<16x72xf32>
    %32 = arith.mulf %31, %29 : vector<16x72xf32>
    %33 = arith.addf %28, %32 : vector<16x72xf32>
    %34 = vector.extract_strided_slice %17 {offsets = [1, 0], sizes = [16, 72], strides = [1, 1]} : vector<18x74xf32> to vector<16x72xf32>
    %c3 = arith.constant 3 : index
    %c0_23 = arith.constant 0 : index
    %35 = vector.load %arg2[%c3, %c0_23] : memref<9x72xf32, #tpu.memory_space<vmem>>, vector<1x72xf32>
    %36 = vector.broadcast %35 : vector<1x72xf32> to vector<16x72xf32>
    %37 = arith.mulf %36, %34 : vector<16x72xf32>
    %38 = arith.addf %33, %37 : vector<16x72xf32>
    %39 = vector.extract_strided_slice %17 {offsets = [1, 1], sizes = [16, 72], strides = [1, 1]} : vector<18x74xf32> to vector<16x72xf32>
    %c4 = arith.constant 4 : index
    %c0_24 = arith.constant 0 : index
    %40 = vector.load %arg2[%c4, %c0_24] : memref<9x72xf32, #tpu.memory_space<vmem>>, vector<1x72xf32>
    %41 = vector.broadcast %40 : vector<1x72xf32> to vector<16x72xf32>
    %42 = arith.mulf %41, %39 : vector<16x72xf32>
    %43 = arith.addf %38, %42 : vector<16x72xf32>
    %44 = vector.extract_strided_slice %17 {offsets = [1, 2], sizes = [16, 72], strides = [1, 1]} : vector<18x74xf32> to vector<16x72xf32>
    %c5 = arith.constant 5 : index
    %c0_25 = arith.constant 0 : index
    %45 = vector.load %arg2[%c5, %c0_25] : memref<9x72xf32, #tpu.memory_space<vmem>>, vector<1x72xf32>
    %46 = vector.broadcast %45 : vector<1x72xf32> to vector<16x72xf32>
    %47 = arith.mulf %46, %44 : vector<16x72xf32>
    %48 = arith.addf %43, %47 : vector<16x72xf32>
    %49 = vector.extract_strided_slice %17 {offsets = [2, 0], sizes = [16, 72], strides = [1, 1]} : vector<18x74xf32> to vector<16x72xf32>
    %c6 = arith.constant 6 : index
    %c0_26 = arith.constant 0 : index
    %50 = vector.load %arg2[%c6, %c0_26] : memref<9x72xf32, #tpu.memory_space<vmem>>, vector<1x72xf32>
    %51 = vector.broadcast %50 : vector<1x72xf32> to vector<16x72xf32>
    %52 = arith.mulf %51, %49 : vector<16x72xf32>
    %53 = arith.addf %48, %52 : vector<16x72xf32>
    %54 = vector.extract_strided_slice %17 {offsets = [2, 1], sizes = [16, 72], strides = [1, 1]} : vector<18x74xf32> to vector<16x72xf32>
    %c7 = arith.constant 7 : index
    %c0_27 = arith.constant 0 : index
    %55 = vector.load %arg2[%c7, %c0_27] : memref<9x72xf32, #tpu.memory_space<vmem>>, vector<1x72xf32>
    %56 = vector.broadcast %55 : vector<1x72xf32> to vector<16x72xf32>
    %57 = arith.mulf %56, %54 : vector<16x72xf32>
    %58 = arith.addf %53, %57 : vector<16x72xf32>
    %59 = vector.extract_strided_slice %17 {offsets = [2, 2], sizes = [16, 72], strides = [1, 1]} : vector<18x74xf32> to vector<16x72xf32>
    %c8 = arith.constant 8 : index
    %c0_28 = arith.constant 0 : index
    %60 = vector.load %arg2[%c8, %c0_28] : memref<9x72xf32, #tpu.memory_space<vmem>>, vector<1x72xf32>
    %61 = vector.broadcast %60 : vector<1x72xf32> to vector<16x72xf32>
    %62 = arith.mulf %61, %59 : vector<16x72xf32>
    %63 = arith.addf %58, %62 : vector<16x72xf32>
    %c0_29 = arith.constant 0 : index
    %c0_30 = arith.constant 0 : index
    %64 = vector.load %arg3[%c0_29, %c0_30] : memref<1x72xf32, #tpu.memory_space<vmem>>, vector<1x72xf32>
    %65 = vector.broadcast %64 : vector<1x72xf32> to vector<16x72xf32>
    %66 = arith.addf %63, %65 : vector<16x72xf32>
    %cst_31 = arith.constant 2.000000e-01 : f32
    %67 = vector.broadcast %cst_31 : f32 to vector<16x72xf32>
    %68 = arith.mulf %67, %66 : vector<16x72xf32>
    %69 = arith.maximumf %66, %68 : vector<16x72xf32>
    %70 = vector.extract_strided_slice %69 {offsets = [0, 0], sizes = [16, 16], strides = [1, 1]} : vector<16x72xf32> to vector<16x16xf32>
    %71 = vector.extract_strided_slice %69 {offsets = [0, 18], sizes = [16, 16], strides = [1, 1]} : vector<16x72xf32> to vector<16x16xf32>
    %72 = vector.extract_strided_slice %69 {offsets = [0, 36], sizes = [16, 16], strides = [1, 1]} : vector<16x72xf32> to vector<16x16xf32>
    %73 = vector.extract_strided_slice %69 {offsets = [0, 54], sizes = [16, 16], strides = [1, 1]} : vector<16x72xf32> to vector<16x16xf32>
    %c0_32 = arith.constant 0 : index
    %c1_33 = arith.constant 1 : index
    %c1_34 = arith.constant 1 : index
    %74 = vector.load %arg15[%c0_32, %c1_33, %c1_34] : memref<4x18x74xf32, #tpu.memory_space<vmem>>, vector<1x16x16xf32>
    %75 = vector.shape_cast %74 : vector<1x16x16xf32> to vector<16x16xf32>
    %76 = vector.shape_cast %70 : vector<16x16xf32> to vector<1x16x16xf32>
    tpu.vector_store %arg15[%c0_32, %c1_33, %c1_34], %76 {strides = array<i32>} : memref<4x18x74xf32, #tpu.memory_space<vmem>>, vector<1x16x16xf32>,
    %c0_35 = arith.constant 0 : index
    %c1_36 = arith.constant 1 : index
    %c19_37 = arith.constant 19 : index
    %77 = vector.load %arg15[%c0_35, %c1_36, %c19_37] : memref<4x18x74xf32, #tpu.memory_space<vmem>>, vector<1x16x16xf32>
    %78 = vector.shape_cast %77 : vector<1x16x16xf32> to vector<16x16xf32>
    %79 = vector.shape_cast %70 : vector<16x16xf32> to vector<1x16x16xf32>
    tpu.vector_store %arg15[%c0_35, %c1_36, %c19_37], %79 {strides = array<i32>} : memref<4x18x74xf32, #tpu.memory_space<vmem>>, vector<1x16x16xf32>,
    %c0_38 = arith.constant 0 : index
    %c1_39 = arith.constant 1 : index
    %c37_40 = arith.constant 37 : index
    %80 = vector.load %arg15[%c0_38, %c1_39, %c37_40] : memref<4x18x74xf32, #tpu.memory_space<vmem>>, vector<1x16x16xf32>
    %81 = vector.shape_cast %80 : vector<1x16x16xf32> to vector<16x16xf32>
    %82 = vector.shape_cast %70 : vector<16x16xf32> to vector<1x16x16xf32>
    tpu.vector_store %arg15[%c0_38, %c1_39, %c37_40], %82 {strides = array<i32>} : memref<4x18x74xf32, #tpu.memory_space<vmem>>, vector<1x16x16xf32>,
    %c0_41 = arith.constant 0 : index
    %c1_42 = arith.constant 1 : index
    %c55_43 = arith.constant 55 : index
    %83 = vector.load %arg15[%c0_41, %c1_42, %c55_43] : memref<4x18x74xf32, #tpu.memory_space<vmem>>, vector<1x16x16xf32>
    %84 = vector.shape_cast %83 : vector<1x16x16xf32> to vector<16x16xf32>
    %85 = vector.shape_cast %70 : vector<16x16xf32> to vector<1x16x16xf32>
    tpu.vector_store %arg15[%c0_41, %c1_42, %c55_43], %85 {strides = array<i32>} : memref<4x18x74xf32, #tpu.memory_space<vmem>>, vector<1x16x16xf32>,
    %c1_44 = arith.constant 1 : index
    %c1_45 = arith.constant 1 : index
    %c1_46 = arith.constant 1 : index
    %86 = vector.load %arg15[%c1_44, %c1_45, %c1_46] : memref<4x18x74xf32, #tpu.memory_space<vmem>>, vector<1x16x16xf32>
    %87 = vector.shape_cast %86 : vector<1x16x16xf32> to vector<16x16xf32>
    %88 = vector.shape_cast %71 : vector<16x16xf32> to vector<1x16x16xf32>
    tpu.vector_store %arg15[%c1_44, %c1_45, %c1_46], %88 {strides = array<i32>} : memref<4x18x74xf32, #tpu.memory_space<vmem>>, vector<1x16x16xf32>,
    %c1_47 = arith.constant 1 : index
    %c1_48 = arith.constant 1 : index
    %c19_49 = arith.constant 19 : index
    %89 = vector.load %arg15[%c1_47, %c1_48, %c19_49] : memref<4x18x74xf32, #tpu.memory_space<vmem>>, vector<1x16x16xf32>
    %90 = vector.shape_cast %89 : vector<1x16x16xf32> to vector<16x16xf32>
    %91 = vector.shape_cast %71 : vector<16x16xf32> to vector<1x16x16xf32>
    tpu.vector_store %arg15[%c1_47, %c1_48, %c19_49], %91 {strides = array<i32>} : memref<4x18x74xf32, #tpu.memory_space<vmem>>, vector<1x16x16xf32>,
    %c1_50 = arith.constant 1 : index
    %c1_51 = arith.constant 1 : index
    %c37_52 = arith.constant 37 : index
    %92 = vector.load %arg15[%c1_50, %c1_51, %c37_52] : memref<4x18x74xf32, #tpu.memory_space<vmem>>, vector<1x16x16xf32>
    %93 = vector.shape_cast %92 : vector<1x16x16xf32> to vector<16x16xf32>
    %94 = vector.shape_cast %71 : vector<16x16xf32> to vector<1x16x16xf32>
    tpu.vector_store %arg15[%c1_50, %c1_51, %c37_52], %94 {strides = array<i32>} : memref<4x18x74xf32, #tpu.memory_space<vmem>>, vector<1x16x16xf32>,
    %c1_53 = arith.constant 1 : index
    %c1_54 = arith.constant 1 : index
    %c55_55 = arith.constant 55 : index
    %95 = vector.load %arg15[%c1_53, %c1_54, %c55_55] : memref<4x18x74xf32, #tpu.memory_space<vmem>>, vector<1x16x16xf32>
    %96 = vector.shape_cast %95 : vector<1x16x16xf32> to vector<16x16xf32>
    %97 = vector.shape_cast %71 : vector<16x16xf32> to vector<1x16x16xf32>
    tpu.vector_store %arg15[%c1_53, %c1_54, %c55_55], %97 {strides = array<i32>} : memref<4x18x74xf32, #tpu.memory_space<vmem>>, vector<1x16x16xf32>,
    %c2_56 = arith.constant 2 : index
    %c1_57 = arith.constant 1 : index
    %c1_58 = arith.constant 1 : index
    %98 = vector.load %arg15[%c2_56, %c1_57, %c1_58] : memref<4x18x74xf32, #tpu.memory_space<vmem>>, vector<1x16x16xf32>
    %99 = vector.shape_cast %98 : vector<1x16x16xf32> to vector<16x16xf32>
    %100 = vector.shape_cast %72 : vector<16x16xf32> to vector<1x16x16xf32>
    tpu.vector_store %arg15[%c2_56, %c1_57, %c1_58], %100 {strides = array<i32>} : memref<4x18x74xf32, #tpu.memory_space<vmem>>, vector<1x16x16xf32>,
    %c2_59 = arith.constant 2 : index
    %c1_60 = arith.constant 1 : index
    %c19_61 = arith.constant 19 : index
    %101 = vector.load %arg15[%c2_59, %c1_60, %c19_61] : memref<4x18x74xf32, #tpu.memory_space<vmem>>, vector<1x16x16xf32>
    %102 = vector.shape_cast %101 : vector<1x16x16xf32> to vector<16x16xf32>
    %103 = vector.shape_cast %72 : vector<16x16xf32> to vector<1x16x16xf32>
    tpu.vector_store %arg15[%c2_59, %c1_60, %c19_61], %103 {strides = array<i32>} : memref<4x18x74xf32, #tpu.memory_space<vmem>>, vector<1x16x16xf32>,
    %c2_62 = arith.constant 2 : index
    %c1_63 = arith.constant 1 : index
    %c37_64 = arith.constant 37 : index
    %104 = vector.load %arg15[%c2_62, %c1_63, %c37_64] : memref<4x18x74xf32, #tpu.memory_space<vmem>>, vector<1x16x16xf32>
    %105 = vector.shape_cast %104 : vector<1x16x16xf32> to vector<16x16xf32>
    %106 = vector.shape_cast %72 : vector<16x16xf32> to vector<1x16x16xf32>
    tpu.vector_store %arg15[%c2_62, %c1_63, %c37_64], %106 {strides = array<i32>} : memref<4x18x74xf32, #tpu.memory_space<vmem>>, vector<1x16x16xf32>,
    %c2_65 = arith.constant 2 : index
    %c1_66 = arith.constant 1 : index
    %c55_67 = arith.constant 55 : index
    %107 = vector.load %arg15[%c2_65, %c1_66, %c55_67] : memref<4x18x74xf32, #tpu.memory_space<vmem>>, vector<1x16x16xf32>
    %108 = vector.shape_cast %107 : vector<1x16x16xf32> to vector<16x16xf32>
    %109 = vector.shape_cast %72 : vector<16x16xf32> to vector<1x16x16xf32>
    tpu.vector_store %arg15[%c2_65, %c1_66, %c55_67], %109 {strides = array<i32>} : memref<4x18x74xf32, #tpu.memory_space<vmem>>, vector<1x16x16xf32>,
    %c3_68 = arith.constant 3 : index
    %c1_69 = arith.constant 1 : index
    %c1_70 = arith.constant 1 : index
    %110 = vector.load %arg15[%c3_68, %c1_69, %c1_70] : memref<4x18x74xf32, #tpu.memory_space<vmem>>, vector<1x16x16xf32>
    %111 = vector.shape_cast %110 : vector<1x16x16xf32> to vector<16x16xf32>
    %112 = vector.shape_cast %73 : vector<16x16xf32> to vector<1x16x16xf32>
    tpu.vector_store %arg15[%c3_68, %c1_69, %c1_70], %112 {strides = array<i32>} : memref<4x18x74xf32, #tpu.memory_space<vmem>>, vector<1x16x16xf32>,
    %c3_71 = arith.constant 3 : index
    %c1_72 = arith.constant 1 : index
    %c19_73 = arith.constant 19 : index
    %113 = vector.load %arg15[%c3_71, %c1_72, %c19_73] : memref<4x18x74xf32, #tpu.memory_space<vmem>>, vector<1x16x16xf32>
    %114 = vector.shape_cast %113 : vector<1x16x16xf32> to vector<16x16xf32>
    %115 = vector.shape_cast %73 : vector<16x16xf32> to vector<1x16x16xf32>
    tpu.vector_store %arg15[%c3_71, %c1_72, %c19_73], %115 {strides = array<i32>} : memref<4x18x74xf32, #tpu.memory_space<vmem>>, vector<1x16x16xf32>,
    %c3_74 = arith.constant 3 : index
    %c1_75 = arith.constant 1 : index
    %c37_76 = arith.constant 37 : index
    %116 = vector.load %arg15[%c3_74, %c1_75, %c37_76] : memref<4x18x74xf32, #tpu.memory_space<vmem>>, vector<1x16x16xf32>
    %117 = vector.shape_cast %116 : vector<1x16x16xf32> to vector<16x16xf32>
    %118 = vector.shape_cast %73 : vector<16x16xf32> to vector<1x16x16xf32>
    tpu.vector_store %arg15[%c3_74, %c1_75, %c37_76], %118 {strides = array<i32>} : memref<4x18x74xf32, #tpu.memory_space<vmem>>, vector<1x16x16xf32>,
    %c3_77 = arith.constant 3 : index
    %c1_78 = arith.constant 1 : index
    %c55_79 = arith.constant 55 : index
    %119 = vector.load %arg15[%c3_77, %c1_78, %c55_79] : memref<4x18x74xf32, #tpu.memory_space<vmem>>, vector<1x16x16xf32>
    %120 = vector.shape_cast %119 : vector<1x16x16xf32> to vector<16x16xf32>
    %121 = vector.shape_cast %73 : vector<16x16xf32> to vector<1x16x16xf32>
    tpu.vector_store %arg15[%c3_77, %c1_78, %c55_79], %121 {strides = array<i32>} : memref<4x18x74xf32, #tpu.memory_space<vmem>>, vector<1x16x16xf32>,
    %c0_80 = arith.constant 0 : index
    %c0_81 = arith.constant 0 : index
    %c0_82 = arith.constant 0 : index
    %122 = vector.load %arg15[%c0_80, %c0_81, %c0_82] : memref<4x18x74xf32, #tpu.memory_space<vmem>>, vector<1x18x74xf32>
    %123 = vector.shape_cast %122 : vector<1x18x74xf32> to vector<18x74xf32>
    %c1_83 = arith.constant 1 : index
    %c0_84 = arith.constant 0 : index
    %c0_85 = arith.constant 0 : index
    %124 = vector.load %arg15[%c1_83, %c0_84, %c0_85] : memref<4x18x74xf32, #tpu.memory_space<vmem>>, vector<1x18x74xf32>
    %125 = vector.shape_cast %124 : vector<1x18x74xf32> to vector<18x74xf32>
    %c2_86 = arith.constant 2 : index
    %c0_87 = arith.constant 0 : index
    %c0_88 = arith.constant 0 : index
    %126 = vector.load %arg15[%c2_86, %c0_87, %c0_88] : memref<4x18x74xf32, #tpu.memory_space<vmem>>, vector<1x18x74xf32>
    %127 = vector.shape_cast %126 : vector<1x18x74xf32> to vector<18x74xf32>
    %c3_89 = arith.constant 3 : index
    %c0_90 = arith.constant 0 : index
    %c0_91 = arith.constant 0 : index
    %128 = vector.load %arg15[%c3_89, %c0_90, %c0_91] : memref<4x18x74xf32, #tpu.memory_space<vmem>>, vector<1x18x74xf32>
    %129 = vector.shape_cast %128 : vector<1x18x74xf32> to vector<18x74xf32>
    %cst_92 = arith.constant 0.000000e+00 : f32
    %130 = vector.broadcast %cst_92 : f32 to vector<16x72xf32>
    %131 = vector.extract_strided_slice %123 {offsets = [0, 0], sizes = [16, 72], strides = [1, 1]} : vector<18x74xf32> to vector<16x72xf32>
    %c0_93 = arith.constant 0 : index
    %c0_94 = arith.constant 0 : index
    %132 = vector.load %arg4[%c0_93, %c0_94] : memref<36x72xf32, #tpu.memory_space<vmem>>, vector<1x72xf32>
    %133 = vector.broadcast %132 : vector<1x72xf32> to vector<16x72xf32>
    %134 = arith.mulf %133, %131 : vector<16x72xf32>
    %135 = arith.addf %130, %134 : vector<16x72xf32>
    %136 = vector.extract_strided_slice %125 {offsets = [0, 0], sizes = [16, 72], strides = [1, 1]} : vector<18x74xf32> to vector<16x72xf32>
    %c1_95 = arith.constant 1 : index
    %c0_96 = arith.constant 0 : index
    %137 = vector.load %arg4[%c1_95, %c0_96] : memref<36x72xf32, #tpu.memory_space<vmem>>, vector<1x72xf32>
    %138 = vector.broadcast %137 : vector<1x72xf32> to vector<16x72xf32>
    %139 = arith.mulf %138, %136 : vector<16x72xf32>
    %140 = arith.addf %135, %139 : vector<16x72xf32>
    %141 = vector.extract_strided_slice %127 {offsets = [0, 0], sizes = [16, 72], strides = [1, 1]} : vector<18x74xf32> to vector<16x72xf32>
    %c2_97 = arith.constant 2 : index
    %c0_98 = arith.constant 0 : index
    %142 = vector.load %arg4[%c2_97, %c0_98] : memref<36x72xf32, #tpu.memory_space<vmem>>, vector<1x72xf32>
    %143 = vector.broadcast %142 : vector<1x72xf32> to vector<16x72xf32>
    %144 = arith.mulf %143, %141 : vector<16x72xf32>
    %145 = arith.addf %140, %144 : vector<16x72xf32>
    %146 = vector.extract_strided_slice %129 {offsets = [0, 0], sizes = [16, 72], strides = [1, 1]} : vector<18x74xf32> to vector<16x72xf32>
    %c3_99 = arith.constant 3 : index
    %c0_100 = arith.constant 0 : index
    %147 = vector.load %arg4[%c3_99, %c0_100] : memref<36x72xf32, #tpu.memory_space<vmem>>, vector<1x72xf32>
    %148 = vector.broadcast %147 : vector<1x72xf32> to vector<16x72xf32>
    %149 = arith.mulf %148, %146 : vector<16x72xf32>
    %150 = arith.addf %145, %149 : vector<16x72xf32>
    %151 = vector.extract_strided_slice %123 {offsets = [0, 1], sizes = [16, 72], strides = [1, 1]} : vector<18x74xf32> to vector<16x72xf32>
    %c4_101 = arith.constant 4 : index
    %c0_102 = arith.constant 0 : index
    %152 = vector.load %arg4[%c4_101, %c0_102] : memref<36x72xf32, #tpu.memory_space<vmem>>, vector<1x72xf32>
    %153 = vector.broadcast %152 : vector<1x72xf32> to vector<16x72xf32>
    %154 = arith.mulf %153, %151 : vector<16x72xf32>
    %155 = arith.addf %150, %154 : vector<16x72xf32>
    %156 = vector.extract_strided_slice %125 {offsets = [0, 1], sizes = [16, 72], strides = [1, 1]} : vector<18x74xf32> to vector<16x72xf32>
    %c5_103 = arith.constant 5 : index
    %c0_104 = arith.constant 0 : index
    %157 = vector.load %arg4[%c5_103, %c0_104] : memref<36x72xf32, #tpu.memory_space<vmem>>, vector<1x72xf32>
    %158 = vector.broadcast %157 : vector<1x72xf32> to vector<16x72xf32>
    %159 = arith.mulf %158, %156 : vector<16x72xf32>
    %160 = arith.addf %155, %159 : vector<16x72xf32>
    %161 = vector.extract_strided_slice %127 {offsets = [0, 1], sizes = [16, 72], strides = [1, 1]} : vector<18x74xf32> to vector<16x72xf32>
    %c6_105 = arith.constant 6 : index
    %c0_106 = arith.constant 0 : index
    %162 = vector.load %arg4[%c6_105, %c0_106] : memref<36x72xf32, #tpu.memory_space<vmem>>, vector<1x72xf32>
    %163 = vector.broadcast %162 : vector<1x72xf32> to vector<16x72xf32>
    %164 = arith.mulf %163, %161 : vector<16x72xf32>
    %165 = arith.addf %160, %164 : vector<16x72xf32>
    %166 = vector.extract_strided_slice %129 {offsets = [0, 1], sizes = [16, 72], strides = [1, 1]} : vector<18x74xf32> to vector<16x72xf32>
    %c7_107 = arith.constant 7 : index
    %c0_108 = arith.constant 0 : index
    %167 = vector.load %arg4[%c7_107, %c0_108] : memref<36x72xf32, #tpu.memory_space<vmem>>, vector<1x72xf32>
    %168 = vector.broadcast %167 : vector<1x72xf32> to vector<16x72xf32>
    %169 = arith.mulf %168, %166 : vector<16x72xf32>
    %170 = arith.addf %165, %169 : vector<16x72xf32>
    %171 = vector.extract_strided_slice %123 {offsets = [0, 2], sizes = [16, 72], strides = [1, 1]} : vector<18x74xf32> to vector<16x72xf32>
    %c8_109 = arith.constant 8 : index
    %c0_110 = arith.constant 0 : index
    %172 = vector.load %arg4[%c8_109, %c0_110] : memref<36x72xf32, #tpu.memory_space<vmem>>, vector<1x72xf32>
    %173 = vector.broadcast %172 : vector<1x72xf32> to vector<16x72xf32>
    %174 = arith.mulf %173, %171 : vector<16x72xf32>
    %175 = arith.addf %170, %174 : vector<16x72xf32>
    %176 = vector.extract_strided_slice %125 {offsets = [0, 2], sizes = [16, 72], strides = [1, 1]} : vector<18x74xf32> to vector<16x72xf32>
    %c9 = arith.constant 9 : index
    %c0_111 = arith.constant 0 : index
    %177 = vector.load %arg4[%c9, %c0_111] : memref<36x72xf32, #tpu.memory_space<vmem>>, vector<1x72xf32>
    %178 = vector.broadcast %177 : vector<1x72xf32> to vector<16x72xf32>
    %179 = arith.mulf %178, %176 : vector<16x72xf32>
    %180 = arith.addf %175, %179 : vector<16x72xf32>
    %181 = vector.extract_strided_slice %127 {offsets = [0, 2], sizes = [16, 72], strides = [1, 1]} : vector<18x74xf32> to vector<16x72xf32>
    %c10 = arith.constant 10 : index
    %c0_112 = arith.constant 0 : index
    %182 = vector.load %arg4[%c10, %c0_112] : memref<36x72xf32, #tpu.memory_space<vmem>>, vector<1x72xf32>
    %183 = vector.broadcast %182 : vector<1x72xf32> to vector<16x72xf32>
    %184 = arith.mulf %183, %181 : vector<16x72xf32>
    %185 = arith.addf %180, %184 : vector<16x72xf32>
    %186 = vector.extract_strided_slice %129 {offsets = [0, 2], sizes = [16, 72], strides = [1, 1]} : vector<18x74xf32> to vector<16x72xf32>
    %c11 = arith.constant 11 : index
    %c0_113 = arith.constant 0 : index
    %187 = vector.load %arg4[%c11, %c0_113] : memref<36x72xf32, #tpu.memory_space<vmem>>, vector<1x72xf32>
    %188 = vector.broadcast %187 : vector<1x72xf32> to vector<16x72xf32>
    %189 = arith.mulf %188, %186 : vector<16x72xf32>
    %190 = arith.addf %185, %189 : vector<16x72xf32>
    %191 = vector.extract_strided_slice %123 {offsets = [1, 0], sizes = [16, 72], strides = [1, 1]} : vector<18x74xf32> to vector<16x72xf32>
    %c12 = arith.constant 12 : index
    %c0_114 = arith.constant 0 : index
    %192 = vector.load %arg4[%c12, %c0_114] : memref<36x72xf32, #tpu.memory_space<vmem>>, vector<1x72xf32>
    %193 = vector.broadcast %192 : vector<1x72xf32> to vector<16x72xf32>
    %194 = arith.mulf %193, %191 : vector<16x72xf32>
    %195 = arith.addf %190, %194 : vector<16x72xf32>
    %196 = vector.extract_strided_slice %125 {offsets = [1, 0], sizes = [16, 72], strides = [1, 1]} : vector<18x74xf32> to vector<16x72xf32>
    %c13 = arith.constant 13 : index
    %c0_115 = arith.constant 0 : index
    %197 = vector.load %arg4[%c13, %c0_115] : memref<36x72xf32, #tpu.memory_space<vmem>>, vector<1x72xf32>
    %198 = vector.broadcast %197 : vector<1x72xf32> to vector<16x72xf32>
    %199 = arith.mulf %198, %196 : vector<16x72xf32>
    %200 = arith.addf %195, %199 : vector<16x72xf32>
    %201 = vector.extract_strided_slice %127 {offsets = [1, 0], sizes = [16, 72], strides = [1, 1]} : vector<18x74xf32> to vector<16x72xf32>
    %c14 = arith.constant 14 : index
    %c0_116 = arith.constant 0 : index
    %202 = vector.load %arg4[%c14, %c0_116] : memref<36x72xf32, #tpu.memory_space<vmem>>, vector<1x72xf32>
    %203 = vector.broadcast %202 : vector<1x72xf32> to vector<16x72xf32>
    %204 = arith.mulf %203, %201 : vector<16x72xf32>
    %205 = arith.addf %200, %204 : vector<16x72xf32>
    %206 = vector.extract_strided_slice %129 {offsets = [1, 0], sizes = [16, 72], strides = [1, 1]} : vector<18x74xf32> to vector<16x72xf32>
    %c15 = arith.constant 15 : index
    %c0_117 = arith.constant 0 : index
    %207 = vector.load %arg4[%c15, %c0_117] : memref<36x72xf32, #tpu.memory_space<vmem>>, vector<1x72xf32>
    %208 = vector.broadcast %207 : vector<1x72xf32> to vector<16x72xf32>
    %209 = arith.mulf %208, %206 : vector<16x72xf32>
    %210 = arith.addf %205, %209 : vector<16x72xf32>
    %211 = vector.extract_strided_slice %123 {offsets = [1, 1], sizes = [16, 72], strides = [1, 1]} : vector<18x74xf32> to vector<16x72xf32>
    %c16 = arith.constant 16 : index
    %c0_118 = arith.constant 0 : index
    %212 = vector.load %arg4[%c16, %c0_118] : memref<36x72xf32, #tpu.memory_space<vmem>>, vector<1x72xf32>
    %213 = vector.broadcast %212 : vector<1x72xf32> to vector<16x72xf32>
    %214 = arith.mulf %213, %211 : vector<16x72xf32>
    %215 = arith.addf %210, %214 : vector<16x72xf32>
    %216 = vector.extract_strided_slice %125 {offsets = [1, 1], sizes = [16, 72], strides = [1, 1]} : vector<18x74xf32> to vector<16x72xf32>
    %c17 = arith.constant 17 : index
    %c0_119 = arith.constant 0 : index
    %217 = vector.load %arg4[%c17, %c0_119] : memref<36x72xf32, #tpu.memory_space<vmem>>, vector<1x72xf32>
    %218 = vector.broadcast %217 : vector<1x72xf32> to vector<16x72xf32>
    %219 = arith.mulf %218, %216 : vector<16x72xf32>
    %220 = arith.addf %215, %219 : vector<16x72xf32>
    %221 = vector.extract_strided_slice %127 {offsets = [1, 1], sizes = [16, 72], strides = [1, 1]} : vector<18x74xf32> to vector<16x72xf32>
    %c18 = arith.constant 18 : index
    %c0_120 = arith.constant 0 : index
    %222 = vector.load %arg4[%c18, %c0_120] : memref<36x72xf32, #tpu.memory_space<vmem>>, vector<1x72xf32>
    %223 = vector.broadcast %222 : vector<1x72xf32> to vector<16x72xf32>
    %224 = arith.mulf %223, %221 : vector<16x72xf32>
    %225 = arith.addf %220, %224 : vector<16x72xf32>
    %226 = vector.extract_strided_slice %129 {offsets = [1, 1], sizes = [16, 72], strides = [1, 1]} : vector<18x74xf32> to vector<16x72xf32>
    %c19_121 = arith.constant 19 : index
    %c0_122 = arith.constant 0 : index
    %227 = vector.load %arg4[%c19_121, %c0_122] : memref<36x72xf32, #tpu.memory_space<vmem>>, vector<1x72xf32>
    %228 = vector.broadcast %227 : vector<1x72xf32> to vector<16x72xf32>
    %229 = arith.mulf %228, %226 : vector<16x72xf32>
    %230 = arith.addf %225, %229 : vector<16x72xf32>
    %231 = vector.extract_strided_slice %123 {offsets = [1, 2], sizes = [16, 72], strides = [1, 1]} : vector<18x74xf32> to vector<16x72xf32>
    %c20 = arith.constant 20 : index
    %c0_123 = arith.constant 0 : index
    %232 = vector.load %arg4[%c20, %c0_123] : memref<36x72xf32, #tpu.memory_space<vmem>>, vector<1x72xf32>
    %233 = vector.broadcast %232 : vector<1x72xf32> to vector<16x72xf32>
    %234 = arith.mulf %233, %231 : vector<16x72xf32>
    %235 = arith.addf %230, %234 : vector<16x72xf32>
    %236 = vector.extract_strided_slice %125 {offsets = [1, 2], sizes = [16, 72], strides = [1, 1]} : vector<18x74xf32> to vector<16x72xf32>
    %c21 = arith.constant 21 : index
    %c0_124 = arith.constant 0 : index
    %237 = vector.load %arg4[%c21, %c0_124] : memref<36x72xf32, #tpu.memory_space<vmem>>, vector<1x72xf32>
    %238 = vector.broadcast %237 : vector<1x72xf32> to vector<16x72xf32>
    %239 = arith.mulf %238, %236 : vector<16x72xf32>
    %240 = arith.addf %235, %239 : vector<16x72xf32>
    %241 = vector.extract_strided_slice %127 {offsets = [1, 2], sizes = [16, 72], strides = [1, 1]} : vector<18x74xf32> to vector<16x72xf32>
    %c22 = arith.constant 22 : index
    %c0_125 = arith.constant 0 : index
    %242 = vector.load %arg4[%c22, %c0_125] : memref<36x72xf32, #tpu.memory_space<vmem>>, vector<1x72xf32>
    %243 = vector.broadcast %242 : vector<1x72xf32> to vector<16x72xf32>
    %244 = arith.mulf %243, %241 : vector<16x72xf32>
    %245 = arith.addf %240, %244 : vector<16x72xf32>
    %246 = vector.extract_strided_slice %129 {offsets = [1, 2], sizes = [16, 72], strides = [1, 1]} : vector<18x74xf32> to vector<16x72xf32>
    %c23 = arith.constant 23 : index
    %c0_126 = arith.constant 0 : index
    %247 = vector.load %arg4[%c23, %c0_126] : memref<36x72xf32, #tpu.memory_space<vmem>>, vector<1x72xf32>
    %248 = vector.broadcast %247 : vector<1x72xf32> to vector<16x72xf32>
    %249 = arith.mulf %248, %246 : vector<16x72xf32>
    %250 = arith.addf %245, %249 : vector<16x72xf32>
    %251 = vector.extract_strided_slice %123 {offsets = [2, 0], sizes = [16, 72], strides = [1, 1]} : vector<18x74xf32> to vector<16x72xf32>
    %c24 = arith.constant 24 : index
    %c0_127 = arith.constant 0 : index
    %252 = vector.load %arg4[%c24, %c0_127] : memref<36x72xf32, #tpu.memory_space<vmem>>, vector<1x72xf32>
    %253 = vector.broadcast %252 : vector<1x72xf32> to vector<16x72xf32>
    %254 = arith.mulf %253, %251 : vector<16x72xf32>
    %255 = arith.addf %250, %254 : vector<16x72xf32>
    %256 = vector.extract_strided_slice %125 {offsets = [2, 0], sizes = [16, 72], strides = [1, 1]} : vector<18x74xf32> to vector<16x72xf32>
    %c25 = arith.constant 25 : index
    %c0_128 = arith.constant 0 : index
    %257 = vector.load %arg4[%c25, %c0_128] : memref<36x72xf32, #tpu.memory_space<vmem>>, vector<1x72xf32>
    %258 = vector.broadcast %257 : vector<1x72xf32> to vector<16x72xf32>
    %259 = arith.mulf %258, %256 : vector<16x72xf32>
    %260 = arith.addf %255, %259 : vector<16x72xf32>
    %261 = vector.extract_strided_slice %127 {offsets = [2, 0], sizes = [16, 72], strides = [1, 1]} : vector<18x74xf32> to vector<16x72xf32>
    %c26 = arith.constant 26 : index
    %c0_129 = arith.constant 0 : index
    %262 = vector.load %arg4[%c26, %c0_129] : memref<36x72xf32, #tpu.memory_space<vmem>>, vector<1x72xf32>
    %263 = vector.broadcast %262 : vector<1x72xf32> to vector<16x72xf32>
    %264 = arith.mulf %263, %261 : vector<16x72xf32>
    %265 = arith.addf %260, %264 : vector<16x72xf32>
    %266 = vector.extract_strided_slice %129 {offsets = [2, 0], sizes = [16, 72], strides = [1, 1]} : vector<18x74xf32> to vector<16x72xf32>
    %c27 = arith.constant 27 : index
    %c0_130 = arith.constant 0 : index
    %267 = vector.load %arg4[%c27, %c0_130] : memref<36x72xf32, #tpu.memory_space<vmem>>, vector<1x72xf32>
    %268 = vector.broadcast %267 : vector<1x72xf32> to vector<16x72xf32>
    %269 = arith.mulf %268, %266 : vector<16x72xf32>
    %270 = arith.addf %265, %269 : vector<16x72xf32>
    %271 = vector.extract_strided_slice %123 {offsets = [2, 1], sizes = [16, 72], strides = [1, 1]} : vector<18x74xf32> to vector<16x72xf32>
    %c28 = arith.constant 28 : index
    %c0_131 = arith.constant 0 : index
    %272 = vector.load %arg4[%c28, %c0_131] : memref<36x72xf32, #tpu.memory_space<vmem>>, vector<1x72xf32>
    %273 = vector.broadcast %272 : vector<1x72xf32> to vector<16x72xf32>
    %274 = arith.mulf %273, %271 : vector<16x72xf32>
    %275 = arith.addf %270, %274 : vector<16x72xf32>
    %276 = vector.extract_strided_slice %125 {offsets = [2, 1], sizes = [16, 72], strides = [1, 1]} : vector<18x74xf32> to vector<16x72xf32>
    %c29 = arith.constant 29 : index
    %c0_132 = arith.constant 0 : index
    %277 = vector.load %arg4[%c29, %c0_132] : memref<36x72xf32, #tpu.memory_space<vmem>>, vector<1x72xf32>
    %278 = vector.broadcast %277 : vector<1x72xf32> to vector<16x72xf32>
    %279 = arith.mulf %278, %276 : vector<16x72xf32>
    %280 = arith.addf %275, %279 : vector<16x72xf32>
    %281 = vector.extract_strided_slice %127 {offsets = [2, 1], sizes = [16, 72], strides = [1, 1]} : vector<18x74xf32> to vector<16x72xf32>
    %c30 = arith.constant 30 : index
    %c0_133 = arith.constant 0 : index
    %282 = vector.load %arg4[%c30, %c0_133] : memref<36x72xf32, #tpu.memory_space<vmem>>, vector<1x72xf32>
    %283 = vector.broadcast %282 : vector<1x72xf32> to vector<16x72xf32>
    %284 = arith.mulf %283, %281 : vector<16x72xf32>
    %285 = arith.addf %280, %284 : vector<16x72xf32>
    %286 = vector.extract_strided_slice %129 {offsets = [2, 1], sizes = [16, 72], strides = [1, 1]} : vector<18x74xf32> to vector<16x72xf32>
    %c31 = arith.constant 31 : index
    %c0_134 = arith.constant 0 : index
    %287 = vector.load %arg4[%c31, %c0_134] : memref<36x72xf32, #tpu.memory_space<vmem>>, vector<1x72xf32>
    %288 = vector.broadcast %287 : vector<1x72xf32> to vector<16x72xf32>
    %289 = arith.mulf %288, %286 : vector<16x72xf32>
    %290 = arith.addf %285, %289 : vector<16x72xf32>
    %291 = vector.extract_strided_slice %123 {offsets = [2, 2], sizes = [16, 72], strides = [1, 1]} : vector<18x74xf32> to vector<16x72xf32>
    %c32 = arith.constant 32 : index
    %c0_135 = arith.constant 0 : index
    %292 = vector.load %arg4[%c32, %c0_135] : memref<36x72xf32, #tpu.memory_space<vmem>>, vector<1x72xf32>
    %293 = vector.broadcast %292 : vector<1x72xf32> to vector<16x72xf32>
    %294 = arith.mulf %293, %291 : vector<16x72xf32>
    %295 = arith.addf %290, %294 : vector<16x72xf32>
    %296 = vector.extract_strided_slice %125 {offsets = [2, 2], sizes = [16, 72], strides = [1, 1]} : vector<18x74xf32> to vector<16x72xf32>
    %c33 = arith.constant 33 : index
    %c0_136 = arith.constant 0 : index
    %297 = vector.load %arg4[%c33, %c0_136] : memref<36x72xf32, #tpu.memory_space<vmem>>, vector<1x72xf32>
    %298 = vector.broadcast %297 : vector<1x72xf32> to vector<16x72xf32>
    %299 = arith.mulf %298, %296 : vector<16x72xf32>
    %300 = arith.addf %295, %299 : vector<16x72xf32>
    %301 = vector.extract_strided_slice %127 {offsets = [2, 2], sizes = [16, 72], strides = [1, 1]} : vector<18x74xf32> to vector<16x72xf32>
    %c34 = arith.constant 34 : index
    %c0_137 = arith.constant 0 : index
    %302 = vector.load %arg4[%c34, %c0_137] : memref<36x72xf32, #tpu.memory_space<vmem>>, vector<1x72xf32>
    %303 = vector.broadcast %302 : vector<1x72xf32> to vector<16x72xf32>
    %304 = arith.mulf %303, %301 : vector<16x72xf32>
    %305 = arith.addf %300, %304 : vector<16x72xf32>
    %306 = vector.extract_strided_slice %129 {offsets = [2, 2], sizes = [16, 72], strides = [1, 1]} : vector<18x74xf32> to vector<16x72xf32>
    %c35 = arith.constant 35 : index
    %c0_138 = arith.constant 0 : index
    %307 = vector.load %arg4[%c35, %c0_138] : memref<36x72xf32, #tpu.memory_space<vmem>>, vector<1x72xf32>
    %308 = vector.broadcast %307 : vector<1x72xf32> to vector<16x72xf32>
    %309 = arith.mulf %308, %306 : vector<16x72xf32>
    %310 = arith.addf %305, %309 : vector<16x72xf32>
    %c0_139 = arith.constant 0 : index
    %c0_140 = arith.constant 0 : index
    %311 = vector.load %arg5[%c0_139, %c0_140] : memref<1x72xf32, #tpu.memory_space<vmem>>, vector<1x72xf32>
    %312 = vector.broadcast %311 : vector<1x72xf32> to vector<16x72xf32>
    %313 = arith.addf %310, %312 : vector<16x72xf32>
    %cst_141 = arith.constant 2.000000e-01 : f32
    %314 = vector.broadcast %cst_141 : f32 to vector<16x72xf32>
    %315 = arith.mulf %314, %313 : vector<16x72xf32>
    %316 = arith.maximumf %313, %315 : vector<16x72xf32>
    %317 = vector.extract_strided_slice %316 {offsets = [0, 0], sizes = [16, 16], strides = [1, 1]} : vector<16x72xf32> to vector<16x16xf32>
    %318 = vector.extract_strided_slice %316 {offsets = [0, 18], sizes = [16, 16], strides = [1, 1]} : vector<16x72xf32> to vector<16x16xf32>
    %319 = vector.extract_strided_slice %316 {offsets = [0, 36], sizes = [16, 16], strides = [1, 1]} : vector<16x72xf32> to vector<16x16xf32>
    %320 = vector.extract_strided_slice %316 {offsets = [0, 54], sizes = [16, 16], strides = [1, 1]} : vector<16x72xf32> to vector<16x16xf32>
    %c0_142 = arith.constant 0 : index
    %c1_143 = arith.constant 1 : index
    %c1_144 = arith.constant 1 : index
    %321 = vector.load %arg15[%c0_142, %c1_143, %c1_144] : memref<4x18x74xf32, #tpu.memory_space<vmem>>, vector<1x16x16xf32>
    %322 = vector.shape_cast %321 : vector<1x16x16xf32> to vector<16x16xf32>
    %323 = vector.shape_cast %317 : vector<16x16xf32> to vector<1x16x16xf32>
    tpu.vector_store %arg15[%c0_142, %c1_143, %c1_144], %323 {strides = array<i32>} : memref<4x18x74xf32, #tpu.memory_space<vmem>>, vector<1x16x16xf32>,
    %c1_145 = arith.constant 1 : index
    %c1_146 = arith.constant 1 : index
    %c1_147 = arith.constant 1 : index
    %324 = vector.load %arg15[%c1_145, %c1_146, %c1_147] : memref<4x18x74xf32, #tpu.memory_space<vmem>>, vector<1x16x16xf32>
    %325 = vector.shape_cast %324 : vector<1x16x16xf32> to vector<16x16xf32>
    %326 = vector.shape_cast %318 : vector<16x16xf32> to vector<1x16x16xf32>
    tpu.vector_store %arg15[%c1_145, %c1_146, %c1_147], %326 {strides = array<i32>} : memref<4x18x74xf32, #tpu.memory_space<vmem>>, vector<1x16x16xf32>,
    %c2_148 = arith.constant 2 : index
    %c1_149 = arith.constant 1 : index
    %c1_150 = arith.constant 1 : index
    %327 = vector.load %arg15[%c2_148, %c1_149, %c1_150] : memref<4x18x74xf32, #tpu.memory_space<vmem>>, vector<1x16x16xf32>
    %328 = vector.shape_cast %327 : vector<1x16x16xf32> to vector<16x16xf32>
    %329 = vector.shape_cast %319 : vector<16x16xf32> to vector<1x16x16xf32>
    tpu.vector_store %arg15[%c2_148, %c1_149, %c1_150], %329 {strides = array<i32>} : memref<4x18x74xf32, #tpu.memory_space<vmem>>, vector<1x16x16xf32>,
    %c3_151 = arith.constant 3 : index
    %c1_152 = arith.constant 1 : index
    %c1_153 = arith.constant 1 : index
    %330 = vector.load %arg15[%c3_151, %c1_152, %c1_153] : memref<4x18x74xf32, #tpu.memory_space<vmem>>, vector<1x16x16xf32>
    %331 = vector.shape_cast %330 : vector<1x16x16xf32> to vector<16x16xf32>
    %332 = vector.shape_cast %320 : vector<16x16xf32> to vector<1x16x16xf32>
    tpu.vector_store %arg15[%c3_151, %c1_152, %c1_153], %332 {strides = array<i32>} : memref<4x18x74xf32, #tpu.memory_space<vmem>>, vector<1x16x16xf32>,
    %c0_154 = arith.constant 0 : index
    %c0_155 = arith.constant 0 : index
    %c0_156 = arith.constant 0 : index
    %333 = vector.load %arg15[%c0_154, %c0_155, %c0_156] : memref<4x18x74xf32, #tpu.memory_space<vmem>>, vector<1x18x74xf32>
    %334 = vector.shape_cast %333 : vector<1x18x74xf32> to vector<18x74xf32>
    %c1_157 = arith.constant 1 : index
    %c0_158 = arith.constant 0 : index
    %c0_159 = arith.constant 0 : index
    %335 = vector.load %arg15[%c1_157, %c0_158, %c0_159] : memref<4x18x74xf32, #tpu.memory_space<vmem>>, vector<1x18x74xf32>
    %336 = vector.shape_cast %335 : vector<1x18x74xf32> to vector<18x74xf32>
    %c2_160 = arith.constant 2 : index
    %c0_161 = arith.constant 0 : index
    %c0_162 = arith.constant 0 : index
    %337 = vector.load %arg15[%c2_160, %c0_161, %c0_162] : memref<4x18x74xf32, #tpu.memory_space<vmem>>, vector<1x18x74xf32>
    %338 = vector.shape_cast %337 : vector<1x18x74xf32> to vector<18x74xf32>
    %c3_163 = arith.constant 3 : index
    %c0_164 = arith.constant 0 : index
    %c0_165 = arith.constant 0 : index
    %339 = vector.load %arg15[%c3_163, %c0_164, %c0_165] : memref<4x18x74xf32, #tpu.memory_space<vmem>>, vector<1x18x74xf32>
    %340 = vector.shape_cast %339 : vector<1x18x74xf32> to vector<18x74xf32>
    %cst_166 = arith.constant 0.000000e+00 : f32
    %341 = vector.broadcast %cst_166 : f32 to vector<16x18xf32>
    %342 = vector.extract_strided_slice %334 {offsets = [0, 0], sizes = [16, 18], strides = [1, 1]} : vector<18x74xf32> to vector<16x18xf32>
    %c0_167 = arith.constant 0 : index
    %c0_168 = arith.constant 0 : index
    %343 = vector.load %arg6[%c0_167, %c0_168] : memref<36x18xf32, #tpu.memory_space<vmem>>, vector<1x18xf32>
    %344 = vector.broadcast %343 : vector<1x18xf32> to vector<16x18xf32>
    %345 = arith.mulf %344, %342 : vector<16x18xf32>
    %346 = arith.addf %341, %345 : vector<16x18xf32>
    %347 = vector.extract_strided_slice %336 {offsets = [0, 0], sizes = [16, 18], strides = [1, 1]} : vector<18x74xf32> to vector<16x18xf32>
    %c1_169 = arith.constant 1 : index
    %c0_170 = arith.constant 0 : index
    %348 = vector.load %arg6[%c1_169, %c0_170] : memref<36x18xf32, #tpu.memory_space<vmem>>, vector<1x18xf32>
    %349 = vector.broadcast %348 : vector<1x18xf32> to vector<16x18xf32>
    %350 = arith.mulf %349, %347 : vector<16x18xf32>
    %351 = arith.addf %346, %350 : vector<16x18xf32>
    %352 = vector.extract_strided_slice %338 {offsets = [0, 0], sizes = [16, 18], strides = [1, 1]} : vector<18x74xf32> to vector<16x18xf32>
    %c2_171 = arith.constant 2 : index
    %c0_172 = arith.constant 0 : index
    %353 = vector.load %arg6[%c2_171, %c0_172] : memref<36x18xf32, #tpu.memory_space<vmem>>, vector<1x18xf32>
    %354 = vector.broadcast %353 : vector<1x18xf32> to vector<16x18xf32>
    %355 = arith.mulf %354, %352 : vector<16x18xf32>
    %356 = arith.addf %351, %355 : vector<16x18xf32>
    %357 = vector.extract_strided_slice %340 {offsets = [0, 0], sizes = [16, 18], strides = [1, 1]} : vector<18x74xf32> to vector<16x18xf32>
    %c3_173 = arith.constant 3 : index
    %c0_174 = arith.constant 0 : index
    %358 = vector.load %arg6[%c3_173, %c0_174] : memref<36x18xf32, #tpu.memory_space<vmem>>, vector<1x18xf32>
    %359 = vector.broadcast %358 : vector<1x18xf32> to vector<16x18xf32>
    %360 = arith.mulf %359, %357 : vector<16x18xf32>
    %361 = arith.addf %356, %360 : vector<16x18xf32>
    %362 = vector.extract_strided_slice %334 {offsets = [0, 1], sizes = [16, 18], strides = [1, 1]} : vector<18x74xf32> to vector<16x18xf32>
    %c4_175 = arith.constant 4 : index
    %c0_176 = arith.constant 0 : index
    %363 = vector.load %arg6[%c4_175, %c0_176] : memref<36x18xf32, #tpu.memory_space<vmem>>, vector<1x18xf32>
    %364 = vector.broadcast %363 : vector<1x18xf32> to vector<16x18xf32>
    %365 = arith.mulf %364, %362 : vector<16x18xf32>
    %366 = arith.addf %361, %365 : vector<16x18xf32>
    %367 = vector.extract_strided_slice %336 {offsets = [0, 1], sizes = [16, 18], strides = [1, 1]} : vector<18x74xf32> to vector<16x18xf32>
    %c5_177 = arith.constant 5 : index
    %c0_178 = arith.constant 0 : index
    %368 = vector.load %arg6[%c5_177, %c0_178] : memref<36x18xf32, #tpu.memory_space<vmem>>, vector<1x18xf32>
    %369 = vector.broadcast %368 : vector<1x18xf32> to vector<16x18xf32>
    %370 = arith.mulf %369, %367 : vector<16x18xf32>
    %371 = arith.addf %366, %370 : vector<16x18xf32>
    %372 = vector.extract_strided_slice %338 {offsets = [0, 1], sizes = [16, 18], strides = [1, 1]} : vector<18x74xf32> to vector<16x18xf32>
    %c6_179 = arith.constant 6 : index
    %c0_180 = arith.constant 0 : index
    %373 = vector.load %arg6[%c6_179, %c0_180] : memref<36x18xf32, #tpu.memory_space<vmem>>, vector<1x18xf32>
    %374 = vector.broadcast %373 : vector<1x18xf32> to vector<16x18xf32>
    %375 = arith.mulf %374, %372 : vector<16x18xf32>
    %376 = arith.addf %371, %375 : vector<16x18xf32>
    %377 = vector.extract_strided_slice %340 {offsets = [0, 1], sizes = [16, 18], strides = [1, 1]} : vector<18x74xf32> to vector<16x18xf32>
    %c7_181 = arith.constant 7 : index
    %c0_182 = arith.constant 0 : index
    %378 = vector.load %arg6[%c7_181, %c0_182] : memref<36x18xf32, #tpu.memory_space<vmem>>, vector<1x18xf32>
    %379 = vector.broadcast %378 : vector<1x18xf32> to vector<16x18xf32>
    %380 = arith.mulf %379, %377 : vector<16x18xf32>
    %381 = arith.addf %376, %380 : vector<16x18xf32>
    %382 = vector.extract_strided_slice %334 {offsets = [0, 2], sizes = [16, 18], strides = [1, 1]} : vector<18x74xf32> to vector<16x18xf32>
    %c8_183 = arith.constant 8 : index
    %c0_184 = arith.constant 0 : index
    %383 = vector.load %arg6[%c8_183, %c0_184] : memref<36x18xf32, #tpu.memory_space<vmem>>, vector<1x18xf32>
    %384 = vector.broadcast %383 : vector<1x18xf32> to vector<16x18xf32>
    %385 = arith.mulf %384, %382 : vector<16x18xf32>
    %386 = arith.addf %381, %385 : vector<16x18xf32>
    %387 = vector.extract_strided_slice %336 {offsets = [0, 2], sizes = [16, 18], strides = [1, 1]} : vector<18x74xf32> to vector<16x18xf32>
    %c9_185 = arith.constant 9 : index
    %c0_186 = arith.constant 0 : index
    %388 = vector.load %arg6[%c9_185, %c0_186] : memref<36x18xf32, #tpu.memory_space<vmem>>, vector<1x18xf32>
    %389 = vector.broadcast %388 : vector<1x18xf32> to vector<16x18xf32>
    %390 = arith.mulf %389, %387 : vector<16x18xf32>
    %391 = arith.addf %386, %390 : vector<16x18xf32>
    %392 = vector.extract_strided_slice %338 {offsets = [0, 2], sizes = [16, 18], strides = [1, 1]} : vector<18x74xf32> to vector<16x18xf32>
    %c10_187 = arith.constant 10 : index
    %c0_188 = arith.constant 0 : index
    %393 = vector.load %arg6[%c10_187, %c0_188] : memref<36x18xf32, #tpu.memory_space<vmem>>, vector<1x18xf32>
    %394 = vector.broadcast %393 : vector<1x18xf32> to vector<16x18xf32>
    %395 = arith.mulf %394, %392 : vector<16x18xf32>
    %396 = arith.addf %391, %395 : vector<16x18xf32>
    %397 = vector.extract_strided_slice %340 {offsets = [0, 2], sizes = [16, 18], strides = [1, 1]} : vector<18x74xf32> to vector<16x18xf32>
    %c11_189 = arith.constant 11 : index
    %c0_190 = arith.constant 0 : index
    %398 = vector.load %arg6[%c11_189, %c0_190] : memref<36x18xf32, #tpu.memory_space<vmem>>, vector<1x18xf32>
    %399 = vector.broadcast %398 : vector<1x18xf32> to vector<16x18xf32>
    %400 = arith.mulf %399, %397 : vector<16x18xf32>
    %401 = arith.addf %396, %400 : vector<16x18xf32>
    %402 = vector.extract_strided_slice %334 {offsets = [1, 0], sizes = [16, 18], strides = [1, 1]} : vector<18x74xf32> to vector<16x18xf32>
    %c12_191 = arith.constant 12 : index
    %c0_192 = arith.constant 0 : index
    %403 = vector.load %arg6[%c12_191, %c0_192] : memref<36x18xf32, #tpu.memory_space<vmem>>, vector<1x18xf32>
    %404 = vector.broadcast %403 : vector<1x18xf32> to vector<16x18xf32>
    %405 = arith.mulf %404, %402 : vector<16x18xf32>
    %406 = arith.addf %401, %405 : vector<16x18xf32>
    %407 = vector.extract_strided_slice %336 {offsets = [1, 0], sizes = [16, 18], strides = [1, 1]} : vector<18x74xf32> to vector<16x18xf32>
    %c13_193 = arith.constant 13 : index
    %c0_194 = arith.constant 0 : index
    %408 = vector.load %arg6[%c13_193, %c0_194] : memref<36x18xf32, #tpu.memory_space<vmem>>, vector<1x18xf32>
    %409 = vector.broadcast %408 : vector<1x18xf32> to vector<16x18xf32>
    %410 = arith.mulf %409, %407 : vector<16x18xf32>
    %411 = arith.addf %406, %410 : vector<16x18xf32>
    %412 = vector.extract_strided_slice %338 {offsets = [1, 0], sizes = [16, 18], strides = [1, 1]} : vector<18x74xf32> to vector<16x18xf32>
    %c14_195 = arith.constant 14 : index
    %c0_196 = arith.constant 0 : index
    %413 = vector.load %arg6[%c14_195, %c0_196] : memref<36x18xf32, #tpu.memory_space<vmem>>, vector<1x18xf32>
    %414 = vector.broadcast %413 : vector<1x18xf32> to vector<16x18xf32>
    %415 = arith.mulf %414, %412 : vector<16x18xf32>
    %416 = arith.addf %411, %415 : vector<16x18xf32>
    %417 = vector.extract_strided_slice %340 {offsets = [1, 0], sizes = [16, 18], strides = [1, 1]} : vector<18x74xf32> to vector<16x18xf32>
    %c15_197 = arith.constant 15 : index
    %c0_198 = arith.constant 0 : index
    %418 = vector.load %arg6[%c15_197, %c0_198] : memref<36x18xf32, #tpu.memory_space<vmem>>, vector<1x18xf32>
    %419 = vector.broadcast %418 : vector<1x18xf32> to vector<16x18xf32>
    %420 = arith.mulf %419, %417 : vector<16x18xf32>
    %421 = arith.addf %416, %420 : vector<16x18xf32>
    %422 = vector.extract_strided_slice %334 {offsets = [1, 1], sizes = [16, 18], strides = [1, 1]} : vector<18x74xf32> to vector<16x18xf32>
    %c16_199 = arith.constant 16 : index
    %c0_200 = arith.constant 0 : index
    %423 = vector.load %arg6[%c16_199, %c0_200] : memref<36x18xf32, #tpu.memory_space<vmem>>, vector<1x18xf32>
    %424 = vector.broadcast %423 : vector<1x18xf32> to vector<16x18xf32>
    %425 = arith.mulf %424, %422 : vector<16x18xf32>
    %426 = arith.addf %421, %425 : vector<16x18xf32>
    %427 = vector.extract_strided_slice %336 {offsets = [1, 1], sizes = [16, 18], strides = [1, 1]} : vector<18x74xf32> to vector<16x18xf32>
    %c17_201 = arith.constant 17 : index
    %c0_202 = arith.constant 0 : index
    %428 = vector.load %arg6[%c17_201, %c0_202] : memref<36x18xf32, #tpu.memory_space<vmem>>, vector<1x18xf32>
    %429 = vector.broadcast %428 : vector<1x18xf32> to vector<16x18xf32>
    %430 = arith.mulf %429, %427 : vector<16x18xf32>
    %431 = arith.addf %426, %430 : vector<16x18xf32>
    %432 = vector.extract_strided_slice %338 {offsets = [1, 1], sizes = [16, 18], strides = [1, 1]} : vector<18x74xf32> to vector<16x18xf32>
    %c18_203 = arith.constant 18 : index
    %c0_204 = arith.constant 0 : index
    %433 = vector.load %arg6[%c18_203, %c0_204] : memref<36x18xf32, #tpu.memory_space<vmem>>, vector<1x18xf32>
    %434 = vector.broadcast %433 : vector<1x18xf32> to vector<16x18xf32>
    %435 = arith.mulf %434, %432 : vector<16x18xf32>
    %436 = arith.addf %431, %435 : vector<16x18xf32>
    %437 = vector.extract_strided_slice %340 {offsets = [1, 1], sizes = [16, 18], strides = [1, 1]} : vector<18x74xf32> to vector<16x18xf32>
    %c19_205 = arith.constant 19 : index
    %c0_206 = arith.constant 0 : index
    %438 = vector.load %arg6[%c19_205, %c0_206] : memref<36x18xf32, #tpu.memory_space<vmem>>, vector<1x18xf32>
    %439 = vector.broadcast %438 : vector<1x18xf32> to vector<16x18xf32>
    %440 = arith.mulf %439, %437 : vector<16x18xf32>
    %441 = arith.addf %436, %440 : vector<16x18xf32>
    %442 = vector.extract_strided_slice %334 {offsets = [1, 2], sizes = [16, 18], strides = [1, 1]} : vector<18x74xf32> to vector<16x18xf32>
    %c20_207 = arith.constant 20 : index
    %c0_208 = arith.constant 0 : index
    %443 = vector.load %arg6[%c20_207, %c0_208] : memref<36x18xf32, #tpu.memory_space<vmem>>, vector<1x18xf32>
    %444 = vector.broadcast %443 : vector<1x18xf32> to vector<16x18xf32>
    %445 = arith.mulf %444, %442 : vector<16x18xf32>
    %446 = arith.addf %441, %445 : vector<16x18xf32>
    %447 = vector.extract_strided_slice %336 {offsets = [1, 2], sizes = [16, 18], strides = [1, 1]} : vector<18x74xf32> to vector<16x18xf32>
    %c21_209 = arith.constant 21 : index
    %c0_210 = arith.constant 0 : index
    %448 = vector.load %arg6[%c21_209, %c0_210] : memref<36x18xf32, #tpu.memory_space<vmem>>, vector<1x18xf32>
    %449 = vector.broadcast %448 : vector<1x18xf32> to vector<16x18xf32>
    %450 = arith.mulf %449, %447 : vector<16x18xf32>
    %451 = arith.addf %446, %450 : vector<16x18xf32>
    %452 = vector.extract_strided_slice %338 {offsets = [1, 2], sizes = [16, 18], strides = [1, 1]} : vector<18x74xf32> to vector<16x18xf32>
    %c22_211 = arith.constant 22 : index
    %c0_212 = arith.constant 0 : index
    %453 = vector.load %arg6[%c22_211, %c0_212] : memref<36x18xf32, #tpu.memory_space<vmem>>, vector<1x18xf32>
    %454 = vector.broadcast %453 : vector<1x18xf32> to vector<16x18xf32>
    %455 = arith.mulf %454, %452 : vector<16x18xf32>
    %456 = arith.addf %451, %455 : vector<16x18xf32>
    %457 = vector.extract_strided_slice %340 {offsets = [1, 2], sizes = [16, 18], strides = [1, 1]} : vector<18x74xf32> to vector<16x18xf32>
    %c23_213 = arith.constant 23 : index
    %c0_214 = arith.constant 0 : index
    %458 = vector.load %arg6[%c23_213, %c0_214] : memref<36x18xf32, #tpu.memory_space<vmem>>, vector<1x18xf32>
    %459 = vector.broadcast %458 : vector<1x18xf32> to vector<16x18xf32>
    %460 = arith.mulf %459, %457 : vector<16x18xf32>
    %461 = arith.addf %456, %460 : vector<16x18xf32>
    %462 = vector.extract_strided_slice %334 {offsets = [2, 0], sizes = [16, 18], strides = [1, 1]} : vector<18x74xf32> to vector<16x18xf32>
    %c24_215 = arith.constant 24 : index
    %c0_216 = arith.constant 0 : index
    %463 = vector.load %arg6[%c24_215, %c0_216] : memref<36x18xf32, #tpu.memory_space<vmem>>, vector<1x18xf32>
    %464 = vector.broadcast %463 : vector<1x18xf32> to vector<16x18xf32>
    %465 = arith.mulf %464, %462 : vector<16x18xf32>
    %466 = arith.addf %461, %465 : vector<16x18xf32>
    %467 = vector.extract_strided_slice %336 {offsets = [2, 0], sizes = [16, 18], strides = [1, 1]} : vector<18x74xf32> to vector<16x18xf32>
    %c25_217 = arith.constant 25 : index
    %c0_218 = arith.constant 0 : index
    %468 = vector.load %arg6[%c25_217, %c0_218] : memref<36x18xf32, #tpu.memory_space<vmem>>, vector<1x18xf32>
    %469 = vector.broadcast %468 : vector<1x18xf32> to vector<16x18xf32>
    %470 = arith.mulf %469, %467 : vector<16x18xf32>
    %471 = arith.addf %466, %470 : vector<16x18xf32>
    %472 = vector.extract_strided_slice %338 {offsets = [2, 0], sizes = [16, 18], strides = [1, 1]} : vector<18x74xf32> to vector<16x18xf32>
    %c26_219 = arith.constant 26 : index
    %c0_220 = arith.constant 0 : index
    %473 = vector.load %arg6[%c26_219, %c0_220] : memref<36x18xf32, #tpu.memory_space<vmem>>, vector<1x18xf32>
    %474 = vector.broadcast %473 : vector<1x18xf32> to vector<16x18xf32>
    %475 = arith.mulf %474, %472 : vector<16x18xf32>
    %476 = arith.addf %471, %475 : vector<16x18xf32>
    %477 = vector.extract_strided_slice %340 {offsets = [2, 0], sizes = [16, 18], strides = [1, 1]} : vector<18x74xf32> to vector<16x18xf32>
    %c27_221 = arith.constant 27 : index
    %c0_222 = arith.constant 0 : index
    %478 = vector.load %arg6[%c27_221, %c0_222] : memref<36x18xf32, #tpu.memory_space<vmem>>, vector<1x18xf32>
    %479 = vector.broadcast %478 : vector<1x18xf32> to vector<16x18xf32>
    %480 = arith.mulf %479, %477 : vector<16x18xf32>
    %481 = arith.addf %476, %480 : vector<16x18xf32>
    %482 = vector.extract_strided_slice %334 {offsets = [2, 1], sizes = [16, 18], strides = [1, 1]} : vector<18x74xf32> to vector<16x18xf32>
    %c28_223 = arith.constant 28 : index
    %c0_224 = arith.constant 0 : index
    %483 = vector.load %arg6[%c28_223, %c0_224] : memref<36x18xf32, #tpu.memory_space<vmem>>, vector<1x18xf32>
    %484 = vector.broadcast %483 : vector<1x18xf32> to vector<16x18xf32>
    %485 = arith.mulf %484, %482 : vector<16x18xf32>
    %486 = arith.addf %481, %485 : vector<16x18xf32>
    %487 = vector.extract_strided_slice %336 {offsets = [2, 1], sizes = [16, 18], strides = [1, 1]} : vector<18x74xf32> to vector<16x18xf32>
    %c29_225 = arith.constant 29 : index
    %c0_226 = arith.constant 0 : index
    %488 = vector.load %arg6[%c29_225, %c0_226] : memref<36x18xf32, #tpu.memory_space<vmem>>, vector<1x18xf32>
    %489 = vector.broadcast %488 : vector<1x18xf32> to vector<16x18xf32>
    %490 = arith.mulf %489, %487 : vector<16x18xf32>
    %491 = arith.addf %486, %490 : vector<16x18xf32>
    %492 = vector.extract_strided_slice %338 {offsets = [2, 1], sizes = [16, 18], strides = [1, 1]} : vector<18x74xf32> to vector<16x18xf32>
    %c30_227 = arith.constant 30 : index
    %c0_228 = arith.constant 0 : index
    %493 = vector.load %arg6[%c30_227, %c0_228] : memref<36x18xf32, #tpu.memory_space<vmem>>, vector<1x18xf32>
    %494 = vector.broadcast %493 : vector<1x18xf32> to vector<16x18xf32>
    %495 = arith.mulf %494, %492 : vector<16x18xf32>
    %496 = arith.addf %491, %495 : vector<16x18xf32>
    %497 = vector.extract_strided_slice %340 {offsets = [2, 1], sizes = [16, 18], strides = [1, 1]} : vector<18x74xf32> to vector<16x18xf32>
    %c31_229 = arith.constant 31 : index
    %c0_230 = arith.constant 0 : index
    %498 = vector.load %arg6[%c31_229, %c0_230] : memref<36x18xf32, #tpu.memory_space<vmem>>, vector<1x18xf32>
    %499 = vector.broadcast %498 : vector<1x18xf32> to vector<16x18xf32>
    %500 = arith.mulf %499, %497 : vector<16x18xf32>
    %501 = arith.addf %496, %500 : vector<16x18xf32>
    %502 = vector.extract_strided_slice %334 {offsets = [2, 2], sizes = [16, 18], strides = [1, 1]} : vector<18x74xf32> to vector<16x18xf32>
    %c32_231 = arith.constant 32 : index
    %c0_232 = arith.constant 0 : index
    %503 = vector.load %arg6[%c32_231, %c0_232] : memref<36x18xf32, #tpu.memory_space<vmem>>, vector<1x18xf32>
    %504 = vector.broadcast %503 : vector<1x18xf32> to vector<16x18xf32>
    %505 = arith.mulf %504, %502 : vector<16x18xf32>
    %506 = arith.addf %501, %505 : vector<16x18xf32>
    %507 = vector.extract_strided_slice %336 {offsets = [2, 2], sizes = [16, 18], strides = [1, 1]} : vector<18x74xf32> to vector<16x18xf32>
    %c33_233 = arith.constant 33 : index
    %c0_234 = arith.constant 0 : index
    %508 = vector.load %arg6[%c33_233, %c0_234] : memref<36x18xf32, #tpu.memory_space<vmem>>, vector<1x18xf32>
    %509 = vector.broadcast %508 : vector<1x18xf32> to vector<16x18xf32>
    %510 = arith.mulf %509, %507 : vector<16x18xf32>
    %511 = arith.addf %506, %510 : vector<16x18xf32>
    %512 = vector.extract_strided_slice %338 {offsets = [2, 2], sizes = [16, 18], strides = [1, 1]} : vector<18x74xf32> to vector<16x18xf32>
    %c34_235 = arith.constant 34 : index
    %c0_236 = arith.constant 0 : index
    %513 = vector.load %arg6[%c34_235, %c0_236] : memref<36x18xf32, #tpu.memory_space<vmem>>, vector<1x18xf32>
    %514 = vector.broadcast %513 : vector<1x18xf32> to vector<16x18xf32>
    %515 = arith.mulf %514, %512 : vector<16x18xf32>
    %516 = arith.addf %511, %515 : vector<16x18xf32>
    %517 = vector.extract_strided_slice %340 {offsets = [2, 2], sizes = [16, 18], strides = [1, 1]} : vector<18x74xf32> to vector<16x18xf32>
    %c35_237 = arith.constant 35 : index
    %c0_238 = arith.constant 0 : index
    %518 = vector.load %arg6[%c35_237, %c0_238] : memref<36x18xf32, #tpu.memory_space<vmem>>, vector<1x18xf32>
    %519 = vector.broadcast %518 : vector<1x18xf32> to vector<16x18xf32>
    %520 = arith.mulf %519, %517 : vector<16x18xf32>
    %521 = arith.addf %516, %520 : vector<16x18xf32>
    %c0_239 = arith.constant 0 : index
    %c0_240 = arith.constant 0 : index
    %522 = vector.load %arg7[%c0_239, %c0_240] : memref<1x18xf32, #tpu.memory_space<vmem>>, vector<1x18xf32>
    %523 = vector.broadcast %522 : vector<1x18xf32> to vector<16x18xf32>
    %524 = arith.addf %521, %523 : vector<16x18xf32>
    %525 = math.tanh %524 : vector<16x18xf32>
    %526 = vector.extract_strided_slice %525 {offsets = [0, 0], sizes = [16, 16], strides = [1, 1]} : vector<16x18xf32> to vector<16x16xf32>
    %527 = arith.subf %3, %526 : vector<16x16xf32>
    %c0_241 = arith.constant 0 : index
    %c1_242 = arith.constant 1 : index
    %c1_243 = arith.constant 1 : index
    %528 = vector.load %arg15[%c0_241, %c1_242, %c1_243] : memref<4x18x74xf32, #tpu.memory_space<vmem>>, vector<1x16x16xf32>
    %529 = vector.shape_cast %528 : vector<1x16x16xf32> to vector<16x16xf32>
    %530 = vector.shape_cast %3 : vector<16x16xf32> to vector<1x16x16xf32>
    tpu.vector_store %arg15[%c0_241, %c1_242, %c1_243], %530 {strides = array<i32>} : memref<4x18x74xf32, #tpu.memory_space<vmem>>, vector<1x16x16xf32>,
    %c0_244 = arith.constant 0 : index
    %c1_245 = arith.constant 1 : index
    %c19_246 = arith.constant 19 : index
    %531 = vector.load %arg15[%c0_244, %c1_245, %c19_246] : memref<4x18x74xf32, #tpu.memory_space<vmem>>, vector<1x16x16xf32>
    %532 = vector.shape_cast %531 : vector<1x16x16xf32> to vector<16x16xf32>
    %533 = vector.shape_cast %3 : vector<16x16xf32> to vector<1x16x16xf32>
    tpu.vector_store %arg15[%c0_244, %c1_245, %c19_246], %533 {strides = array<i32>} : memref<4x18x74xf32, #tpu.memory_space<vmem>>, vector<1x16x16xf32>,
    %c0_247 = arith.constant 0 : index
    %c1_248 = arith.constant 1 : index
    %c37_249 = arith.constant 37 : index
    %534 = vector.load %arg15[%c0_247, %c1_248, %c37_249] : memref<4x18x74xf32, #tpu.memory_space<vmem>>, vector<1x16x16xf32>
    %535 = vector.shape_cast %534 : vector<1x16x16xf32> to vector<16x16xf32>
    %536 = vector.shape_cast %3 : vector<16x16xf32> to vector<1x16x16xf32>
    tpu.vector_store %arg15[%c0_247, %c1_248, %c37_249], %536 {strides = array<i32>} : memref<4x18x74xf32, #tpu.memory_space<vmem>>, vector<1x16x16xf32>,
    %c0_250 = arith.constant 0 : index
    %c1_251 = arith.constant 1 : index
    %c55_252 = arith.constant 55 : index
    %537 = vector.load %arg15[%c0_250, %c1_251, %c55_252] : memref<4x18x74xf32, #tpu.memory_space<vmem>>, vector<1x16x16xf32>
    %538 = vector.shape_cast %537 : vector<1x16x16xf32> to vector<16x16xf32>
    %539 = vector.shape_cast %3 : vector<16x16xf32> to vector<1x16x16xf32>
    tpu.vector_store %arg15[%c0_250, %c1_251, %c55_252], %539 {strides = array<i32>} : memref<4x18x74xf32, #tpu.memory_space<vmem>>, vector<1x16x16xf32>,
    %c1_253 = arith.constant 1 : index
    %c1_254 = arith.constant 1 : index
    %c1_255 = arith.constant 1 : index
    %540 = vector.load %arg15[%c1_253, %c1_254, %c1_255] : memref<4x18x74xf32, #tpu.memory_space<vmem>>, vector<1x16x16xf32>
    %541 = vector.shape_cast %540 : vector<1x16x16xf32> to vector<16x16xf32>
    %542 = vector.shape_cast %527 : vector<16x16xf32> to vector<1x16x16xf32>
    tpu.vector_store %arg15[%c1_253, %c1_254, %c1_255], %542 {strides = array<i32>} : memref<4x18x74xf32, #tpu.memory_space<vmem>>, vector<1x16x16xf32>,
    %c1_256 = arith.constant 1 : index
    %c1_257 = arith.constant 1 : index
    %c19_258 = arith.constant 19 : index
    %543 = vector.load %arg15[%c1_256, %c1_257, %c19_258] : memref<4x18x74xf32, #tpu.memory_space<vmem>>, vector<1x16x16xf32>
    %544 = vector.shape_cast %543 : vector<1x16x16xf32> to vector<16x16xf32>
    %545 = vector.shape_cast %527 : vector<16x16xf32> to vector<1x16x16xf32>
    tpu.vector_store %arg15[%c1_256, %c1_257, %c19_258], %545 {strides = array<i32>} : memref<4x18x74xf32, #tpu.memory_space<vmem>>, vector<1x16x16xf32>,
    %c1_259 = arith.constant 1 : index
    %c1_260 = arith.constant 1 : index
    %c37_261 = arith.constant 37 : index
    %546 = vector.load %arg15[%c1_259, %c1_260, %c37_261] : memref<4x18x74xf32, #tpu.memory_space<vmem>>, vector<1x16x16xf32>
    %547 = vector.shape_cast %546 : vector<1x16x16xf32> to vector<16x16xf32>
    %548 = vector.shape_cast %527 : vector<16x16xf32> to vector<1x16x16xf32>
    tpu.vector_store %arg15[%c1_259, %c1_260, %c37_261], %548 {strides = array<i32>} : memref<4x18x74xf32, #tpu.memory_space<vmem>>, vector<1x16x16xf32>,
    %c1_262 = arith.constant 1 : index
    %c1_263 = arith.constant 1 : index
    %c55_264 = arith.constant 55 : index
    %549 = vector.load %arg15[%c1_262, %c1_263, %c55_264] : memref<4x18x74xf32, #tpu.memory_space<vmem>>, vector<1x16x16xf32>
    %550 = vector.shape_cast %549 : vector<1x16x16xf32> to vector<16x16xf32>
    %551 = vector.shape_cast %527 : vector<16x16xf32> to vector<1x16x16xf32>
    tpu.vector_store %arg15[%c1_262, %c1_263, %c55_264], %551 {strides = array<i32>} : memref<4x18x74xf32, #tpu.memory_space<vmem>>, vector<1x16x16xf32>,
    %c0_265 = arith.constant 0 : index
    %c0_266 = arith.constant 0 : index
    %c0_267 = arith.constant 0 : index
    %552 = vector.load %arg15[%c0_265, %c0_266, %c0_267] : memref<4x18x74xf32, #tpu.memory_space<vmem>>, vector<1x18x74xf32>
    %553 = vector.shape_cast %552 : vector<1x18x74xf32> to vector<18x74xf32>
    %c1_268 = arith.constant 1 : index
    %c0_269 = arith.constant 0 : index
    %c0_270 = arith.constant 0 : index
    %554 = vector.load %arg15[%c1_268, %c0_269, %c0_270] : memref<4x18x74xf32, #tpu.memory_space<vmem>>, vector<1x18x74xf32>
    %555 = vector.shape_cast %554 : vector<1x18x74xf32> to vector<18x74xf32>
    %cst_271 = arith.constant 0.000000e+00 : f32
    %556 = vector.broadcast %cst_271 : f32 to vector<16x72xf32>
    %557 = vector.extract_strided_slice %553 {offsets = [0, 0], sizes = [16, 72], strides = [1, 1]} : vector<18x74xf32> to vector<16x72xf32>
    %c0_272 = arith.constant 0 : index
    %c0_273 = arith.constant 0 : index
    %558 = vector.load %arg8[%c0_272, %c0_273] : memref<18x72xf32, #tpu.memory_space<vmem>>, vector<1x72xf32>
    %559 = vector.broadcast %558 : vector<1x72xf32> to vector<16x72xf32>
    %560 = arith.mulf %559, %557 : vector<16x72xf32>
    %561 = arith.addf %556, %560 : vector<16x72xf32>
    %562 = vector.extract_strided_slice %555 {offsets = [0, 0], sizes = [16, 72], strides = [1, 1]} : vector<18x74xf32> to vector<16x72xf32>
    %c1_274 = arith.constant 1 : index
    %c0_275 = arith.constant 0 : index
    %563 = vector.load %arg8[%c1_274, %c0_275] : memref<18x72xf32, #tpu.memory_space<vmem>>, vector<1x72xf32>
    %564 = vector.broadcast %563 : vector<1x72xf32> to vector<16x72xf32>
    %565 = arith.mulf %564, %562 : vector<16x72xf32>
    %566 = arith.addf %561, %565 : vector<16x72xf32>
    %567 = vector.extract_strided_slice %553 {offsets = [0, 1], sizes = [16, 72], strides = [1, 1]} : vector<18x74xf32> to vector<16x72xf32>
    %c2_276 = arith.constant 2 : index
    %c0_277 = arith.constant 0 : index
    %568 = vector.load %arg8[%c2_276, %c0_277] : memref<18x72xf32, #tpu.memory_space<vmem>>, vector<1x72xf32>
    %569 = vector.broadcast %568 : vector<1x72xf32> to vector<16x72xf32>
    %570 = arith.mulf %569, %567 : vector<16x72xf32>
    %571 = arith.addf %566, %570 : vector<16x72xf32>
    %572 = vector.extract_strided_slice %555 {offsets = [0, 1], sizes = [16, 72], strides = [1, 1]} : vector<18x74xf32> to vector<16x72xf32>
    %c3_278 = arith.constant 3 : index
    %c0_279 = arith.constant 0 : index
    %573 = vector.load %arg8[%c3_278, %c0_279] : memref<18x72xf32, #tpu.memory_space<vmem>>, vector<1x72xf32>
    %574 = vector.broadcast %573 : vector<1x72xf32> to vector<16x72xf32>
    %575 = arith.mulf %574, %572 : vector<16x72xf32>
    %576 = arith.addf %571, %575 : vector<16x72xf32>
    %577 = vector.extract_strided_slice %553 {offsets = [0, 2], sizes = [16, 72], strides = [1, 1]} : vector<18x74xf32> to vector<16x72xf32>
    %c4_280 = arith.constant 4 : index
    %c0_281 = arith.constant 0 : index
    %578 = vector.load %arg8[%c4_280, %c0_281] : memref<18x72xf32, #tpu.memory_space<vmem>>, vector<1x72xf32>
    %579 = vector.broadcast %578 : vector<1x72xf32> to vector<16x72xf32>
    %580 = arith.mulf %579, %577 : vector<16x72xf32>
    %581 = arith.addf %576, %580 : vector<16x72xf32>
    %582 = vector.extract_strided_slice %555 {offsets = [0, 2], sizes = [16, 72], strides = [1, 1]} : vector<18x74xf32> to vector<16x72xf32>
    %c5_282 = arith.constant 5 : index
    %c0_283 = arith.constant 0 : index
    %583 = vector.load %arg8[%c5_282, %c0_283] : memref<18x72xf32, #tpu.memory_space<vmem>>, vector<1x72xf32>
    %584 = vector.broadcast %583 : vector<1x72xf32> to vector<16x72xf32>
    %585 = arith.mulf %584, %582 : vector<16x72xf32>
    %586 = arith.addf %581, %585 : vector<16x72xf32>
    %587 = vector.extract_strided_slice %553 {offsets = [1, 0], sizes = [16, 72], strides = [1, 1]} : vector<18x74xf32> to vector<16x72xf32>
    %c6_284 = arith.constant 6 : index
    %c0_285 = arith.constant 0 : index
    %588 = vector.load %arg8[%c6_284, %c0_285] : memref<18x72xf32, #tpu.memory_space<vmem>>, vector<1x72xf32>
    %589 = vector.broadcast %588 : vector<1x72xf32> to vector<16x72xf32>
    %590 = arith.mulf %589, %587 : vector<16x72xf32>
    %591 = arith.addf %586, %590 : vector<16x72xf32>
    %592 = vector.extract_strided_slice %555 {offsets = [1, 0], sizes = [16, 72], strides = [1, 1]} : vector<18x74xf32> to vector<16x72xf32>
    %c7_286 = arith.constant 7 : index
    %c0_287 = arith.constant 0 : index
    %593 = vector.load %arg8[%c7_286, %c0_287] : memref<18x72xf32, #tpu.memory_space<vmem>>, vector<1x72xf32>
    %594 = vector.broadcast %593 : vector<1x72xf32> to vector<16x72xf32>
    %595 = arith.mulf %594, %592 : vector<16x72xf32>
    %596 = arith.addf %591, %595 : vector<16x72xf32>
    %597 = vector.extract_strided_slice %553 {offsets = [1, 1], sizes = [16, 72], strides = [1, 1]} : vector<18x74xf32> to vector<16x72xf32>
    %c8_288 = arith.constant 8 : index
    %c0_289 = arith.constant 0 : index
    %598 = vector.load %arg8[%c8_288, %c0_289] : memref<18x72xf32, #tpu.memory_space<vmem>>, vector<1x72xf32>
    %599 = vector.broadcast %598 : vector<1x72xf32> to vector<16x72xf32>
    %600 = arith.mulf %599, %597 : vector<16x72xf32>
    %601 = arith.addf %596, %600 : vector<16x72xf32>
    %602 = vector.extract_strided_slice %555 {offsets = [1, 1], sizes = [16, 72], strides = [1, 1]} : vector<18x74xf32> to vector<16x72xf32>
    %c9_290 = arith.constant 9 : index
    %c0_291 = arith.constant 0 : index
    %603 = vector.load %arg8[%c9_290, %c0_291] : memref<18x72xf32, #tpu.memory_space<vmem>>, vector<1x72xf32>
    %604 = vector.broadcast %603 : vector<1x72xf32> to vector<16x72xf32>
    %605 = arith.mulf %604, %602 : vector<16x72xf32>
    %606 = arith.addf %601, %605 : vector<16x72xf32>
    %607 = vector.extract_strided_slice %553 {offsets = [1, 2], sizes = [16, 72], strides = [1, 1]} : vector<18x74xf32> to vector<16x72xf32>
    %c10_292 = arith.constant 10 : index
    %c0_293 = arith.constant 0 : index
    %608 = vector.load %arg8[%c10_292, %c0_293] : memref<18x72xf32, #tpu.memory_space<vmem>>, vector<1x72xf32>
    %609 = vector.broadcast %608 : vector<1x72xf32> to vector<16x72xf32>
    %610 = arith.mulf %609, %607 : vector<16x72xf32>
    %611 = arith.addf %606, %610 : vector<16x72xf32>
    %612 = vector.extract_strided_slice %555 {offsets = [1, 2], sizes = [16, 72], strides = [1, 1]} : vector<18x74xf32> to vector<16x72xf32>
    %c11_294 = arith.constant 11 : index
    %c0_295 = arith.constant 0 : index
    %613 = vector.load %arg8[%c11_294, %c0_295] : memref<18x72xf32, #tpu.memory_space<vmem>>, vector<1x72xf32>
    %614 = vector.broadcast %613 : vector<1x72xf32> to vector<16x72xf32>
    %615 = arith.mulf %614, %612 : vector<16x72xf32>
    %616 = arith.addf %611, %615 : vector<16x72xf32>
    %617 = vector.extract_strided_slice %553 {offsets = [2, 0], sizes = [16, 72], strides = [1, 1]} : vector<18x74xf32> to vector<16x72xf32>
    %c12_296 = arith.constant 12 : index
    %c0_297 = arith.constant 0 : index
    %618 = vector.load %arg8[%c12_296, %c0_297] : memref<18x72xf32, #tpu.memory_space<vmem>>, vector<1x72xf32>
    %619 = vector.broadcast %618 : vector<1x72xf32> to vector<16x72xf32>
    %620 = arith.mulf %619, %617 : vector<16x72xf32>
    %621 = arith.addf %616, %620 : vector<16x72xf32>
    %622 = vector.extract_strided_slice %555 {offsets = [2, 0], sizes = [16, 72], strides = [1, 1]} : vector<18x74xf32> to vector<16x72xf32>
    %c13_298 = arith.constant 13 : index
    %c0_299 = arith.constant 0 : index
    %623 = vector.load %arg8[%c13_298, %c0_299] : memref<18x72xf32, #tpu.memory_space<vmem>>, vector<1x72xf32>
    %624 = vector.broadcast %623 : vector<1x72xf32> to vector<16x72xf32>
    %625 = arith.mulf %624, %622 : vector<16x72xf32>
    %626 = arith.addf %621, %625 : vector<16x72xf32>
    %627 = vector.extract_strided_slice %553 {offsets = [2, 1], sizes = [16, 72], strides = [1, 1]} : vector<18x74xf32> to vector<16x72xf32>
    %c14_300 = arith.constant 14 : index
    %c0_301 = arith.constant 0 : index
    %628 = vector.load %arg8[%c14_300, %c0_301] : memref<18x72xf32, #tpu.memory_space<vmem>>, vector<1x72xf32>
    %629 = vector.broadcast %628 : vector<1x72xf32> to vector<16x72xf32>
    %630 = arith.mulf %629, %627 : vector<16x72xf32>
    %631 = arith.addf %626, %630 : vector<16x72xf32>
    %632 = vector.extract_strided_slice %555 {offsets = [2, 1], sizes = [16, 72], strides = [1, 1]} : vector<18x74xf32> to vector<16x72xf32>
    %c15_302 = arith.constant 15 : index
    %c0_303 = arith.constant 0 : index
    %633 = vector.load %arg8[%c15_302, %c0_303] : memref<18x72xf32, #tpu.memory_space<vmem>>, vector<1x72xf32>
    %634 = vector.broadcast %633 : vector<1x72xf32> to vector<16x72xf32>
    %635 = arith.mulf %634, %632 : vector<16x72xf32>
    %636 = arith.addf %631, %635 : vector<16x72xf32>
    %637 = vector.extract_strided_slice %553 {offsets = [2, 2], sizes = [16, 72], strides = [1, 1]} : vector<18x74xf32> to vector<16x72xf32>
    %c16_304 = arith.constant 16 : index
    %c0_305 = arith.constant 0 : index
    %638 = vector.load %arg8[%c16_304, %c0_305] : memref<18x72xf32, #tpu.memory_space<vmem>>, vector<1x72xf32>
    %639 = vector.broadcast %638 : vector<1x72xf32> to vector<16x72xf32>
    %640 = arith.mulf %639, %637 : vector<16x72xf32>
    %641 = arith.addf %636, %640 : vector<16x72xf32>
    %642 = vector.extract_strided_slice %555 {offsets = [2, 2], sizes = [16, 72], strides = [1, 1]} : vector<18x74xf32> to vector<16x72xf32>
    %c17_306 = arith.constant 17 : index
    %c0_307 = arith.constant 0 : index
    %643 = vector.load %arg8[%c17_306, %c0_307] : memref<18x72xf32, #tpu.memory_space<vmem>>, vector<1x72xf32>
    %644 = vector.broadcast %643 : vector<1x72xf32> to vector<16x72xf32>
    %645 = arith.mulf %644, %642 : vector<16x72xf32>
    %646 = arith.addf %641, %645 : vector<16x72xf32>
    %c0_308 = arith.constant 0 : index
    %c0_309 = arith.constant 0 : index
    %647 = vector.load %arg9[%c0_308, %c0_309] : memref<1x72xf32, #tpu.memory_space<vmem>>, vector<1x72xf32>
    %648 = vector.broadcast %647 : vector<1x72xf32> to vector<16x72xf32>
    %649 = arith.addf %646, %648 : vector<16x72xf32>
    %cst_310 = arith.constant 2.000000e-01 : f32
    %650 = vector.broadcast %cst_310 : f32 to vector<16x72xf32>
    %651 = arith.mulf %650, %649 : vector<16x72xf32>
    %652 = arith.maximumf %649, %651 : vector<16x72xf32>
    %653 = vector.extract_strided_slice %652 {offsets = [0, 0], sizes = [16, 16], strides = [1, 1]} : vector<16x72xf32> to vector<16x16xf32>
    %654 = vector.extract_strided_slice %652 {offsets = [0, 18], sizes = [16, 16], strides = [1, 1]} : vector<16x72xf32> to vector<16x16xf32>
    %655 = vector.extract_strided_slice %652 {offsets = [0, 36], sizes = [16, 16], strides = [1, 1]} : vector<16x72xf32> to vector<16x16xf32>
    %656 = vector.extract_strided_slice %652 {offsets = [0, 54], sizes = [16, 16], strides = [1, 1]} : vector<16x72xf32> to vector<16x16xf32>
    %c0_311 = arith.constant 0 : index
    %c1_312 = arith.constant 1 : index
    %c1_313 = arith.constant 1 : index
    %657 = vector.load %arg15[%c0_311, %c1_312, %c1_313] : memref<4x18x74xf32, #tpu.memory_space<vmem>>, vector<1x16x16xf32>
    %658 = vector.shape_cast %657 : vector<1x16x16xf32> to vector<16x16xf32>
    %659 = vector.shape_cast %653 : vector<16x16xf32> to vector<1x16x16xf32>
    tpu.vector_store %arg15[%c0_311, %c1_312, %c1_313], %659 {strides = array<i32>} : memref<4x18x74xf32, #tpu.memory_space<vmem>>, vector<1x16x16xf32>,
    %c0_314 = arith.constant 0 : index
    %c1_315 = arith.constant 1 : index
    %c19_316 = arith.constant 19 : index
    %660 = vector.load %arg15[%c0_314, %c1_315, %c19_316] : memref<4x18x74xf32, #tpu.memory_space<vmem>>, vector<1x16x16xf32>
    %661 = vector.shape_cast %660 : vector<1x16x16xf32> to vector<16x16xf32>
    %662 = vector.shape_cast %653 : vector<16x16xf32> to vector<1x16x16xf32>
    tpu.vector_store %arg15[%c0_314, %c1_315, %c19_316], %662 {strides = array<i32>} : memref<4x18x74xf32, #tpu.memory_space<vmem>>, vector<1x16x16xf32>,
    %c0_317 = arith.constant 0 : index
    %c1_318 = arith.constant 1 : index
    %c37_319 = arith.constant 37 : index
    %663 = vector.load %arg15[%c0_317, %c1_318, %c37_319] : memref<4x18x74xf32, #tpu.memory_space<vmem>>, vector<1x16x16xf32>
    %664 = vector.shape_cast %663 : vector<1x16x16xf32> to vector<16x16xf32>
    %665 = vector.shape_cast %653 : vector<16x16xf32> to vector<1x16x16xf32>
    tpu.vector_store %arg15[%c0_317, %c1_318, %c37_319], %665 {strides = array<i32>} : memref<4x18x74xf32, #tpu.memory_space<vmem>>, vector<1x16x16xf32>,
    %c0_320 = arith.constant 0 : index
    %c1_321 = arith.constant 1 : index
    %c55_322 = arith.constant 55 : index
    %666 = vector.load %arg15[%c0_320, %c1_321, %c55_322] : memref<4x18x74xf32, #tpu.memory_space<vmem>>, vector<1x16x16xf32>
    %667 = vector.shape_cast %666 : vector<1x16x16xf32> to vector<16x16xf32>
    %668 = vector.shape_cast %653 : vector<16x16xf32> to vector<1x16x16xf32>
    tpu.vector_store %arg15[%c0_320, %c1_321, %c55_322], %668 {strides = array<i32>} : memref<4x18x74xf32, #tpu.memory_space<vmem>>, vector<1x16x16xf32>,
    %c1_323 = arith.constant 1 : index
    %c1_324 = arith.constant 1 : index
    %c1_325 = arith.constant 1 : index
    %669 = vector.load %arg15[%c1_323, %c1_324, %c1_325] : memref<4x18x74xf32, #tpu.memory_space<vmem>>, vector<1x16x16xf32>
    %670 = vector.shape_cast %669 : vector<1x16x16xf32> to vector<16x16xf32>
    %671 = vector.shape_cast %654 : vector<16x16xf32> to vector<1x16x16xf32>
    tpu.vector_store %arg15[%c1_323, %c1_324, %c1_325], %671 {strides = array<i32>} : memref<4x18x74xf32, #tpu.memory_space<vmem>>, vector<1x16x16xf32>,
    %c1_326 = arith.constant 1 : index
    %c1_327 = arith.constant 1 : index
    %c19_328 = arith.constant 19 : index
    %672 = vector.load %arg15[%c1_326, %c1_327, %c19_328] : memref<4x18x74xf32, #tpu.memory_space<vmem>>, vector<1x16x16xf32>
    %673 = vector.shape_cast %672 : vector<1x16x16xf32> to vector<16x16xf32>
    %674 = vector.shape_cast %654 : vector<16x16xf32> to vector<1x16x16xf32>
    tpu.vector_store %arg15[%c1_326, %c1_327, %c19_328], %674 {strides = array<i32>} : memref<4x18x74xf32, #tpu.memory_space<vmem>>, vector<1x16x16xf32>,
    %c1_329 = arith.constant 1 : index
    %c1_330 = arith.constant 1 : index
    %c37_331 = arith.constant 37 : index
    %675 = vector.load %arg15[%c1_329, %c1_330, %c37_331] : memref<4x18x74xf32, #tpu.memory_space<vmem>>, vector<1x16x16xf32>
    %676 = vector.shape_cast %675 : vector<1x16x16xf32> to vector<16x16xf32>
    %677 = vector.shape_cast %654 : vector<16x16xf32> to vector<1x16x16xf32>
    tpu.vector_store %arg15[%c1_329, %c1_330, %c37_331], %677 {strides = array<i32>} : memref<4x18x74xf32, #tpu.memory_space<vmem>>, vector<1x16x16xf32>,
    %c1_332 = arith.constant 1 : index
    %c1_333 = arith.constant 1 : index
    %c55_334 = arith.constant 55 : index
    %678 = vector.load %arg15[%c1_332, %c1_333, %c55_334] : memref<4x18x74xf32, #tpu.memory_space<vmem>>, vector<1x16x16xf32>
    %679 = vector.shape_cast %678 : vector<1x16x16xf32> to vector<16x16xf32>
    %680 = vector.shape_cast %654 : vector<16x16xf32> to vector<1x16x16xf32>
    tpu.vector_store %arg15[%c1_332, %c1_333, %c55_334], %680 {strides = array<i32>} : memref<4x18x74xf32, #tpu.memory_space<vmem>>, vector<1x16x16xf32>,
    %c2_335 = arith.constant 2 : index
    %c1_336 = arith.constant 1 : index
    %c1_337 = arith.constant 1 : index
    %681 = vector.load %arg15[%c2_335, %c1_336, %c1_337] : memref<4x18x74xf32, #tpu.memory_space<vmem>>, vector<1x16x16xf32>
    %682 = vector.shape_cast %681 : vector<1x16x16xf32> to vector<16x16xf32>
    %683 = vector.shape_cast %655 : vector<16x16xf32> to vector<1x16x16xf32>
    tpu.vector_store %arg15[%c2_335, %c1_336, %c1_337], %683 {strides = array<i32>} : memref<4x18x74xf32, #tpu.memory_space<vmem>>, vector<1x16x16xf32>,
    %c2_338 = arith.constant 2 : index
    %c1_339 = arith.constant 1 : index
    %c19_340 = arith.constant 19 : index
    %684 = vector.load %arg15[%c2_338, %c1_339, %c19_340] : memref<4x18x74xf32, #tpu.memory_space<vmem>>, vector<1x16x16xf32>
    %685 = vector.shape_cast %684 : vector<1x16x16xf32> to vector<16x16xf32>
    %686 = vector.shape_cast %655 : vector<16x16xf32> to vector<1x16x16xf32>
    tpu.vector_store %arg15[%c2_338, %c1_339, %c19_340], %686 {strides = array<i32>} : memref<4x18x74xf32, #tpu.memory_space<vmem>>, vector<1x16x16xf32>,
    %c2_341 = arith.constant 2 : index
    %c1_342 = arith.constant 1 : index
    %c37_343 = arith.constant 37 : index
    %687 = vector.load %arg15[%c2_341, %c1_342, %c37_343] : memref<4x18x74xf32, #tpu.memory_space<vmem>>, vector<1x16x16xf32>
    %688 = vector.shape_cast %687 : vector<1x16x16xf32> to vector<16x16xf32>
    %689 = vector.shape_cast %655 : vector<16x16xf32> to vector<1x16x16xf32>
    tpu.vector_store %arg15[%c2_341, %c1_342, %c37_343], %689 {strides = array<i32>} : memref<4x18x74xf32, #tpu.memory_space<vmem>>, vector<1x16x16xf32>,
    %c2_344 = arith.constant 2 : index
    %c1_345 = arith.constant 1 : index
    %c55_346 = arith.constant 55 : index
    %690 = vector.load %arg15[%c2_344, %c1_345, %c55_346] : memref<4x18x74xf32, #tpu.memory_space<vmem>>, vector<1x16x16xf32>
    %691 = vector.shape_cast %690 : vector<1x16x16xf32> to vector<16x16xf32>
    %692 = vector.shape_cast %655 : vector<16x16xf32> to vector<1x16x16xf32>
    tpu.vector_store %arg15[%c2_344, %c1_345, %c55_346], %692 {strides = array<i32>} : memref<4x18x74xf32, #tpu.memory_space<vmem>>, vector<1x16x16xf32>,
    %c3_347 = arith.constant 3 : index
    %c1_348 = arith.constant 1 : index
    %c1_349 = arith.constant 1 : index
    %693 = vector.load %arg15[%c3_347, %c1_348, %c1_349] : memref<4x18x74xf32, #tpu.memory_space<vmem>>, vector<1x16x16xf32>
    %694 = vector.shape_cast %693 : vector<1x16x16xf32> to vector<16x16xf32>
    %695 = vector.shape_cast %656 : vector<16x16xf32> to vector<1x16x16xf32>
    tpu.vector_store %arg15[%c3_347, %c1_348, %c1_349], %695 {strides = array<i32>} : memref<4x18x74xf32, #tpu.memory_space<vmem>>, vector<1x16x16xf32>,
    %c3_350 = arith.constant 3 : index
    %c1_351 = arith.constant 1 : index
    %c19_352 = arith.constant 19 : index
    %696 = vector.load %arg15[%c3_350, %c1_351, %c19_352] : memref<4x18x74xf32, #tpu.memory_space<vmem>>, vector<1x16x16xf32>
    %697 = vector.shape_cast %696 : vector<1x16x16xf32> to vector<16x16xf32>
    %698 = vector.shape_cast %656 : vector<16x16xf32> to vector<1x16x16xf32>
    tpu.vector_store %arg15[%c3_350, %c1_351, %c19_352], %698 {strides = array<i32>} : memref<4x18x74xf32, #tpu.memory_space<vmem>>, vector<1x16x16xf32>,
    %c3_353 = arith.constant 3 : index
    %c1_354 = arith.constant 1 : index
    %c37_355 = arith.constant 37 : index
    %699 = vector.load %arg15[%c3_353, %c1_354, %c37_355] : memref<4x18x74xf32, #tpu.memory_space<vmem>>, vector<1x16x16xf32>
    %700 = vector.shape_cast %699 : vector<1x16x16xf32> to vector<16x16xf32>
    %701 = vector.shape_cast %656 : vector<16x16xf32> to vector<1x16x16xf32>
    tpu.vector_store %arg15[%c3_353, %c1_354, %c37_355], %701 {strides = array<i32>} : memref<4x18x74xf32, #tpu.memory_space<vmem>>, vector<1x16x16xf32>,
    %c3_356 = arith.constant 3 : index
    %c1_357 = arith.constant 1 : index
    %c55_358 = arith.constant 55 : index
    %702 = vector.load %arg15[%c3_356, %c1_357, %c55_358] : memref<4x18x74xf32, #tpu.memory_space<vmem>>, vector<1x16x16xf32>
    %703 = vector.shape_cast %702 : vector<1x16x16xf32> to vector<16x16xf32>
    %704 = vector.shape_cast %656 : vector<16x16xf32> to vector<1x16x16xf32>
    tpu.vector_store %arg15[%c3_356, %c1_357, %c55_358], %704 {strides = array<i32>} : memref<4x18x74xf32, #tpu.memory_space<vmem>>, vector<1x16x16xf32>,
    %c0_359 = arith.constant 0 : index
    %c0_360 = arith.constant 0 : index
    %c0_361 = arith.constant 0 : index
    %705 = vector.load %arg15[%c0_359, %c0_360, %c0_361] : memref<4x18x74xf32, #tpu.memory_space<vmem>>, vector<1x18x74xf32>
    %706 = vector.shape_cast %705 : vector<1x18x74xf32> to vector<18x74xf32>
    %c1_362 = arith.constant 1 : index
    %c0_363 = arith.constant 0 : index
    %c0_364 = arith.constant 0 : index
    %707 = vector.load %arg15[%c1_362, %c0_363, %c0_364] : memref<4x18x74xf32, #tpu.memory_space<vmem>>, vector<1x18x74xf32>
    %708 = vector.shape_cast %707 : vector<1x18x74xf32> to vector<18x74xf32>
    %c2_365 = arith.constant 2 : index
    %c0_366 = arith.constant 0 : index
    %c0_367 = arith.constant 0 : index
    %709 = vector.load %arg15[%c2_365, %c0_366, %c0_367] : memref<4x18x74xf32, #tpu.memory_space<vmem>>, vector<1x18x74xf32>
    %710 = vector.shape_cast %709 : vector<1x18x74xf32> to vector<18x74xf32>
    %c3_368 = arith.constant 3 : index
    %c0_369 = arith.constant 0 : index
    %c0_370 = arith.constant 0 : index
    %711 = vector.load %arg15[%c3_368, %c0_369, %c0_370] : memref<4x18x74xf32, #tpu.memory_space<vmem>>, vector<1x18x74xf32>
    %712 = vector.shape_cast %711 : vector<1x18x74xf32> to vector<18x74xf32>
    %cst_371 = arith.constant 0.000000e+00 : f32
    %713 = vector.broadcast %cst_371 : f32 to vector<16x72xf32>
    %714 = vector.extract_strided_slice %706 {offsets = [0, 0], sizes = [16, 72], strides = [1, 1]} : vector<18x74xf32> to vector<16x72xf32>
    %c0_372 = arith.constant 0 : index
    %c0_373 = arith.constant 0 : index
    %715 = vector.load %arg10[%c0_372, %c0_373] : memref<36x72xf32, #tpu.memory_space<vmem>>, vector<1x72xf32>
    %716 = vector.broadcast %715 : vector<1x72xf32> to vector<16x72xf32>
    %717 = arith.mulf %716, %714 : vector<16x72xf32>
    %718 = arith.addf %713, %717 : vector<16x72xf32>
    %719 = vector.extract_strided_slice %708 {offsets = [0, 0], sizes = [16, 72], strides = [1, 1]} : vector<18x74xf32> to vector<16x72xf32>
    %c1_374 = arith.constant 1 : index
    %c0_375 = arith.constant 0 : index
    %720 = vector.load %arg10[%c1_374, %c0_375] : memref<36x72xf32, #tpu.memory_space<vmem>>, vector<1x72xf32>
    %721 = vector.broadcast %720 : vector<1x72xf32> to vector<16x72xf32>
    %722 = arith.mulf %721, %719 : vector<16x72xf32>
    %723 = arith.addf %718, %722 : vector<16x72xf32>
    %724 = vector.extract_strided_slice %710 {offsets = [0, 0], sizes = [16, 72], strides = [1, 1]} : vector<18x74xf32> to vector<16x72xf32>
    %c2_376 = arith.constant 2 : index
    %c0_377 = arith.constant 0 : index
    %725 = vector.load %arg10[%c2_376, %c0_377] : memref<36x72xf32, #tpu.memory_space<vmem>>, vector<1x72xf32>
    %726 = vector.broadcast %725 : vector<1x72xf32> to vector<16x72xf32>
    %727 = arith.mulf %726, %724 : vector<16x72xf32>
    %728 = arith.addf %723, %727 : vector<16x72xf32>
    %729 = vector.extract_strided_slice %712 {offsets = [0, 0], sizes = [16, 72], strides = [1, 1]} : vector<18x74xf32> to vector<16x72xf32>
    %c3_378 = arith.constant 3 : index
    %c0_379 = arith.constant 0 : index
    %730 = vector.load %arg10[%c3_378, %c0_379] : memref<36x72xf32, #tpu.memory_space<vmem>>, vector<1x72xf32>
    %731 = vector.broadcast %730 : vector<1x72xf32> to vector<16x72xf32>
    %732 = arith.mulf %731, %729 : vector<16x72xf32>
    %733 = arith.addf %728, %732 : vector<16x72xf32>
    %734 = vector.extract_strided_slice %706 {offsets = [0, 1], sizes = [16, 72], strides = [1, 1]} : vector<18x74xf32> to vector<16x72xf32>
    %c4_380 = arith.constant 4 : index
    %c0_381 = arith.constant 0 : index
    %735 = vector.load %arg10[%c4_380, %c0_381] : memref<36x72xf32, #tpu.memory_space<vmem>>, vector<1x72xf32>
    %736 = vector.broadcast %735 : vector<1x72xf32> to vector<16x72xf32>
    %737 = arith.mulf %736, %734 : vector<16x72xf32>
    %738 = arith.addf %733, %737 : vector<16x72xf32>
    %739 = vector.extract_strided_slice %708 {offsets = [0, 1], sizes = [16, 72], strides = [1, 1]} : vector<18x74xf32> to vector<16x72xf32>
    %c5_382 = arith.constant 5 : index
    %c0_383 = arith.constant 0 : index
    %740 = vector.load %arg10[%c5_382, %c0_383] : memref<36x72xf32, #tpu.memory_space<vmem>>, vector<1x72xf32>
    %741 = vector.broadcast %740 : vector<1x72xf32> to vector<16x72xf32>
    %742 = arith.mulf %741, %739 : vector<16x72xf32>
    %743 = arith.addf %738, %742 : vector<16x72xf32>
    %744 = vector.extract_strided_slice %710 {offsets = [0, 1], sizes = [16, 72], strides = [1, 1]} : vector<18x74xf32> to vector<16x72xf32>
    %c6_384 = arith.constant 6 : index
    %c0_385 = arith.constant 0 : index
    %745 = vector.load %arg10[%c6_384, %c0_385] : memref<36x72xf32, #tpu.memory_space<vmem>>, vector<1x72xf32>
    %746 = vector.broadcast %745 : vector<1x72xf32> to vector<16x72xf32>
    %747 = arith.mulf %746, %744 : vector<16x72xf32>
    %748 = arith.addf %743, %747 : vector<16x72xf32>
    %749 = vector.extract_strided_slice %712 {offsets = [0, 1], sizes = [16, 72], strides = [1, 1]} : vector<18x74xf32> to vector<16x72xf32>
    %c7_386 = arith.constant 7 : index
    %c0_387 = arith.constant 0 : index
    %750 = vector.load %arg10[%c7_386, %c0_387] : memref<36x72xf32, #tpu.memory_space<vmem>>, vector<1x72xf32>
    %751 = vector.broadcast %750 : vector<1x72xf32> to vector<16x72xf32>
    %752 = arith.mulf %751, %749 : vector<16x72xf32>
    %753 = arith.addf %748, %752 : vector<16x72xf32>
    %754 = vector.extract_strided_slice %706 {offsets = [0, 2], sizes = [16, 72], strides = [1, 1]} : vector<18x74xf32> to vector<16x72xf32>
    %c8_388 = arith.constant 8 : index
    %c0_389 = arith.constant 0 : index
    %755 = vector.load %arg10[%c8_388, %c0_389] : memref<36x72xf32, #tpu.memory_space<vmem>>, vector<1x72xf32>
    %756 = vector.broadcast %755 : vector<1x72xf32> to vector<16x72xf32>
    %757 = arith.mulf %756, %754 : vector<16x72xf32>
    %758 = arith.addf %753, %757 : vector<16x72xf32>
    %759 = vector.extract_strided_slice %708 {offsets = [0, 2], sizes = [16, 72], strides = [1, 1]} : vector<18x74xf32> to vector<16x72xf32>
    %c9_390 = arith.constant 9 : index
    %c0_391 = arith.constant 0 : index
    %760 = vector.load %arg10[%c9_390, %c0_391] : memref<36x72xf32, #tpu.memory_space<vmem>>, vector<1x72xf32>
    %761 = vector.broadcast %760 : vector<1x72xf32> to vector<16x72xf32>
    %762 = arith.mulf %761, %759 : vector<16x72xf32>
    %763 = arith.addf %758, %762 : vector<16x72xf32>
    %764 = vector.extract_strided_slice %710 {offsets = [0, 2], sizes = [16, 72], strides = [1, 1]} : vector<18x74xf32> to vector<16x72xf32>
    %c10_392 = arith.constant 10 : index
    %c0_393 = arith.constant 0 : index
    %765 = vector.load %arg10[%c10_392, %c0_393] : memref<36x72xf32, #tpu.memory_space<vmem>>, vector<1x72xf32>
    %766 = vector.broadcast %765 : vector<1x72xf32> to vector<16x72xf32>
    %767 = arith.mulf %766, %764 : vector<16x72xf32>
    %768 = arith.addf %763, %767 : vector<16x72xf32>
    %769 = vector.extract_strided_slice %712 {offsets = [0, 2], sizes = [16, 72], strides = [1, 1]} : vector<18x74xf32> to vector<16x72xf32>
    %c11_394 = arith.constant 11 : index
    %c0_395 = arith.constant 0 : index
    %770 = vector.load %arg10[%c11_394, %c0_395] : memref<36x72xf32, #tpu.memory_space<vmem>>, vector<1x72xf32>
    %771 = vector.broadcast %770 : vector<1x72xf32> to vector<16x72xf32>
    %772 = arith.mulf %771, %769 : vector<16x72xf32>
    %773 = arith.addf %768, %772 : vector<16x72xf32>
    %774 = vector.extract_strided_slice %706 {offsets = [1, 0], sizes = [16, 72], strides = [1, 1]} : vector<18x74xf32> to vector<16x72xf32>
    %c12_396 = arith.constant 12 : index
    %c0_397 = arith.constant 0 : index
    %775 = vector.load %arg10[%c12_396, %c0_397] : memref<36x72xf32, #tpu.memory_space<vmem>>, vector<1x72xf32>
    %776 = vector.broadcast %775 : vector<1x72xf32> to vector<16x72xf32>
    %777 = arith.mulf %776, %774 : vector<16x72xf32>
    %778 = arith.addf %773, %777 : vector<16x72xf32>
    %779 = vector.extract_strided_slice %708 {offsets = [1, 0], sizes = [16, 72], strides = [1, 1]} : vector<18x74xf32> to vector<16x72xf32>
    %c13_398 = arith.constant 13 : index
    %c0_399 = arith.constant 0 : index
    %780 = vector.load %arg10[%c13_398, %c0_399] : memref<36x72xf32, #tpu.memory_space<vmem>>, vector<1x72xf32>
    %781 = vector.broadcast %780 : vector<1x72xf32> to vector<16x72xf32>
    %782 = arith.mulf %781, %779 : vector<16x72xf32>
    %783 = arith.addf %778, %782 : vector<16x72xf32>
    %784 = vector.extract_strided_slice %710 {offsets = [1, 0], sizes = [16, 72], strides = [1, 1]} : vector<18x74xf32> to vector<16x72xf32>
    %c14_400 = arith.constant 14 : index
    %c0_401 = arith.constant 0 : index
    %785 = vector.load %arg10[%c14_400, %c0_401] : memref<36x72xf32, #tpu.memory_space<vmem>>, vector<1x72xf32>
    %786 = vector.broadcast %785 : vector<1x72xf32> to vector<16x72xf32>
    %787 = arith.mulf %786, %784 : vector<16x72xf32>
    %788 = arith.addf %783, %787 : vector<16x72xf32>
    %789 = vector.extract_strided_slice %712 {offsets = [1, 0], sizes = [16, 72], strides = [1, 1]} : vector<18x74xf32> to vector<16x72xf32>
    %c15_402 = arith.constant 15 : index
    %c0_403 = arith.constant 0 : index
    %790 = vector.load %arg10[%c15_402, %c0_403] : memref<36x72xf32, #tpu.memory_space<vmem>>, vector<1x72xf32>
    %791 = vector.broadcast %790 : vector<1x72xf32> to vector<16x72xf32>
    %792 = arith.mulf %791, %789 : vector<16x72xf32>
    %793 = arith.addf %788, %792 : vector<16x72xf32>
    %794 = vector.extract_strided_slice %706 {offsets = [1, 1], sizes = [16, 72], strides = [1, 1]} : vector<18x74xf32> to vector<16x72xf32>
    %c16_404 = arith.constant 16 : index
    %c0_405 = arith.constant 0 : index
    %795 = vector.load %arg10[%c16_404, %c0_405] : memref<36x72xf32, #tpu.memory_space<vmem>>, vector<1x72xf32>
    %796 = vector.broadcast %795 : vector<1x72xf32> to vector<16x72xf32>
    %797 = arith.mulf %796, %794 : vector<16x72xf32>
    %798 = arith.addf %793, %797 : vector<16x72xf32>
    %799 = vector.extract_strided_slice %708 {offsets = [1, 1], sizes = [16, 72], strides = [1, 1]} : vector<18x74xf32> to vector<16x72xf32>
    %c17_406 = arith.constant 17 : index
    %c0_407 = arith.constant 0 : index
    %800 = vector.load %arg10[%c17_406, %c0_407] : memref<36x72xf32, #tpu.memory_space<vmem>>, vector<1x72xf32>
    %801 = vector.broadcast %800 : vector<1x72xf32> to vector<16x72xf32>
    %802 = arith.mulf %801, %799 : vector<16x72xf32>
    %803 = arith.addf %798, %802 : vector<16x72xf32>
    %804 = vector.extract_strided_slice %710 {offsets = [1, 1], sizes = [16, 72], strides = [1, 1]} : vector<18x74xf32> to vector<16x72xf32>
    %c18_408 = arith.constant 18 : index
    %c0_409 = arith.constant 0 : index
    %805 = vector.load %arg10[%c18_408, %c0_409] : memref<36x72xf32, #tpu.memory_space<vmem>>, vector<1x72xf32>
    %806 = vector.broadcast %805 : vector<1x72xf32> to vector<16x72xf32>
    %807 = arith.mulf %806, %804 : vector<16x72xf32>
    %808 = arith.addf %803, %807 : vector<16x72xf32>
    %809 = vector.extract_strided_slice %712 {offsets = [1, 1], sizes = [16, 72], strides = [1, 1]} : vector<18x74xf32> to vector<16x72xf32>
    %c19_410 = arith.constant 19 : index
    %c0_411 = arith.constant 0 : index
    %810 = vector.load %arg10[%c19_410, %c0_411] : memref<36x72xf32, #tpu.memory_space<vmem>>, vector<1x72xf32>
    %811 = vector.broadcast %810 : vector<1x72xf32> to vector<16x72xf32>
    %812 = arith.mulf %811, %809 : vector<16x72xf32>
    %813 = arith.addf %808, %812 : vector<16x72xf32>
    %814 = vector.extract_strided_slice %706 {offsets = [1, 2], sizes = [16, 72], strides = [1, 1]} : vector<18x74xf32> to vector<16x72xf32>
    %c20_412 = arith.constant 20 : index
    %c0_413 = arith.constant 0 : index
    %815 = vector.load %arg10[%c20_412, %c0_413] : memref<36x72xf32, #tpu.memory_space<vmem>>, vector<1x72xf32>
    %816 = vector.broadcast %815 : vector<1x72xf32> to vector<16x72xf32>
    %817 = arith.mulf %816, %814 : vector<16x72xf32>
    %818 = arith.addf %813, %817 : vector<16x72xf32>
    %819 = vector.extract_strided_slice %708 {offsets = [1, 2], sizes = [16, 72], strides = [1, 1]} : vector<18x74xf32> to vector<16x72xf32>
    %c21_414 = arith.constant 21 : index
    %c0_415 = arith.constant 0 : index
    %820 = vector.load %arg10[%c21_414, %c0_415] : memref<36x72xf32, #tpu.memory_space<vmem>>, vector<1x72xf32>
    %821 = vector.broadcast %820 : vector<1x72xf32> to vector<16x72xf32>
    %822 = arith.mulf %821, %819 : vector<16x72xf32>
    %823 = arith.addf %818, %822 : vector<16x72xf32>
    %824 = vector.extract_strided_slice %710 {offsets = [1, 2], sizes = [16, 72], strides = [1, 1]} : vector<18x74xf32> to vector<16x72xf32>
    %c22_416 = arith.constant 22 : index
    %c0_417 = arith.constant 0 : index
    %825 = vector.load %arg10[%c22_416, %c0_417] : memref<36x72xf32, #tpu.memory_space<vmem>>, vector<1x72xf32>
    %826 = vector.broadcast %825 : vector<1x72xf32> to vector<16x72xf32>
    %827 = arith.mulf %826, %824 : vector<16x72xf32>
    %828 = arith.addf %823, %827 : vector<16x72xf32>
    %829 = vector.extract_strided_slice %712 {offsets = [1, 2], sizes = [16, 72], strides = [1, 1]} : vector<18x74xf32> to vector<16x72xf32>
    %c23_418 = arith.constant 23 : index
    %c0_419 = arith.constant 0 : index
    %830 = vector.load %arg10[%c23_418, %c0_419] : memref<36x72xf32, #tpu.memory_space<vmem>>, vector<1x72xf32>
    %831 = vector.broadcast %830 : vector<1x72xf32> to vector<16x72xf32>
    %832 = arith.mulf %831, %829 : vector<16x72xf32>
    %833 = arith.addf %828, %832 : vector<16x72xf32>
    %834 = vector.extract_strided_slice %706 {offsets = [2, 0], sizes = [16, 72], strides = [1, 1]} : vector<18x74xf32> to vector<16x72xf32>
    %c24_420 = arith.constant 24 : index
    %c0_421 = arith.constant 0 : index
    %835 = vector.load %arg10[%c24_420, %c0_421] : memref<36x72xf32, #tpu.memory_space<vmem>>, vector<1x72xf32>
    %836 = vector.broadcast %835 : vector<1x72xf32> to vector<16x72xf32>
    %837 = arith.mulf %836, %834 : vector<16x72xf32>
    %838 = arith.addf %833, %837 : vector<16x72xf32>
    %839 = vector.extract_strided_slice %708 {offsets = [2, 0], sizes = [16, 72], strides = [1, 1]} : vector<18x74xf32> to vector<16x72xf32>
    %c25_422 = arith.constant 25 : index
    %c0_423 = arith.constant 0 : index
    %840 = vector.load %arg10[%c25_422, %c0_423] : memref<36x72xf32, #tpu.memory_space<vmem>>, vector<1x72xf32>
    %841 = vector.broadcast %840 : vector<1x72xf32> to vector<16x72xf32>
    %842 = arith.mulf %841, %839 : vector<16x72xf32>
    %843 = arith.addf %838, %842 : vector<16x72xf32>
    %844 = vector.extract_strided_slice %710 {offsets = [2, 0], sizes = [16, 72], strides = [1, 1]} : vector<18x74xf32> to vector<16x72xf32>
    %c26_424 = arith.constant 26 : index
    %c0_425 = arith.constant 0 : index
    %845 = vector.load %arg10[%c26_424, %c0_425] : memref<36x72xf32, #tpu.memory_space<vmem>>, vector<1x72xf32>
    %846 = vector.broadcast %845 : vector<1x72xf32> to vector<16x72xf32>
    %847 = arith.mulf %846, %844 : vector<16x72xf32>
    %848 = arith.addf %843, %847 : vector<16x72xf32>
    %849 = vector.extract_strided_slice %712 {offsets = [2, 0], sizes = [16, 72], strides = [1, 1]} : vector<18x74xf32> to vector<16x72xf32>
    %c27_426 = arith.constant 27 : index
    %c0_427 = arith.constant 0 : index
    %850 = vector.load %arg10[%c27_426, %c0_427] : memref<36x72xf32, #tpu.memory_space<vmem>>, vector<1x72xf32>
    %851 = vector.broadcast %850 : vector<1x72xf32> to vector<16x72xf32>
    %852 = arith.mulf %851, %849 : vector<16x72xf32>
    %853 = arith.addf %848, %852 : vector<16x72xf32>
    %854 = vector.extract_strided_slice %706 {offsets = [2, 1], sizes = [16, 72], strides = [1, 1]} : vector<18x74xf32> to vector<16x72xf32>
    %c28_428 = arith.constant 28 : index
    %c0_429 = arith.constant 0 : index
    %855 = vector.load %arg10[%c28_428, %c0_429] : memref<36x72xf32, #tpu.memory_space<vmem>>, vector<1x72xf32>
    %856 = vector.broadcast %855 : vector<1x72xf32> to vector<16x72xf32>
    %857 = arith.mulf %856, %854 : vector<16x72xf32>
    %858 = arith.addf %853, %857 : vector<16x72xf32>
    %859 = vector.extract_strided_slice %708 {offsets = [2, 1], sizes = [16, 72], strides = [1, 1]} : vector<18x74xf32> to vector<16x72xf32>
    %c29_430 = arith.constant 29 : index
    %c0_431 = arith.constant 0 : index
    %860 = vector.load %arg10[%c29_430, %c0_431] : memref<36x72xf32, #tpu.memory_space<vmem>>, vector<1x72xf32>
    %861 = vector.broadcast %860 : vector<1x72xf32> to vector<16x72xf32>
    %862 = arith.mulf %861, %859 : vector<16x72xf32>
    %863 = arith.addf %858, %862 : vector<16x72xf32>
    %864 = vector.extract_strided_slice %710 {offsets = [2, 1], sizes = [16, 72], strides = [1, 1]} : vector<18x74xf32> to vector<16x72xf32>
    %c30_432 = arith.constant 30 : index
    %c0_433 = arith.constant 0 : index
    %865 = vector.load %arg10[%c30_432, %c0_433] : memref<36x72xf32, #tpu.memory_space<vmem>>, vector<1x72xf32>
    %866 = vector.broadcast %865 : vector<1x72xf32> to vector<16x72xf32>
    %867 = arith.mulf %866, %864 : vector<16x72xf32>
    %868 = arith.addf %863, %867 : vector<16x72xf32>
    %869 = vector.extract_strided_slice %712 {offsets = [2, 1], sizes = [16, 72], strides = [1, 1]} : vector<18x74xf32> to vector<16x72xf32>
    %c31_434 = arith.constant 31 : index
    %c0_435 = arith.constant 0 : index
    %870 = vector.load %arg10[%c31_434, %c0_435] : memref<36x72xf32, #tpu.memory_space<vmem>>, vector<1x72xf32>
    %871 = vector.broadcast %870 : vector<1x72xf32> to vector<16x72xf32>
    %872 = arith.mulf %871, %869 : vector<16x72xf32>
    %873 = arith.addf %868, %872 : vector<16x72xf32>
    %874 = vector.extract_strided_slice %706 {offsets = [2, 2], sizes = [16, 72], strides = [1, 1]} : vector<18x74xf32> to vector<16x72xf32>
    %c32_436 = arith.constant 32 : index
    %c0_437 = arith.constant 0 : index
    %875 = vector.load %arg10[%c32_436, %c0_437] : memref<36x72xf32, #tpu.memory_space<vmem>>, vector<1x72xf32>
    %876 = vector.broadcast %875 : vector<1x72xf32> to vector<16x72xf32>
    %877 = arith.mulf %876, %874 : vector<16x72xf32>
    %878 = arith.addf %873, %877 : vector<16x72xf32>
    %879 = vector.extract_strided_slice %708 {offsets = [2, 2], sizes = [16, 72], strides = [1, 1]} : vector<18x74xf32> to vector<16x72xf32>
    %c33_438 = arith.constant 33 : index
    %c0_439 = arith.constant 0 : index
    %880 = vector.load %arg10[%c33_438, %c0_439] : memref<36x72xf32, #tpu.memory_space<vmem>>, vector<1x72xf32>
    %881 = vector.broadcast %880 : vector<1x72xf32> to vector<16x72xf32>
    %882 = arith.mulf %881, %879 : vector<16x72xf32>
    %883 = arith.addf %878, %882 : vector<16x72xf32>
    %884 = vector.extract_strided_slice %710 {offsets = [2, 2], sizes = [16, 72], strides = [1, 1]} : vector<18x74xf32> to vector<16x72xf32>
    %c34_440 = arith.constant 34 : index
    %c0_441 = arith.constant 0 : index
    %885 = vector.load %arg10[%c34_440, %c0_441] : memref<36x72xf32, #tpu.memory_space<vmem>>, vector<1x72xf32>
    %886 = vector.broadcast %885 : vector<1x72xf32> to vector<16x72xf32>
    %887 = arith.mulf %886, %884 : vector<16x72xf32>
    %888 = arith.addf %883, %887 : vector<16x72xf32>
    %889 = vector.extract_strided_slice %712 {offsets = [2, 2], sizes = [16, 72], strides = [1, 1]} : vector<18x74xf32> to vector<16x72xf32>
    %c35_442 = arith.constant 35 : index
    %c0_443 = arith.constant 0 : index
    %890 = vector.load %arg10[%c35_442, %c0_443] : memref<36x72xf32, #tpu.memory_space<vmem>>, vector<1x72xf32>
    %891 = vector.broadcast %890 : vector<1x72xf32> to vector<16x72xf32>
    %892 = arith.mulf %891, %889 : vector<16x72xf32>
    %893 = arith.addf %888, %892 : vector<16x72xf32>
    %c0_444 = arith.constant 0 : index
    %c0_445 = arith.constant 0 : index
    %894 = vector.load %arg11[%c0_444, %c0_445] : memref<1x72xf32, #tpu.memory_space<vmem>>, vector<1x72xf32>
    %895 = vector.broadcast %894 : vector<1x72xf32> to vector<16x72xf32>
    %896 = arith.addf %893, %895 : vector<16x72xf32>
    %cst_446 = arith.constant 2.000000e-01 : f32
    %897 = vector.broadcast %cst_446 : f32 to vector<16x72xf32>
    %898 = arith.mulf %897, %896 : vector<16x72xf32>
    %899 = arith.maximumf %896, %898 : vector<16x72xf32>
    %900 = vector.extract_strided_slice %899 {offsets = [0, 0], sizes = [16, 16], strides = [1, 1]} : vector<16x72xf32> to vector<16x16xf32>
    %901 = vector.extract_strided_slice %899 {offsets = [0, 18], sizes = [16, 16], strides = [1, 1]} : vector<16x72xf32> to vector<16x16xf32>
    %902 = vector.extract_strided_slice %899 {offsets = [0, 36], sizes = [16, 16], strides = [1, 1]} : vector<16x72xf32> to vector<16x16xf32>
    %903 = vector.extract_strided_slice %899 {offsets = [0, 54], sizes = [16, 16], strides = [1, 1]} : vector<16x72xf32> to vector<16x16xf32>
    %c0_447 = arith.constant 0 : index
    %c1_448 = arith.constant 1 : index
    %c1_449 = arith.constant 1 : index
    %904 = vector.load %arg15[%c0_447, %c1_448, %c1_449] : memref<4x18x74xf32, #tpu.memory_space<vmem>>, vector<1x16x16xf32>
    %905 = vector.shape_cast %904 : vector<1x16x16xf32> to vector<16x16xf32>
    %906 = vector.shape_cast %900 : vector<16x16xf32> to vector<1x16x16xf32>
    tpu.vector_store %arg15[%c0_447, %c1_448, %c1_449], %906 {strides = array<i32>} : memref<4x18x74xf32, #tpu.memory_space<vmem>>, vector<1x16x16xf32>,
    %c1_450 = arith.constant 1 : index
    %c1_451 = arith.constant 1 : index
    %c1_452 = arith.constant 1 : index
    %907 = vector.load %arg15[%c1_450, %c1_451, %c1_452] : memref<4x18x74xf32, #tpu.memory_space<vmem>>, vector<1x16x16xf32>
    %908 = vector.shape_cast %907 : vector<1x16x16xf32> to vector<16x16xf32>
    %909 = vector.shape_cast %901 : vector<16x16xf32> to vector<1x16x16xf32>
    tpu.vector_store %arg15[%c1_450, %c1_451, %c1_452], %909 {strides = array<i32>} : memref<4x18x74xf32, #tpu.memory_space<vmem>>, vector<1x16x16xf32>,
    %c2_453 = arith.constant 2 : index
    %c1_454 = arith.constant 1 : index
    %c1_455 = arith.constant 1 : index
    %910 = vector.load %arg15[%c2_453, %c1_454, %c1_455] : memref<4x18x74xf32, #tpu.memory_space<vmem>>, vector<1x16x16xf32>
    %911 = vector.shape_cast %910 : vector<1x16x16xf32> to vector<16x16xf32>
    %912 = vector.shape_cast %902 : vector<16x16xf32> to vector<1x16x16xf32>
    tpu.vector_store %arg15[%c2_453, %c1_454, %c1_455], %912 {strides = array<i32>} : memref<4x18x74xf32, #tpu.memory_space<vmem>>, vector<1x16x16xf32>,
    %c3_456 = arith.constant 3 : index
    %c1_457 = arith.constant 1 : index
    %c1_458 = arith.constant 1 : index
    %913 = vector.load %arg15[%c3_456, %c1_457, %c1_458] : memref<4x18x74xf32, #tpu.memory_space<vmem>>, vector<1x16x16xf32>
    %914 = vector.shape_cast %913 : vector<1x16x16xf32> to vector<16x16xf32>
    %915 = vector.shape_cast %903 : vector<16x16xf32> to vector<1x16x16xf32>
    tpu.vector_store %arg15[%c3_456, %c1_457, %c1_458], %915 {strides = array<i32>} : memref<4x18x74xf32, #tpu.memory_space<vmem>>, vector<1x16x16xf32>,
    %c0_459 = arith.constant 0 : index
    %c0_460 = arith.constant 0 : index
    %c0_461 = arith.constant 0 : index
    %916 = vector.load %arg15[%c0_459, %c0_460, %c0_461] : memref<4x18x74xf32, #tpu.memory_space<vmem>>, vector<1x18x74xf32>
    %917 = vector.shape_cast %916 : vector<1x18x74xf32> to vector<18x74xf32>
    %c1_462 = arith.constant 1 : index
    %c0_463 = arith.constant 0 : index
    %c0_464 = arith.constant 0 : index
    %918 = vector.load %arg15[%c1_462, %c0_463, %c0_464] : memref<4x18x74xf32, #tpu.memory_space<vmem>>, vector<1x18x74xf32>
    %919 = vector.shape_cast %918 : vector<1x18x74xf32> to vector<18x74xf32>
    %c2_465 = arith.constant 2 : index
    %c0_466 = arith.constant 0 : index
    %c0_467 = arith.constant 0 : index
    %920 = vector.load %arg15[%c2_465, %c0_466, %c0_467] : memref<4x18x74xf32, #tpu.memory_space<vmem>>, vector<1x18x74xf32>
    %921 = vector.shape_cast %920 : vector<1x18x74xf32> to vector<18x74xf32>
    %c3_468 = arith.constant 3 : index
    %c0_469 = arith.constant 0 : index
    %c0_470 = arith.constant 0 : index
    %922 = vector.load %arg15[%c3_468, %c0_469, %c0_470] : memref<4x18x74xf32, #tpu.memory_space<vmem>>, vector<1x18x74xf32>
    %923 = vector.shape_cast %922 : vector<1x18x74xf32> to vector<18x74xf32>
    %cst_471 = arith.constant 0.000000e+00 : f32
    %924 = vector.broadcast %cst_471 : f32 to vector<16x18xf32>
    %925 = vector.extract_strided_slice %917 {offsets = [0, 0], sizes = [16, 18], strides = [1, 1]} : vector<18x74xf32> to vector<16x18xf32>
    %c0_472 = arith.constant 0 : index
    %c0_473 = arith.constant 0 : index
    %926 = vector.load %arg12[%c0_472, %c0_473] : memref<36x18xf32, #tpu.memory_space<vmem>>, vector<1x18xf32>
    %927 = vector.broadcast %926 : vector<1x18xf32> to vector<16x18xf32>
    %928 = arith.mulf %927, %925 : vector<16x18xf32>
    %929 = arith.addf %924, %928 : vector<16x18xf32>
    %930 = vector.extract_strided_slice %919 {offsets = [0, 0], sizes = [16, 18], strides = [1, 1]} : vector<18x74xf32> to vector<16x18xf32>
    %c1_474 = arith.constant 1 : index
    %c0_475 = arith.constant 0 : index
    %931 = vector.load %arg12[%c1_474, %c0_475] : memref<36x18xf32, #tpu.memory_space<vmem>>, vector<1x18xf32>
    %932 = vector.broadcast %931 : vector<1x18xf32> to vector<16x18xf32>
    %933 = arith.mulf %932, %930 : vector<16x18xf32>
    %934 = arith.addf %929, %933 : vector<16x18xf32>
    %935 = vector.extract_strided_slice %921 {offsets = [0, 0], sizes = [16, 18], strides = [1, 1]} : vector<18x74xf32> to vector<16x18xf32>
    %c2_476 = arith.constant 2 : index
    %c0_477 = arith.constant 0 : index
    %936 = vector.load %arg12[%c2_476, %c0_477] : memref<36x18xf32, #tpu.memory_space<vmem>>, vector<1x18xf32>
    %937 = vector.broadcast %936 : vector<1x18xf32> to vector<16x18xf32>
    %938 = arith.mulf %937, %935 : vector<16x18xf32>
    %939 = arith.addf %934, %938 : vector<16x18xf32>
    %940 = vector.extract_strided_slice %923 {offsets = [0, 0], sizes = [16, 18], strides = [1, 1]} : vector<18x74xf32> to vector<16x18xf32>
    %c3_478 = arith.constant 3 : index
    %c0_479 = arith.constant 0 : index
    %941 = vector.load %arg12[%c3_478, %c0_479] : memref<36x18xf32, #tpu.memory_space<vmem>>, vector<1x18xf32>
    %942 = vector.broadcast %941 : vector<1x18xf32> to vector<16x18xf32>
    %943 = arith.mulf %942, %940 : vector<16x18xf32>
    %944 = arith.addf %939, %943 : vector<16x18xf32>
    %945 = vector.extract_strided_slice %917 {offsets = [0, 1], sizes = [16, 18], strides = [1, 1]} : vector<18x74xf32> to vector<16x18xf32>
    %c4_480 = arith.constant 4 : index
    %c0_481 = arith.constant 0 : index
    %946 = vector.load %arg12[%c4_480, %c0_481] : memref<36x18xf32, #tpu.memory_space<vmem>>, vector<1x18xf32>
    %947 = vector.broadcast %946 : vector<1x18xf32> to vector<16x18xf32>
    %948 = arith.mulf %947, %945 : vector<16x18xf32>
    %949 = arith.addf %944, %948 : vector<16x18xf32>
    %950 = vector.extract_strided_slice %919 {offsets = [0, 1], sizes = [16, 18], strides = [1, 1]} : vector<18x74xf32> to vector<16x18xf32>
    %c5_482 = arith.constant 5 : index
    %c0_483 = arith.constant 0 : index
    %951 = vector.load %arg12[%c5_482, %c0_483] : memref<36x18xf32, #tpu.memory_space<vmem>>, vector<1x18xf32>
    %952 = vector.broadcast %951 : vector<1x18xf32> to vector<16x18xf32>
    %953 = arith.mulf %952, %950 : vector<16x18xf32>
    %954 = arith.addf %949, %953 : vector<16x18xf32>
    %955 = vector.extract_strided_slice %921 {offsets = [0, 1], sizes = [16, 18], strides = [1, 1]} : vector<18x74xf32> to vector<16x18xf32>
    %c6_484 = arith.constant 6 : index
    %c0_485 = arith.constant 0 : index
    %956 = vector.load %arg12[%c6_484, %c0_485] : memref<36x18xf32, #tpu.memory_space<vmem>>, vector<1x18xf32>
    %957 = vector.broadcast %956 : vector<1x18xf32> to vector<16x18xf32>
    %958 = arith.mulf %957, %955 : vector<16x18xf32>
    %959 = arith.addf %954, %958 : vector<16x18xf32>
    %960 = vector.extract_strided_slice %923 {offsets = [0, 1], sizes = [16, 18], strides = [1, 1]} : vector<18x74xf32> to vector<16x18xf32>
    %c7_486 = arith.constant 7 : index
    %c0_487 = arith.constant 0 : index
    %961 = vector.load %arg12[%c7_486, %c0_487] : memref<36x18xf32, #tpu.memory_space<vmem>>, vector<1x18xf32>
    %962 = vector.broadcast %961 : vector<1x18xf32> to vector<16x18xf32>
    %963 = arith.mulf %962, %960 : vector<16x18xf32>
    %964 = arith.addf %959, %963 : vector<16x18xf32>
    %965 = vector.extract_strided_slice %917 {offsets = [0, 2], sizes = [16, 18], strides = [1, 1]} : vector<18x74xf32> to vector<16x18xf32>
    %c8_488 = arith.constant 8 : index
    %c0_489 = arith.constant 0 : index
    %966 = vector.load %arg12[%c8_488, %c0_489] : memref<36x18xf32, #tpu.memory_space<vmem>>, vector<1x18xf32>
    %967 = vector.broadcast %966 : vector<1x18xf32> to vector<16x18xf32>
    %968 = arith.mulf %967, %965 : vector<16x18xf32>
    %969 = arith.addf %964, %968 : vector<16x18xf32>
    %970 = vector.extract_strided_slice %919 {offsets = [0, 2], sizes = [16, 18], strides = [1, 1]} : vector<18x74xf32> to vector<16x18xf32>
    %c9_490 = arith.constant 9 : index
    %c0_491 = arith.constant 0 : index
    %971 = vector.load %arg12[%c9_490, %c0_491] : memref<36x18xf32, #tpu.memory_space<vmem>>, vector<1x18xf32>
    %972 = vector.broadcast %971 : vector<1x18xf32> to vector<16x18xf32>
    %973 = arith.mulf %972, %970 : vector<16x18xf32>
    %974 = arith.addf %969, %973 : vector<16x18xf32>
    %975 = vector.extract_strided_slice %921 {offsets = [0, 2], sizes = [16, 18], strides = [1, 1]} : vector<18x74xf32> to vector<16x18xf32>
    %c10_492 = arith.constant 10 : index
    %c0_493 = arith.constant 0 : index
    %976 = vector.load %arg12[%c10_492, %c0_493] : memref<36x18xf32, #tpu.memory_space<vmem>>, vector<1x18xf32>
    %977 = vector.broadcast %976 : vector<1x18xf32> to vector<16x18xf32>
    %978 = arith.mulf %977, %975 : vector<16x18xf32>
    %979 = arith.addf %974, %978 : vector<16x18xf32>
    %980 = vector.extract_strided_slice %923 {offsets = [0, 2], sizes = [16, 18], strides = [1, 1]} : vector<18x74xf32> to vector<16x18xf32>
    %c11_494 = arith.constant 11 : index
    %c0_495 = arith.constant 0 : index
    %981 = vector.load %arg12[%c11_494, %c0_495] : memref<36x18xf32, #tpu.memory_space<vmem>>, vector<1x18xf32>
    %982 = vector.broadcast %981 : vector<1x18xf32> to vector<16x18xf32>
    %983 = arith.mulf %982, %980 : vector<16x18xf32>
    %984 = arith.addf %979, %983 : vector<16x18xf32>
    %985 = vector.extract_strided_slice %917 {offsets = [1, 0], sizes = [16, 18], strides = [1, 1]} : vector<18x74xf32> to vector<16x18xf32>
    %c12_496 = arith.constant 12 : index
    %c0_497 = arith.constant 0 : index
    %986 = vector.load %arg12[%c12_496, %c0_497] : memref<36x18xf32, #tpu.memory_space<vmem>>, vector<1x18xf32>
    %987 = vector.broadcast %986 : vector<1x18xf32> to vector<16x18xf32>
    %988 = arith.mulf %987, %985 : vector<16x18xf32>
    %989 = arith.addf %984, %988 : vector<16x18xf32>
    %990 = vector.extract_strided_slice %919 {offsets = [1, 0], sizes = [16, 18], strides = [1, 1]} : vector<18x74xf32> to vector<16x18xf32>
    %c13_498 = arith.constant 13 : index
    %c0_499 = arith.constant 0 : index
    %991 = vector.load %arg12[%c13_498, %c0_499] : memref<36x18xf32, #tpu.memory_space<vmem>>, vector<1x18xf32>
    %992 = vector.broadcast %991 : vector<1x18xf32> to vector<16x18xf32>
    %993 = arith.mulf %992, %990 : vector<16x18xf32>
    %994 = arith.addf %989, %993 : vector<16x18xf32>
    %995 = vector.extract_strided_slice %921 {offsets = [1, 0], sizes = [16, 18], strides = [1, 1]} : vector<18x74xf32> to vector<16x18xf32>
    %c14_500 = arith.constant 14 : index
    %c0_501 = arith.constant 0 : index
    %996 = vector.load %arg12[%c14_500, %c0_501] : memref<36x18xf32, #tpu.memory_space<vmem>>, vector<1x18xf32>
    %997 = vector.broadcast %996 : vector<1x18xf32> to vector<16x18xf32>
    %998 = arith.mulf %997, %995 : vector<16x18xf32>
    %999 = arith.addf %994, %998 : vector<16x18xf32>
    %1000 = vector.extract_strided_slice %923 {offsets = [1, 0], sizes = [16, 18], strides = [1, 1]} : vector<18x74xf32> to vector<16x18xf32>
    %c15_502 = arith.constant 15 : index
    %c0_503 = arith.constant 0 : index
    %1001 = vector.load %arg12[%c15_502, %c0_503] : memref<36x18xf32, #tpu.memory_space<vmem>>, vector<1x18xf32>
    %1002 = vector.broadcast %1001 : vector<1x18xf32> to vector<16x18xf32>
    %1003 = arith.mulf %1002, %1000 : vector<16x18xf32>
    %1004 = arith.addf %999, %1003 : vector<16x18xf32>
    %1005 = vector.extract_strided_slice %917 {offsets = [1, 1], sizes = [16, 18], strides = [1, 1]} : vector<18x74xf32> to vector<16x18xf32>
    %c16_504 = arith.constant 16 : index
    %c0_505 = arith.constant 0 : index
    %1006 = vector.load %arg12[%c16_504, %c0_505] : memref<36x18xf32, #tpu.memory_space<vmem>>, vector<1x18xf32>
    %1007 = vector.broadcast %1006 : vector<1x18xf32> to vector<16x18xf32>
    %1008 = arith.mulf %1007, %1005 : vector<16x18xf32>
    %1009 = arith.addf %1004, %1008 : vector<16x18xf32>
    %1010 = vector.extract_strided_slice %919 {offsets = [1, 1], sizes = [16, 18], strides = [1, 1]} : vector<18x74xf32> to vector<16x18xf32>
    %c17_506 = arith.constant 17 : index
    %c0_507 = arith.constant 0 : index
    %1011 = vector.load %arg12[%c17_506, %c0_507] : memref<36x18xf32, #tpu.memory_space<vmem>>, vector<1x18xf32>
    %1012 = vector.broadcast %1011 : vector<1x18xf32> to vector<16x18xf32>
    %1013 = arith.mulf %1012, %1010 : vector<16x18xf32>
    %1014 = arith.addf %1009, %1013 : vector<16x18xf32>
    %1015 = vector.extract_strided_slice %921 {offsets = [1, 1], sizes = [16, 18], strides = [1, 1]} : vector<18x74xf32> to vector<16x18xf32>
    %c18_508 = arith.constant 18 : index
    %c0_509 = arith.constant 0 : index
    %1016 = vector.load %arg12[%c18_508, %c0_509] : memref<36x18xf32, #tpu.memory_space<vmem>>, vector<1x18xf32>
    %1017 = vector.broadcast %1016 : vector<1x18xf32> to vector<16x18xf32>
    %1018 = arith.mulf %1017, %1015 : vector<16x18xf32>
    %1019 = arith.addf %1014, %1018 : vector<16x18xf32>
    %1020 = vector.extract_strided_slice %923 {offsets = [1, 1], sizes = [16, 18], strides = [1, 1]} : vector<18x74xf32> to vector<16x18xf32>
    %c19_510 = arith.constant 19 : index
    %c0_511 = arith.constant 0 : index
    %1021 = vector.load %arg12[%c19_510, %c0_511] : memref<36x18xf32, #tpu.memory_space<vmem>>, vector<1x18xf32>
    %1022 = vector.broadcast %1021 : vector<1x18xf32> to vector<16x18xf32>
    %1023 = arith.mulf %1022, %1020 : vector<16x18xf32>
    %1024 = arith.addf %1019, %1023 : vector<16x18xf32>
    %1025 = vector.extract_strided_slice %917 {offsets = [1, 2], sizes = [16, 18], strides = [1, 1]} : vector<18x74xf32> to vector<16x18xf32>
    %c20_512 = arith.constant 20 : index
    %c0_513 = arith.constant 0 : index
    %1026 = vector.load %arg12[%c20_512, %c0_513] : memref<36x18xf32, #tpu.memory_space<vmem>>, vector<1x18xf32>
    %1027 = vector.broadcast %1026 : vector<1x18xf32> to vector<16x18xf32>
    %1028 = arith.mulf %1027, %1025 : vector<16x18xf32>
    %1029 = arith.addf %1024, %1028 : vector<16x18xf32>
    %1030 = vector.extract_strided_slice %919 {offsets = [1, 2], sizes = [16, 18], strides = [1, 1]} : vector<18x74xf32> to vector<16x18xf32>
    %c21_514 = arith.constant 21 : index
    %c0_515 = arith.constant 0 : index
    %1031 = vector.load %arg12[%c21_514, %c0_515] : memref<36x18xf32, #tpu.memory_space<vmem>>, vector<1x18xf32>
    %1032 = vector.broadcast %1031 : vector<1x18xf32> to vector<16x18xf32>
    %1033 = arith.mulf %1032, %1030 : vector<16x18xf32>
    %1034 = arith.addf %1029, %1033 : vector<16x18xf32>
    %1035 = vector.extract_strided_slice %921 {offsets = [1, 2], sizes = [16, 18], strides = [1, 1]} : vector<18x74xf32> to vector<16x18xf32>
    %c22_516 = arith.constant 22 : index
    %c0_517 = arith.constant 0 : index
    %1036 = vector.load %arg12[%c22_516, %c0_517] : memref<36x18xf32, #tpu.memory_space<vmem>>, vector<1x18xf32>
    %1037 = vector.broadcast %1036 : vector<1x18xf32> to vector<16x18xf32>
    %1038 = arith.mulf %1037, %1035 : vector<16x18xf32>
    %1039 = arith.addf %1034, %1038 : vector<16x18xf32>
    %1040 = vector.extract_strided_slice %923 {offsets = [1, 2], sizes = [16, 18], strides = [1, 1]} : vector<18x74xf32> to vector<16x18xf32>
    %c23_518 = arith.constant 23 : index
    %c0_519 = arith.constant 0 : index
    %1041 = vector.load %arg12[%c23_518, %c0_519] : memref<36x18xf32, #tpu.memory_space<vmem>>, vector<1x18xf32>
    %1042 = vector.broadcast %1041 : vector<1x18xf32> to vector<16x18xf32>
    %1043 = arith.mulf %1042, %1040 : vector<16x18xf32>
    %1044 = arith.addf %1039, %1043 : vector<16x18xf32>
    %1045 = vector.extract_strided_slice %917 {offsets = [2, 0], sizes = [16, 18], strides = [1, 1]} : vector<18x74xf32> to vector<16x18xf32>
    %c24_520 = arith.constant 24 : index
    %c0_521 = arith.constant 0 : index
    %1046 = vector.load %arg12[%c24_520, %c0_521] : memref<36x18xf32, #tpu.memory_space<vmem>>, vector<1x18xf32>
    %1047 = vector.broadcast %1046 : vector<1x18xf32> to vector<16x18xf32>
    %1048 = arith.mulf %1047, %1045 : vector<16x18xf32>
    %1049 = arith.addf %1044, %1048 : vector<16x18xf32>
    %1050 = vector.extract_strided_slice %919 {offsets = [2, 0], sizes = [16, 18], strides = [1, 1]} : vector<18x74xf32> to vector<16x18xf32>
    %c25_522 = arith.constant 25 : index
    %c0_523 = arith.constant 0 : index
    %1051 = vector.load %arg12[%c25_522, %c0_523] : memref<36x18xf32, #tpu.memory_space<vmem>>, vector<1x18xf32>
    %1052 = vector.broadcast %1051 : vector<1x18xf32> to vector<16x18xf32>
    %1053 = arith.mulf %1052, %1050 : vector<16x18xf32>
    %1054 = arith.addf %1049, %1053 : vector<16x18xf32>
    %1055 = vector.extract_strided_slice %921 {offsets = [2, 0], sizes = [16, 18], strides = [1, 1]} : vector<18x74xf32> to vector<16x18xf32>
    %c26_524 = arith.constant 26 : index
    %c0_525 = arith.constant 0 : index
    %1056 = vector.load %arg12[%c26_524, %c0_525] : memref<36x18xf32, #tpu.memory_space<vmem>>, vector<1x18xf32>
    %1057 = vector.broadcast %1056 : vector<1x18xf32> to vector<16x18xf32>
    %1058 = arith.mulf %1057, %1055 : vector<16x18xf32>
    %1059 = arith.addf %1054, %1058 : vector<16x18xf32>
    %1060 = vector.extract_strided_slice %923 {offsets = [2, 0], sizes = [16, 18], strides = [1, 1]} : vector<18x74xf32> to vector<16x18xf32>
    %c27_526 = arith.constant 27 : index
    %c0_527 = arith.constant 0 : index
    %1061 = vector.load %arg12[%c27_526, %c0_527] : memref<36x18xf32, #tpu.memory_space<vmem>>, vector<1x18xf32>
    %1062 = vector.broadcast %1061 : vector<1x18xf32> to vector<16x18xf32>
    %1063 = arith.mulf %1062, %1060 : vector<16x18xf32>
    %1064 = arith.addf %1059, %1063 : vector<16x18xf32>
    %1065 = vector.extract_strided_slice %917 {offsets = [2, 1], sizes = [16, 18], strides = [1, 1]} : vector<18x74xf32> to vector<16x18xf32>
    %c28_528 = arith.constant 28 : index
    %c0_529 = arith.constant 0 : index
    %1066 = vector.load %arg12[%c28_528, %c0_529] : memref<36x18xf32, #tpu.memory_space<vmem>>, vector<1x18xf32>
    %1067 = vector.broadcast %1066 : vector<1x18xf32> to vector<16x18xf32>
    %1068 = arith.mulf %1067, %1065 : vector<16x18xf32>
    %1069 = arith.addf %1064, %1068 : vector<16x18xf32>
    %1070 = vector.extract_strided_slice %919 {offsets = [2, 1], sizes = [16, 18], strides = [1, 1]} : vector<18x74xf32> to vector<16x18xf32>
    %c29_530 = arith.constant 29 : index
    %c0_531 = arith.constant 0 : index
    %1071 = vector.load %arg12[%c29_530, %c0_531] : memref<36x18xf32, #tpu.memory_space<vmem>>, vector<1x18xf32>
    %1072 = vector.broadcast %1071 : vector<1x18xf32> to vector<16x18xf32>
    %1073 = arith.mulf %1072, %1070 : vector<16x18xf32>
    %1074 = arith.addf %1069, %1073 : vector<16x18xf32>
    %1075 = vector.extract_strided_slice %921 {offsets = [2, 1], sizes = [16, 18], strides = [1, 1]} : vector<18x74xf32> to vector<16x18xf32>
    %c30_532 = arith.constant 30 : index
    %c0_533 = arith.constant 0 : index
    %1076 = vector.load %arg12[%c30_532, %c0_533] : memref<36x18xf32, #tpu.memory_space<vmem>>, vector<1x18xf32>
    %1077 = vector.broadcast %1076 : vector<1x18xf32> to vector<16x18xf32>
    %1078 = arith.mulf %1077, %1075 : vector<16x18xf32>
    %1079 = arith.addf %1074, %1078 : vector<16x18xf32>
    %1080 = vector.extract_strided_slice %923 {offsets = [2, 1], sizes = [16, 18], strides = [1, 1]} : vector<18x74xf32> to vector<16x18xf32>
    %c31_534 = arith.constant 31 : index
    %c0_535 = arith.constant 0 : index
    %1081 = vector.load %arg12[%c31_534, %c0_535] : memref<36x18xf32, #tpu.memory_space<vmem>>, vector<1x18xf32>
    %1082 = vector.broadcast %1081 : vector<1x18xf32> to vector<16x18xf32>
    %1083 = arith.mulf %1082, %1080 : vector<16x18xf32>
    %1084 = arith.addf %1079, %1083 : vector<16x18xf32>
    %1085 = vector.extract_strided_slice %917 {offsets = [2, 2], sizes = [16, 18], strides = [1, 1]} : vector<18x74xf32> to vector<16x18xf32>
    %c32_536 = arith.constant 32 : index
    %c0_537 = arith.constant 0 : index
    %1086 = vector.load %arg12[%c32_536, %c0_537] : memref<36x18xf32, #tpu.memory_space<vmem>>, vector<1x18xf32>
    %1087 = vector.broadcast %1086 : vector<1x18xf32> to vector<16x18xf32>
    %1088 = arith.mulf %1087, %1085 : vector<16x18xf32>
    %1089 = arith.addf %1084, %1088 : vector<16x18xf32>
    %1090 = vector.extract_strided_slice %919 {offsets = [2, 2], sizes = [16, 18], strides = [1, 1]} : vector<18x74xf32> to vector<16x18xf32>
    %c33_538 = arith.constant 33 : index
    %c0_539 = arith.constant 0 : index
    %1091 = vector.load %arg12[%c33_538, %c0_539] : memref<36x18xf32, #tpu.memory_space<vmem>>, vector<1x18xf32>
    %1092 = vector.broadcast %1091 : vector<1x18xf32> to vector<16x18xf32>
    %1093 = arith.mulf %1092, %1090 : vector<16x18xf32>
    %1094 = arith.addf %1089, %1093 : vector<16x18xf32>
    %1095 = vector.extract_strided_slice %921 {offsets = [2, 2], sizes = [16, 18], strides = [1, 1]} : vector<18x74xf32> to vector<16x18xf32>
    %c34_540 = arith.constant 34 : index
    %c0_541 = arith.constant 0 : index
    %1096 = vector.load %arg12[%c34_540, %c0_541] : memref<36x18xf32, #tpu.memory_space<vmem>>, vector<1x18xf32>
    %1097 = vector.broadcast %1096 : vector<1x18xf32> to vector<16x18xf32>
    %1098 = arith.mulf %1097, %1095 : vector<16x18xf32>
    %1099 = arith.addf %1094, %1098 : vector<16x18xf32>
    %1100 = vector.extract_strided_slice %923 {offsets = [2, 2], sizes = [16, 18], strides = [1, 1]} : vector<18x74xf32> to vector<16x18xf32>
    %c35_542 = arith.constant 35 : index
    %c0_543 = arith.constant 0 : index
    %1101 = vector.load %arg12[%c35_542, %c0_543] : memref<36x18xf32, #tpu.memory_space<vmem>>, vector<1x18xf32>
    %1102 = vector.broadcast %1101 : vector<1x18xf32> to vector<16x18xf32>
    %1103 = arith.mulf %1102, %1100 : vector<16x18xf32>
    %1104 = arith.addf %1099, %1103 : vector<16x18xf32>
    %c0_544 = arith.constant 0 : index
    %c0_545 = arith.constant 0 : index
    %1105 = vector.load %arg13[%c0_544, %c0_545] : memref<1x18xf32, #tpu.memory_space<vmem>>, vector<1x18xf32>
    %1106 = vector.broadcast %1105 : vector<1x18xf32> to vector<16x18xf32>
    %1107 = arith.addf %1104, %1106 : vector<16x18xf32>
    %1108 = math.tanh %1107 : vector<16x18xf32>
    %1109 = vector.extract_strided_slice %1108 {offsets = [0, 0], sizes = [16, 16], strides = [1, 1]} : vector<16x18xf32> to vector<16x16xf32>
    %1110 = arith.subf %527, %1109 : vector<16x16xf32>
    %c0_546 = arith.constant 0 : index
    %c0_547 = arith.constant 0 : index
    %c0_548 = arith.constant 0 : index
    %c0_549 = arith.constant 0 : index
    %1111 = vector.load %arg14[%c0_546, %c0_547, %c0_548, %c0_549] : memref<1x1x16x16xf32, #tpu.memory_space<vmem>>, vector<1x1x16x16xf32>
    %1112 = vector.shape_cast %1111 : vector<1x1x16x16xf32> to vector<16x16xf32>
    %1113 = vector.shape_cast %1110 : vector<16x16xf32> to vector<1x1x16x16xf32>
    tpu.vector_store %arg14[%c0_546, %c0_547, %c0_548, %c0_549], %1113 {strides = array<i32>} : memref<1x1x16x16xf32, #tpu.memory_space<vmem>>, vector<1x1x16x16xf32>,
    return
  }
  func.func @transform_0(%arg0: i32) -> (i32, i32, i32, i32) {
    %c0_i32 = arith.constant 0 : i32
    %c0_i32_0 = arith.constant 0 : i32
    %c0_i32_1 = arith.constant 0 : i32
    %c0_i32_2 = arith.constant 0 : i32
    return %arg0, %c0_i32, %c0_i32_0, %c0_i32_1 : i32, i32, i32, i32
  }
  func.func @transform_1(%arg0: i32) -> (i32, i32) {
    %c0_i32 = arith.constant 0 : i32
    %c0_i32_0 = arith.constant 0 : i32
    %c0_i32_1 = arith.constant 0 : i32
    return %c0_i32, %c0_i32_0 : i32, i32
  }
  func.func @transform_2(%arg0: i32) -> (i32, i32) {
    %c0_i32 = arith.constant 0 : i32
    %c0_i32_0 = arith.constant 0 : i32
    %c0_i32_1 = arith.constant 0 : i32
    return %c0_i32, %c0_i32_0 : i32, i32
  }
  func.func @transform_3(%arg0: i32) -> (i32, i32) {
    %c0_i32 = arith.constant 0 : i32
    %c0_i32_0 = arith.constant 0 : i32
    %c0_i32_1 = arith.constant 0 : i32
    return %c0_i32, %c0_i32_0 : i32, i32
  }
  func.func @transform_4(%arg0: i32) -> (i32, i32) {
    %c0_i32 = arith.constant 0 : i32
    %c0_i32_0 = arith.constant 0 : i32
    %c0_i32_1 = arith.constant 0 : i32
    return %c0_i32, %c0_i32_0 : i32, i32
  }
  func.func @transform_5(%arg0: i32) -> (i32, i32) {
    %c0_i32 = arith.constant 0 : i32
    %c0_i32_0 = arith.constant 0 : i32
    %c0_i32_1 = arith.constant 0 : i32
    return %c0_i32, %c0_i32_0 : i32, i32
  }
  func.func @transform_6(%arg0: i32) -> (i32, i32) {
    %c0_i32 = arith.constant 0 : i32
    %c0_i32_0 = arith.constant 0 : i32
    %c0_i32_1 = arith.constant 0 : i32
    return %c0_i32, %c0_i32_0 : i32, i32
  }
  func.func @transform_7(%arg0: i32) -> (i32, i32) {
    %c0_i32 = arith.constant 0 : i32
    %c0_i32_0 = arith.constant 0 : i32
    %c0_i32_1 = arith.constant 0 : i32
    return %c0_i32, %c0_i32_0 : i32, i32
  }
  func.func @transform_8(%arg0: i32) -> (i32, i32) {
    %c0_i32 = arith.constant 0 : i32
    %c0_i32_0 = arith.constant 0 : i32
    %c0_i32_1 = arith.constant 0 : i32
    return %c0_i32, %c0_i32_0 : i32, i32
  }
  func.func @transform_9(%arg0: i32) -> (i32, i32) {
    %c0_i32 = arith.constant 0 : i32
    %c0_i32_0 = arith.constant 0 : i32
    %c0_i32_1 = arith.constant 0 : i32
    return %c0_i32, %c0_i32_0 : i32, i32
  }
  func.func @transform_10(%arg0: i32) -> (i32, i32) {
    %c0_i32 = arith.constant 0 : i32
    %c0_i32_0 = arith.constant 0 : i32
    %c0_i32_1 = arith.constant 0 : i32
    return %c0_i32, %c0_i32_0 : i32, i32
  }
  func.func @transform_11(%arg0: i32) -> (i32, i32) {
    %c0_i32 = arith.constant 0 : i32
    %c0_i32_0 = arith.constant 0 : i32
    %c0_i32_1 = arith.constant 0 : i32
    return %c0_i32, %c0_i32_0 : i32, i32
  }
  func.func @transform_12(%arg0: i32) -> (i32, i32) {
    %c0_i32 = arith.constant 0 : i32
    %c0_i32_0 = arith.constant 0 : i32
    %c0_i32_1 = arith.constant 0 : i32
    return %c0_i32, %c0_i32_0 : i32, i32
  }
  func.func @transform_13(%arg0: i32) -> (i32, i32, i32, i32) {
    %c0_i32 = arith.constant 0 : i32
    %c0_i32_0 = arith.constant 0 : i32
    %c0_i32_1 = arith.constant 0 : i32
    %c0_i32_2 = arith.constant 0 : i32
    return %arg0, %c0_i32, %c0_i32_0, %c0_i32_1 : i32, i32, i32, i32
  }
}

</mosaic_0001>

<bundles_post_ra>
// kernel: tpu_custom_call.1
= control target key start
LH: loop header
LB: loop body
LE: loop exit
PB: predicated region body
PF: predicated region fallthrough
CT: control target
= control target key end

     0   :  { %s6166_s0 = inlined_call_operand.vmem [shape: f32[2,1,16,16], index: 0, kind: input, shape index: {}]   ;;  %s6167_s1 = inlined_call_operand.hbm [shape: f32[9,72], index: 1, kind: input, shape index: {}]   ;;  %s6168_s2 = inlined_call_operand.vmem [shape: f32[1,72], index: 2, kind: input, shape index: {}]   ;;  %s6169_s3 = inlined_call_operand.vmem [shape: f32[36,72], index: 3, kind: input, shape index: {}]   ;;  %s6170_s4 = inlined_call_operand.hbm [shape: f32[1,72], index: 4, kind: input, shape index: {}]   ;;  %s6171_s5 = inlined_call_operand.vmem [shape: f32[36,18], index: 5, kind: input, shape index: {}]   ;;  %s6172_s6 = inlined_call_operand.vmem [shape: f32[1,18], index: 6, kind: input, shape index: {}]   ;;  %s6173_s7 = inlined_call_operand.hbm [shape: f32[18,72], index: 7, kind: input, shape index: {}]   ;;  %s6174_s8 = inlined_call_operand.vmem [shape: f32[1,72], index: 8, kind: input, shape index: {}]   ;;  %s6175_s9 = inlined_call_operand.vmem [shape: f32[36,72], index: 9, kind: input, shape index: {}]   ;;  %s6176_s10 = inlined_call_operand.vmem [shape: f32[1,72], index: 10, kind: input, shape index: {}]   ;;  %s6177_s11 = inlined_call_operand.vmem [shape: f32[36,18], index: 11, kind: input, shape index: {}]   ;;  %s6178_s12 = inlined_call_operand.vmem [shape: f32[1,18], index: 12, kind: input, shape index: {}]   ;;  %s6179_s13 = inlined_call_operand.hbm [shape: f32[2,1,16,16], index: 13, kind: output, shape index: {}]  }
   0x1   :  { %6199 = sst [smem:[#allocation15_spill]] %s6166_s0 }
   0x2   :  { %6200 = sst [smem:[#allocation16_spill]] %s6167_s1 }
   0x3   :  { %6201 = sst [smem:[#allocation17_spill]] %s6168_s2 }
   0x4   :  { %6202 = sst [smem:[#allocation18_spill]] %s6170_s4 }
   0x5   :  { %18 = vsyncpa [#allocation4], 0 }
   0x6   :  { %19 = vsyncpa [#allocation7], 0 }
   0x7   :  { %20 = vsyncpa [#allocation5], 0 }
   0x8   :  { %22 = vsyncpa [#allocation5 + $0x1], 0  ;;  %s4462_s25 = smov 0   ;;  %s4464_s26 = smov 0  }
   0x9   :  { %s4466_s27 = smov 0   ;;  %s4468_s28 = smov 0  }
   0xa LB: > { %6203 = sst [smem:[#allocation13_spill]] %s4368_s27  ;;  %s4483_s29 = sadd.s32 4294967295, %s4372_s28   ;;  %s4372_s28 = sphi %s4468_s28, %s6226_s28   ;;  %s4368_s27 = sphi %s4466_s27, %s6223_s27   ;;  %s4364_s26 = sphi %s4464_s26, %s6225_s26   ;;  %s4360_s25 = sphi %s4462_s25, %s6224_s25  }
   0xb   : > { %s3935_s30 = sadd.s32 4294967294, %s4372_s28   ;;  %s4487_s14 = sadd.s32 1, %s4372_s28  }
   0xc   : > { %s313_s15 = sadd.s32 1, %s4368_s27  ;;  %s310_s16 = ssub.s32 %s4372_s28, %s4487_s14 }
   0xd   : > { %p323_p0 = scmp.ne.s32.totalorder %s4368_s27, %s4364_s26  ;;  %p311_p1 = scmp.eq.s32.totalorder %s310_s16, 0 }
   0xe   : > { %p324_p2 = scmp.eq.s32.totalorder %s4483_s29, 1  ;;  %p329_p3 = scmp.ne.s32.totalorder %s4364_s26, %s4360_s25 }
   0xf   : > { %p330_p4 = scmp.eq.s32.totalorder %s3935_s30, 1  ;;  %p3936_p7 = scmp.ge.s32.totalorder %s4372_s28, 1 }
  0x10   : > { %s4498_s17 = scalar_select %p311_p1, %s4368_s27, %s313_s15  }
  0x11   : > { %p4500_p5 = por %p324_p2, %p323_p0  ;;  %p4504_p6 = por %p330_p4, %p329_p3 }
  0x12   : > { %6204 = sst [smem:[#allocation14_spill]] %s4498_s17  ;;  %p337_p8 = scmp.lt.s32.totalorder %s4372_s28, 3 }
  0x13   : > { %p4160_p9 = scmp.eq.s32.totalorder %s4483_s29, 0  ;;  %s4374_s21 = smov [#allocation6]  }
  0x14   : > { %p4511_p10 = pnand %p3936_p7, %p337_p8  ;;  %s369_s22 = sshll.u32 %s4374_s21, 4  ;;  %s370_s22 = int_to_ptr.vmem [resolvable:$true] %s369_s22 }
  0x15   : > { %s4375_s23 = smov [#allocation3]   ;;  %s4376_s15 = smov [#allocation8]  }
  0x16   : > { %p4146_p11 = pneg %p4511_p10  ;;  %s349_s24 = sshll.u32 %s4375_s23, 4  ;;  %s4523_s24 = int_to_ptr.vmem [resolvable:$true] %s349_s24 }
  0x17   : > { %s385_s16 = sshll.u32 %s4376_s15, 4  ;;  %s4237_s17 = scalar_lea.vmem %s370_s22, 16  ;;  %s386_s16 = int_to_ptr.vmem [resolvable:$true] %s385_s16 }
  0x18   : > { %p4519_p12 = pnand %p4160_p9, %p4146_p11  ;;  %p4238_p0 = scmp.ne.s32.totalorder %s370_s22, %s4237_s17 }
  0x19   : > { %s4244_s21 = scalar_lea.vmem %s370_s22, 32  ;;  %p4245_p3 = scmp.lt.s32.totalorder %s370_s22, %s370_s22 }
  0x1a   : > { %p4228_p13 = pneg %p4519_p12  ;;  %p4246_p4 = scmp.lt.s32.totalorder %s4244_s21, %s4237_s17 }
  0x1c   : > { %p4240_p1 = pnand %p4238_p0, %p4228_p13  ;;  %p4247_p7 = por %p4246_p4, %p4245_p3 }
  0x1e   : > { %p4241_p2 = pneg %p4240_p1 }
  0x20   : > { %p4248_p8 = pnand %p4247_p7, %p4241_p2 }
  0x22   : > { %4251 = shalt.err (!%p4248_p8)
}
  0x23   : > { %s6209_s4 = sld [smem:[#allocation18_spill]]  ;;  %s4263_s15 = scalar_lea.vmem %s4523_s24, 256 }
  0x24   : > { %p4264_p11 = scmp.ne.s32.totalorder %s4523_s24, %s4263_s15  ;;  %p4271_p3 = scmp.lt.s32.totalorder %s4523_s24, %s4523_s24 }
  0x25   : > { %p4272_p2 = scmp.lt.s32.totalorder %s4263_s15, %s4263_s15 }
  0x26   : > { %p4266_p0 = pnand %p4264_p11, %p4228_p13 }
  0x27   : > { %p4273_p4 = por %p4272_p2, %p4271_p3 }
  0x28   : > { %p4267_p1 = pneg %p4266_p0 }
  0x29   : > { %4152 = dma.hbm_to_vmem [thread:$0]  (!%p4519_p12), %s6209_s4, 16, %s370_s22, [#allocation7]  }
  0x2a   : > { %p4274_p7 = pnand %p4273_p4, %p4267_p1 }
  0x2c   : > { %4277 = shalt.err (!%p4274_p7)
}
  0x2d   : > { %s4377_s17 = smov 128   ;;  %s4378_s27 = smov 8  }
  0x2e   : > { %s6210_s1 = sld [smem:[#allocation16_spill]]  ;;  %s4289_s23 = scalar_lea.vmem %s386_s16, 384 }
  0x2f   : > { %p4290_p8 = scmp.ne.s32.totalorder %s386_s16, %s4289_s23  ;;  %p4297_p3 = scmp.lt.s32.totalorder %s386_s16, %s386_s16 }
  0x30   : > { %p4298_p1 = scmp.lt.s32.totalorder %s4289_s23, %s4289_s23 }
  0x31   : > { %p4292_p11 = pnand %p4290_p8, %p4228_p13 }
  0x32   : > { %p4299_p2 = por %p4298_p1, %p4297_p3 }
  0x33   : > { %p4293_p0 = pneg %p4292_p11 }
  0x34   : > { %4149 = dma.hbm_to_vmem [thread:$0]  (!%p4519_p12), %s6210_s1, 256, %s4523_s24, [#allocation4], %s4377_s17, %s4377_s17, %s4378_s27  }
  0x35   : > { %p4300_p4 = pnand %p4299_p2, %p4293_p0 }
  0x37   : > { %4303 = shalt.err (!%p4300_p4)
}
  0x38   : > { %4155 = dma.hbm_to_vmem [thread:$0]  (!%p4519_p12), %s6173_s7, 384, %s386_s16, [#allocation7], %s4377_s17, %s4377_s17, %s4378_s27  }
  0x39   : > { %424 = sbr.rel (%p4511_p10) target bundleno = 2075 (0x81b), region = 72 }
  0x3e   : > { %4347 = dma.done.wait (%p4160_p9), [#allocation4], 256  }
  0x3f   : > { %4349 = vsyncadd (%p4160_p9), [#allocation4], 4294967040 }
  0x40   : > { %4351 = dma.done.wait (%p4160_p9), [#allocation7], 400  }
  0x41   : > { %4353 = vsyncadd (%p4160_p9), [#allocation7], 4294966896  ;;  %p476_p13 = scmp.lt.s32.totalorder %s4483_s29, 1  ;;  %vm481_vm0 = vcmask 605184   ;;  %v4379_v0 = vmov 0.0   ;;  %vm484_vm1 = vcmask 599040  }
  0x42   : > { %482 = vst.msk [vmem:[#allocation2] sm:$0xff] %vm481_vm0, %v4379_v0  ;;  %483 = vst.msk [vmem:[#allocation2 + $0x8] sm:$0xff] %vm481_vm0, %v4379_v0  ;;  %s6211_s0 = sld [smem:[#allocation15_spill]]  ;;  %s6185_s17 = smov 19   ;;  %vm505_vm2 = vcmask 138248   ;;  %vm514_vm3 = vcmask 285848  }
  0x43   : > { %486 = vst.msk [vmem:[#allocation2 + $0x18] sm:$0xff] %vm481_vm0, %v4379_v0  ;;  %487 = vst.msk [vmem:[#allocation2 + $0x20] sm:$0xff] %vm481_vm0, %v4379_v0  ;;  %s477_s4 = scalar_select %p476_p13, %s4483_s29, 1  ;;  %vm523_vm4 = vcmask 433448   ;;  %vm532_vm5 = vcmask 581048   ;;  %vm590_vm6 = vcmask 1046528  }
  0x44   : > { %489 = vst.msk [vmem:[#allocation2 + $0x30] sm:$0xff] %vm481_vm0, %v4379_v0  ;;  %490 = vst.msk [vmem:[#allocation2 + $0x38] sm:$0xff] %vm481_vm0, %v4379_v0  ;;  %s6197_s27 = smov 1   ;;  %s6183_s21 = smov 37   ;;  %vm647_vm7 = vcmask 1045504   ;;  %vm3825_vm8 = vcmask 130048  }
  0x45   : > { %492 = vst.msk [vmem:[#allocation2 + $0x48] sm:$0xff] %vm481_vm0, %v4379_v0  ;;  %493 = vst.msk [vmem:[#allocation2 + $0x50] sm:$0xff] %vm481_vm0, %v4379_v0  ;;  %s4130_s20 = sshll.u32 %s477_s4, 4  ;;  %s6181_s22 = smov 55   ;;  %v3951_v24 = vld [vmem:[#allocation3 + $0x3] ss:$0 sm:$0xff] }
  0x46   : > { %485 = vst.msk [vmem:[#allocation2 + $0x10] sm:$0x3] %vm484_vm1, %v4379_v0  ;;  %488 = vst.msk [vmem:[#allocation2 + $0x28] sm:$0x3] %vm484_vm1, %v4379_v0  ;;  %s6187_s23 = smov 127   ;;  %s6191_s15 = smov 126  }
  0x47   : > { %491 = vst.msk [vmem:[#allocation2 + $0x40] sm:$0x3] %vm484_vm1, %v4379_v0  ;;  %494 = vst.msk [vmem:[#allocation2 + $0x58] sm:$0x3] %vm484_vm1, %v4379_v0  ;;  %v3949_v25 = vld [vmem:[#allocation3 + $0x1] ss:$0 sm:$0xff] }
  0x48   : > { %s4571_s16 = scalar_lea.vmem %s6211_s0, %s4130_s20  ;;  %v3948_v26 = vld [vmem:[#allocation3] ss:$0 sm:$0xff]  ;;  %v3950_v34 = vld [vmem:[#allocation3 + $0x2] ss:$0 sm:$0xff]  ;;  %v3954_v42 = vld [vmem:[#allocation3 + $0x6] ss:$0 sm:$0xff] }
  0x49   : > { %v495_v1 = vld [vmem:[%s4571_s16] sm:$0xff]  ;;  %v496_v2 = vld [vmem:[%s4571_s16 + $0x8] sm:$0xff]  ;;  %s6212_s2 = sld [smem:[#allocation17_spill]]  ;;  %s6195_s24 = smov 111  }
  0x4a   : > { %508 = vrot.lane.b32.xlu1 %v495_v1, %s6185_s17  ;;  %499 = vrot.lane.b32.xlu0 %v495_v1, %s6197_s27  ;;  %v3952_v47 = vld [vmem:[#allocation3 + $0x4] ss:$0 sm:$0xff]  ;;  %v3953_v61 = vld [vmem:[#allocation3 + $0x5] ss:$0 sm:$0xff]  ;;  %s6193_s30 = smov 93   ;;  %s6189_s4 = smov 75  }
  0x4b   : > { %s6217_s0 = smov 1   ;;  %s6218_s1 = smov 19  }
  0x4c   : > { %s473_s20 = sand.u32 1, %s4364_s26  }
  0x4e   : > { %510 = vrot.lane.b32.xlu1 %v496_v2, %s6185_s17  ;;  %501 = vrot.lane.b32.xlu0 %v496_v2, %s6197_s27 }
  0x52   : > { %519 = vrot.lane.b32.xlu1 %v496_v2, %s6183_s21  ;;  %517 = vrot.lane.b32.xlu0 %v495_v1, %s6183_s21 }
  0x56   : > { %528 = vrot.lane.b32.xlu1 %v496_v2, %s6181_s22  ;;  %526 = vrot.lane.b32.xlu0 %v495_v1, %s6181_s22 }
  0xbc   : > { %v4583_v3 = vpop.permute.xlu1 %508  ;;  %v4585_v4 = vpop.permute.xlu0 %499 }
  0xbd   : > { %506 = vst.msk [vmem:[#allocation2 + $0x1] sm:$0xff] %vm505_vm2, %v4585_v4 }
  0xbe   : > { %515 = vst.msk [vmem:[#allocation2 + $0x1] sm:$0xff] %vm514_vm3, %v4583_v3 }
  0xc0   : > { %v4591_v5 = vpop.permute.xlu1 %510  ;;  %v4593_v6 = vpop.permute.xlu0 %501 }
  0xc1   : > { %507 = vst.msk [vmem:[#allocation2 + $0x9] sm:$0xff] %vm505_vm2, %v4593_v6 }
  0xc2   : > { %516 = vst.msk [vmem:[#allocation2 + $0x9] sm:$0xff] %vm514_vm3, %v4591_v5 }
  0xc4   : > { %v4599_v7 = vpop.permute.xlu1 %519  ;;  %v4601_v8 = vpop.permute.xlu0 %517 }
  0xc5   : > { %525 = vst.msk [vmem:[#allocation2 + $0x9] sm:$0xff] %vm523_vm4, %v4599_v7  ;;  %524 = vst.msk [vmem:[#allocation2 + $0x1] sm:$0xff] %vm523_vm4, %v4601_v8 }
  0xc8   : > { %v4607_v9 = vpop.permute.xlu1 %528  ;;  %v4609_v10 = vpop.permute.xlu0 %526 }
  0xc9   : > { %534 = vst.msk [vmem:[#allocation2 + $0x9] sm:$0xff] %vm532_vm5, %v4607_v9  ;;  %533 = vst.msk [vmem:[#allocation2 + $0x1] sm:$0xff] %vm532_vm5, %v4609_v10 }
  0xd0   : > { %v535_v11 = vld [vmem:[#allocation2] sm:$0xff]  ;;  %v536_v12 = vld [vmem:[#allocation2 + $0x8] sm:$0xff]  ;;  %v537_v13 = vld [vmem:[#allocation2 + $0x10] sm:$0x3] }
  0xd1   : > { %556 = vrot.lane.b32.xlu1 %v536_v12, %s6187_s23  ;;  %554 = vrot.lane.b32.xlu0 %v535_v11, %s6187_s23  ;;  %v607_v14 = vrot.slane %v536_v12, 1  ;;  %v609_v15 = vrot.slane %v537_v13, 1  ;;  %v606_v16 = vrot.slane %v535_v11, 1  ;;  %v663_v19 = vrot.slane %v536_v12, 2 }
  0xd2   : > { %v665_v20 = vrot.slane %v537_v13, 2  ;;  %v662_v21 = vrot.slane %v535_v11, 2  ;;  %v586_v29 = vmul.f32 %v3951_v24, %v537_v13  ;;  %v585_v30 = vmul.f32 %v3951_v24, %v536_v12 }
  0xd3   : > { %v610_v17 = vsel %vm590_vm6, %v607_v14, %v609_v15  ;;  %v608_v18 = vsel %vm590_vm6, %v606_v16, %v607_v14  ;;  %v584_v31 = vmul.f32 %v3951_v24, %v535_v11  ;;  %v544_v35 = vmul.f32 %v3948_v26, %v536_v12 }
  0xd4   : > { %v666_v22 = vsel %vm647_vm7, %v663_v19, %v665_v20  ;;  %v664_v23 = vsel %vm647_vm7, %v662_v21, %v663_v19  ;;  %v543_v36 = vmul.f32 %v3948_v26, %v535_v11  ;;  %v594_v39 = vrot.slane %v586_v29, 1  ;;  %v3956_v26 = vld [vmem:[#allocation3 + $0x8] ss:$0 sm:$0xff] }
  0xd5   : > { %571 = vrot.lane.b32.xlu1 %v536_v12, %s6191_s15  ;;  %569 = vrot.lane.b32.xlu0 %v535_v11, %s6191_s15  ;;  %v592_v40 = vrot.slane %v585_v30, 1  ;;  %v591_v41 = vrot.slane %v584_v31, 1  ;;  %v642_v50 = vmul.f32 %v3954_v42, %v536_v12  ;;  %v643_v55 = vmul.f32 %v3954_v42, %v537_v13 }
  0xd6   : > { %v641_v56 = vmul.f32 %v3954_v42, %v535_v11 }
  0xd7   : > { %v595_v52 = vsel %vm590_vm6, %v592_v40, %v594_v39  ;;  %v593_v54 = vsel %vm590_vm6, %v591_v41, %v592_v40  ;;  %v649_v0 = vrot.slane %v642_v50, 2  ;;  %v651_v1 = vrot.slane %v643_v55, 2 }
  0xd8   : > { %v648_v2 = vrot.slane %v641_v56, 2 }
  0xd9   : > { %613 = vrot.lane.b32.xlu1 %v610_v17, %s6187_s23  ;;  %611 = vrot.lane.b32.xlu0 %v608_v18, %s6187_s23  ;;  %v652_v13 = vsel %vm647_vm7, %v649_v0, %v651_v1 }
  0xda   : > { %v650_v20 = vsel %vm647_vm7, %v648_v2, %v649_v0 }
  0xdd   : > { %628 = vrot.lane.b32.xlu1 %v610_v17, %s6191_s15  ;;  %626 = vrot.lane.b32.xlu0 %v608_v18, %s6191_s15  ;;  %v3955_v17 = vld [vmem:[#allocation3 + $0x7] ss:$0 sm:$0xff] }
  0xe1   : > { %669 = vrot.lane.b32.xlu1 %v666_v22, %s6187_s23  ;;  %667 = vrot.lane.b32.xlu0 %v664_v23, %s6187_s23 }
  0xe5   : > { %684 = vrot.lane.b32.xlu1 %v666_v22, %s6191_s15  ;;  %682 = vrot.lane.b32.xlu0 %v664_v23, %s6191_s15 }
 0x143   : > { %v557_v27 = vpop.permute.xlu1 %556  ;;  %v555_v28 = vpop.permute.xlu0 %554 }
 0x144   : > { %v561_v32 = vmul.f32 %v3949_v25, %v557_v27  ;;  %v560_v33 = vmul.f32 %v3949_v25, %v555_v28 }
 0x146   : > { %v563_v43 = vadd.f32 %v561_v32, %v544_v35  ;;  %v562_v44 = vadd.f32 %v560_v33, %v543_v36  ;;  %v3957_v33 = vld [vmem:[%s6212_s2] ss:$0 sm:$0xff] }
 0x147   : > { %v572_v37 = vpop.permute.xlu1 %571  ;;  %v570_v38 = vpop.permute.xlu0 %569 }
 0x148   : > { %v576_v45 = vmul.f32 %v3950_v34, %v572_v37  ;;  %v575_v46 = vmul.f32 %v3950_v34, %v570_v38 }
 0x14a   : > { %v578_v48 = vadd.f32 %v576_v45, %v563_v43  ;;  %v577_v49 = vadd.f32 %v575_v46, %v562_v44 }
 0x14b   : > { %v614_v51 = vpop.permute.xlu1 %613  ;;  %v612_v53 = vpop.permute.xlu0 %611 }
 0x14c   : > { %v599_v57 = vadd.f32 %v595_v52, %v578_v48  ;;  %v618_v58 = vmul.f32 %v3952_v47, %v614_v51  ;;  %v598_v59 = vadd.f32 %v593_v54, %v577_v49  ;;  %v617_v60 = vmul.f32 %v3952_v47, %v612_v53 }
 0x14e   : > { %v620_v14 = vadd.f32 %v618_v58, %v599_v57  ;;  %v619_v12 = vadd.f32 %v617_v60, %v598_v59 }
 0x14f   : > { %v629_v62 = vpop.permute.xlu1 %628  ;;  %v627_v63 = vpop.permute.xlu0 %626 }
 0x150   : > { %v633_v15 = vmul.f32 %v3953_v61, %v629_v62  ;;  %v632_v16 = vmul.f32 %v3953_v61, %v627_v63 }
 0x152   : > { %v635_v18 = vadd.f32 %v633_v15, %v620_v14  ;;  %v634_v19 = vadd.f32 %v632_v16, %v619_v12 }
 0x153   : > { %v670_v11 = vpop.permute.xlu1 %669  ;;  %v668_v21 = vpop.permute.xlu0 %667 }
 0x154   : > { %v656_v22 = vadd.f32 %v652_v13, %v635_v18  ;;  %v674_v23 = vmul.f32 %v3955_v17, %v670_v11  ;;  %v655_v24 = vadd.f32 %v650_v20, %v634_v19  ;;  %v673_v25 = vmul.f32 %v3955_v17, %v668_v21 }
 0x156   : > { %v676_v29 = vadd.f32 %v674_v23, %v656_v22  ;;  %v675_v30 = vadd.f32 %v673_v25, %v655_v24 }
 0x157   : > { %v685_v27 = vpop.permute.xlu1 %684  ;;  %v683_v28 = vpop.permute.xlu0 %682 }
 0x158   : > { %v689_v31 = vmul.f32 %v3956_v26, %v685_v27  ;;  %v688_v32 = vmul.f32 %v3956_v26, %v683_v28 }
 0x15a   : > { %v691_v34 = vadd.f32 %v689_v31, %v676_v29  ;;  %v690_v35 = vadd.f32 %v688_v32, %v675_v30 }
 0x15c   : > { %v700_v36 = vadd.f32 %v3957_v33, %v691_v34  ;;  %v699_v37 = vadd.f32 %v3957_v33, %v690_v35 }
 0x15e   : > { %v702_v38 = vmul.f32 0.2, %v700_v36  ;;  %v701_v39 = vmul.f32 0.2, %v699_v37 }
 0x160   : > { %v704_v40 = vmax.f32 %v700_v36, %v702_v38  ;;  %v703_v41 = vmax.f32 %v699_v37, %v701_v39 }
 0x162   : > { %709 = vrot.lane.b32.xlu1 %v704_v40, %s6197_s27  ;;  %707 = vrot.lane.b32.xlu0 %v703_v41, %s6197_s27 }
 0x166   : > { %717 = vrot.lane.b32.xlu1 %v704_v40, %s6185_s17  ;;  %715 = vrot.lane.b32.xlu0 %v703_v41, %s6185_s17  ;;  %s3945_s17 = sshll.u32 %s473_s20, 4 }
 0x16a   : > { %725 = vrot.lane.b32.xlu1 %v704_v40, %s6183_s21  ;;  %723 = vrot.lane.b32.xlu0 %v703_v41, %s6183_s21  ;;  %s6221_s21 = smov 111  }
 0x16e   : > { %741 = vrot.lane.b32.xlu1 %v704_v40, %s6195_s24  ;;  %739 = vrot.lane.b32.xlu0 %v703_v41, %s6195_s24 }
 0x172   : > { %733 = vrot.lane.b32.xlu1 %v704_v40, %s6181_s22  ;;  %731 = vrot.lane.b32.xlu0 %v703_v41, %s6181_s22  ;;  %s6219_s22 = smov 37  }
 0x176   : > { %756 = vrot.lane.b32.xlu1 %v704_v40, %s6193_s30  ;;  %754 = vrot.lane.b32.xlu0 %v703_v41, %s6193_s30  ;;  %s6216_s30 = smov 126  }
 0x17a   : > { %771 = vrot.lane.b32.xlu1 %v704_v40, %s6189_s4  ;;  %769 = vrot.lane.b32.xlu0 %v703_v41, %s6189_s4  ;;  %s6214_s4 = smov 75  }
 0x1d4   : > { %v710_v42 = vpop.permute.xlu1 %709  ;;  %v708_v43 = vpop.permute.xlu0 %707 }
 0x1d5   : > { %714 = vst.msk [vmem:[#allocation2 + $0x9] sm:$0xff] %vm505_vm2, %v710_v42  ;;  %713 = vst.msk [vmem:[#allocation2 + $0x1] sm:$0xff] %vm505_vm2, %v708_v43 }
 0x1d8   : > { %v718_v44 = vpop.permute.xlu1 %717  ;;  %v716_v45 = vpop.permute.xlu0 %715 }
 0x1d9   : > { %722 = vst.msk [vmem:[#allocation2 + $0x9] sm:$0xff] %vm514_vm3, %v718_v44  ;;  %721 = vst.msk [vmem:[#allocation2 + $0x1] sm:$0xff] %vm514_vm3, %v716_v45 }
 0x1dc   : > { %v726_v46 = vpop.permute.xlu1 %725  ;;  %v724_v47 = vpop.permute.xlu0 %723 }
 0x1dd   : > { %730 = vst.msk [vmem:[#allocation2 + $0x9] sm:$0xff] %vm523_vm4, %v726_v46  ;;  %729 = vst.msk [vmem:[#allocation2 + $0x1] sm:$0xff] %vm523_vm4, %v724_v47 }
 0x1e0   : > { %v742_v48 = vpop.permute.xlu1 %741  ;;  %v740_v49 = vpop.permute.xlu0 %739 }
 0x1e1   : > { %747 = vst.msk [vmem:[#allocation2 + $0x21] sm:$0xff] %vm505_vm2, %v742_v48  ;;  %746 = vst.msk [vmem:[#allocation2 + $0x19] sm:$0xff] %vm505_vm2, %v740_v49 }
 0x1e2   : > { %749 = vst.msk [vmem:[#allocation2 + $0x21] sm:$0xff] %vm514_vm3, %v710_v42  ;;  %748 = vst.msk [vmem:[#allocation2 + $0x19] sm:$0xff] %vm514_vm3, %v708_v43 }
 0x1e3   : > { %751 = vst.msk [vmem:[#allocation2 + $0x21] sm:$0xff] %vm523_vm4, %v718_v44  ;;  %750 = vst.msk [vmem:[#allocation2 + $0x19] sm:$0xff] %vm523_vm4, %v716_v45 }
 0x1e4   : > { %753 = vst.msk [vmem:[#allocation2 + $0x21] sm:$0xff] %vm532_vm5, %v726_v46  ;;  %752 = vst.msk [vmem:[#allocation2 + $0x19] sm:$0xff] %vm532_vm5, %v724_v47  ;;  %v734_v50 = vpop.permute.xlu1 %733  ;;  %v732_v51 = vpop.permute.xlu0 %731 }
 0x1e5   : > { %738 = vst.msk [vmem:[#allocation2 + $0x9] sm:$0xff] %vm532_vm5, %v734_v50  ;;  %737 = vst.msk [vmem:[#allocation2 + $0x1] sm:$0xff] %vm532_vm5, %v732_v51 }
 0x1e8   : > { %v757_v52 = vpop.permute.xlu1 %756  ;;  %v755_v53 = vpop.permute.xlu0 %754 }
 0x1e9   : > { %762 = vst.msk [vmem:[#allocation2 + $0x39] sm:$0xff] %vm505_vm2, %v757_v52  ;;  %761 = vst.msk [vmem:[#allocation2 + $0x31] sm:$0xff] %vm505_vm2, %v755_v53 }
 0x1ea   : > { %764 = vst.msk [vmem:[#allocation2 + $0x39] sm:$0xff] %vm514_vm3, %v742_v48  ;;  %763 = vst.msk [vmem:[#allocation2 + $0x31] sm:$0xff] %vm514_vm3, %v740_v49 }
 0x1eb   : > { %766 = vst.msk [vmem:[#allocation2 + $0x39] sm:$0xff] %vm523_vm4, %v710_v42  ;;  %765 = vst.msk [vmem:[#allocation2 + $0x31] sm:$0xff] %vm523_vm4, %v708_v43  ;;  %v4690_v58 = vld [vmem:[#allocation2 + $0x18] sm:$0xff]  ;;  %v4692_v59 = vld [vmem:[#allocation2 + $0x20] sm:$0xff] }
 0x1ec   : > { %v4674_v54 = vld [vmem:[#allocation2] sm:$0xff]  ;;  %v4676_v55 = vld [vmem:[#allocation2 + $0x8] sm:$0xff]  ;;  %768 = vst.msk [vmem:[#allocation2 + $0x39] sm:$0xff] %vm532_vm5, %v718_v44  ;;  %767 = vst.msk [vmem:[#allocation2 + $0x31] sm:$0xff] %vm532_vm5, %v716_v45  ;;  %v772_v56 = vpop.permute.xlu1 %771  ;;  %v770_v57 = vpop.permute.xlu0 %769  ;;  %v1068_v15 = vrot.slane %v4692_v59, 1  ;;  %v1067_v19 = vrot.slane %v4690_v58, 1 }
 0x1ed   : > { %777 = vst.msk [vmem:[#allocation2 + $0x51] sm:$0xff] %vm505_vm2, %v772_v56  ;;  %776 = vst.msk [vmem:[#allocation2 + $0x49] sm:$0xff] %vm505_vm2, %v770_v57  ;;  %841 = vrot.lane.b32.xlu1 %v4676_v55, %s6187_s23  ;;  %839 = vrot.lane.b32.xlu0 %v4674_v54, %s6187_s23  ;;  %v4724_v0 = vld [vmem:[#allocation2 + $0x10] sm:$0x3]  ;;  %v1047_v1 = vrot.slane %v4676_v55, 1  ;;  %v1046_v14 = vrot.slane %v4674_v54, 1 }
 0x1ee   : > { %779 = vst.msk [vmem:[#allocation2 + $0x51] sm:$0xff] %vm514_vm3, %v757_v52  ;;  %778 = vst.msk [vmem:[#allocation2 + $0x49] sm:$0xff] %vm514_vm3, %v755_v53  ;;  %v1049_v2 = vrot.slane %v4724_v0, 1  ;;  %v4733_v12 = vld [vmem:[#allocation2 + $0x28] sm:$0x3]  ;;  %v1069_v22 = vsel %vm590_vm6, %v1067_v19, %v1068_v15  ;;  %v1270_v32 = vrot.slane %v4676_v55, 2 }
 0x1ef   : > { %781 = vst.msk [vmem:[#allocation2 + $0x51] sm:$0xff] %vm523_vm4, %v742_v48  ;;  %780 = vst.msk [vmem:[#allocation2 + $0x49] sm:$0xff] %vm523_vm4, %v740_v49  ;;  %v1048_v17 = vsel %vm590_vm6, %v1046_v14, %v1047_v1  ;;  %v1070_v18 = vrot.slane %v4733_v12, 1  ;;  %v1272_v33 = vrot.slane %v4724_v0, 2  ;;  %v1269_v34 = vrot.slane %v4674_v54, 2 }
 0x1f0   : > { %783 = vst.msk [vmem:[#allocation2 + $0x51] sm:$0xff] %vm532_vm5, %v710_v42  ;;  %782 = vst.msk [vmem:[#allocation2 + $0x49] sm:$0xff] %vm532_vm5, %v708_v43  ;;  %v1050_v16 = vsel %vm590_vm6, %v1047_v1, %v1049_v2  ;;  %v1290_v35 = vrot.slane %v4692_v59, 2  ;;  %v1292_v38 = vrot.slane %v4733_v12, 2  ;;  %v1289_v39 = vrot.slane %v4690_v58, 2 }
 0x1f1   : > { %858 = vrot.lane.b32.xlu1 %v4692_v59, %s6187_s23  ;;  %856 = vrot.lane.b32.xlu0 %v4690_v58, %s6187_s23  ;;  %v1071_v21 = vsel %vm590_vm6, %v1068_v15, %v1070_v18  ;;  %v1273_v36 = vsel %vm647_vm7, %v1270_v32, %v1272_v33  ;;  %v1271_v37 = vsel %vm647_vm7, %v1269_v34, %v1270_v32  ;;  %v3958_v56 = vld [vmem:[%s6169_s3] ss:$0 sm:$0xff]  ;;  %v3959_v57 = vld [vmem:[%s6169_s3 + $0x1] ss:$0 sm:$0xff] }
 0x1f2   : > { %v1293_v42 = vsel %vm647_vm7, %v1290_v35, %v1292_v38  ;;  %v1291_v43 = vsel %vm647_vm7, %v1289_v39, %v1290_v35  ;;  %v3960_v14 = vld [vmem:[%s6169_s3 + $0x2] ss:$0 sm:$0xff]  ;;  %v811_v15 = vmul.f32 %v3959_v57, %v4692_v59  ;;  %v810_v18 = vmul.f32 %v3959_v57, %v4690_v58  ;;  %v3961_v19 = vld [vmem:[%s6169_s3 + $0x3] ss:$0 sm:$0xff]  ;;  %v3967_v57 = vld [vmem:[%s6169_s3 + $0x9] ss:$0 sm:$0xff] }
 0x1f3   : > { %v4700_v60 = vld [vmem:[#allocation2 + $0x38] sm:$0xff]  ;;  %v4702_v61 = vld [vmem:[#allocation2 + $0x30] sm:$0xff]  ;;  %v4744_v13 = vld [vmem:[#allocation2 + $0x40] sm:$0x3] }
 0x1f4   : > { %v1089_v11 = vrot.slane %v4700_v60, 1  ;;  %v1091_v20 = vrot.slane %v4744_v13, 1  ;;  %v1088_v23 = vrot.slane %v4702_v61, 1  ;;  %v1310_v40 = vrot.slane %v4700_v60, 2 }
 0x1f5   : > { %875 = vrot.lane.b32.xlu1 %v4700_v60, %s6187_s23  ;;  %873 = vrot.lane.b32.xlu0 %v4702_v61, %s6187_s23  ;;  %v1312_v41 = vrot.slane %v4744_v13, 2  ;;  %v1309_v44 = vrot.slane %v4702_v61, 2 }
 0x1f6   : > { %v1092_v25 = vsel %vm590_vm6, %v1089_v11, %v1091_v20  ;;  %v1090_v26 = vsel %vm590_vm6, %v1088_v23, %v1089_v11  ;;  %v3962_v23 = vld [vmem:[%s6169_s3 + $0x4] ss:$0 sm:$0xff] }
 0x1f7   : > { %v4708_v62 = vld [vmem:[#allocation2 + $0x50] sm:$0xff]  ;;  %v4710_v63 = vld [vmem:[#allocation2 + $0x48] sm:$0xff]  ;;  %v4755_v24 = vld [vmem:[#allocation2 + $0x58] sm:$0x3]  ;;  %v1313_v45 = vsel %vm647_vm7, %v1310_v40, %v1312_v41  ;;  %v1311_v46 = vsel %vm647_vm7, %v1309_v44, %v1310_v40 }
 0x1f8   : > { %v1110_v27 = vrot.slane %v4708_v62, 1  ;;  %v1112_v28 = vrot.slane %v4755_v24, 1  ;;  %v1109_v29 = vrot.slane %v4710_v63, 1  ;;  %v1330_v47 = vrot.slane %v4708_v62, 2  ;;  %v3965_v41 = vld [vmem:[%s6169_s3 + $0x7] ss:$0 sm:$0xff] }
 0x1f9   : > { %892 = vrot.lane.b32.xlu1 %v4708_v62, %s6187_s23  ;;  %890 = vrot.lane.b32.xlu0 %v4710_v63, %s6187_s23  ;;  %v1332_v48 = vrot.slane %v4755_v24, 2  ;;  %v1329_v49 = vrot.slane %v4710_v63, 2 }
 0x1fa   : > { %v1113_v30 = vsel %vm590_vm6, %v1110_v27, %v1112_v28  ;;  %v1111_v31 = vsel %vm590_vm6, %v1109_v29, %v1110_v27  ;;  %v828_v28 = vmul.f32 %v3961_v19, %v4710_v63  ;;  %v3963_v29 = vld [vmem:[%s6169_s3 + $0x5] ss:$0 sm:$0xff] }
 0x1fb   : > { %v1333_v50 = vsel %vm647_vm7, %v1330_v47, %v1332_v48  ;;  %v1331_v51 = vsel %vm647_vm7, %v1329_v49, %v1330_v47  ;;  %v3966_v48 = vld [vmem:[%s6169_s3 + $0x8] ss:$0 sm:$0xff] }
 0x1fd   : > { %907 = vrot.lane.b32.xlu1 %v4676_v55, %s6191_s15  ;;  %905 = vrot.lane.b32.xlu0 %v4674_v54, %s6191_s15 }
 0x201   : > { %922 = vrot.lane.b32.xlu1 %v4692_v59, %s6191_s15  ;;  %920 = vrot.lane.b32.xlu0 %v4690_v58, %s6191_s15 }
 0x205   : > { %937 = vrot.lane.b32.xlu1 %v4700_v60, %s6191_s15  ;;  %935 = vrot.lane.b32.xlu0 %v4702_v61, %s6191_s15 }
 0x209   : > { %952 = vrot.lane.b32.xlu1 %v4708_v62, %s6191_s15  ;;  %950 = vrot.lane.b32.xlu0 %v4710_v63, %s6191_s15 }
 0x20d   : > { %1053 = vrot.lane.b32.xlu1 %v1050_v16, %s6187_s23  ;;  %1051 = vrot.lane.b32.xlu0 %v1048_v17, %s6187_s23 }
 0x211   : > { %1074 = vrot.lane.b32.xlu1 %v1071_v21, %s6187_s23  ;;  %1072 = vrot.lane.b32.xlu0 %v1069_v22, %s6187_s23 }
 0x215   : > { %1095 = vrot.lane.b32.xlu1 %v1092_v25, %s6187_s23  ;;  %1093 = vrot.lane.b32.xlu0 %v1090_v26, %s6187_s23 }
 0x219   : > { %1116 = vrot.lane.b32.xlu1 %v1113_v30, %s6187_s23  ;;  %1114 = vrot.lane.b32.xlu0 %v1111_v31, %s6187_s23 }
 0x21d   : > { %1131 = vrot.lane.b32.xlu1 %v1050_v16, %s6191_s15  ;;  %1129 = vrot.lane.b32.xlu0 %v1048_v17, %s6191_s15  ;;  %v802_v16 = vmul.f32 %v3958_v56, %v4676_v55  ;;  %v801_v17 = vmul.f32 %v3958_v56, %v4674_v54  ;;  %v3971_v56 = vld [vmem:[%s6169_s3 + $0xd] ss:$0 sm:$0xff] }
 0x21f   : > { %v812_v27 = vadd.f32 %v810_v18, %v801_v17  ;;  %v3968_v18 = vld [vmem:[%s6169_s3 + $0xa] ss:$0 sm:$0xff] }
 0x221   : > { %1146 = vrot.lane.b32.xlu1 %v1071_v21, %s6191_s15  ;;  %1144 = vrot.lane.b32.xlu0 %v1069_v22, %s6191_s15  ;;  %v820_v21 = vmul.f32 %v3960_v14, %v4700_v60  ;;  %v819_v22 = vmul.f32 %v3960_v14, %v4702_v61 }
 0x223   : > { %v821_v34 = vadd.f32 %v819_v22, %v812_v27 }
 0x225   : > { %1161 = vrot.lane.b32.xlu1 %v1092_v25, %s6191_s15  ;;  %1159 = vrot.lane.b32.xlu0 %v1090_v26, %s6191_s15  ;;  %v813_v25 = vadd.f32 %v811_v15, %v802_v16  ;;  %v829_v26 = vmul.f32 %v3961_v19, %v4708_v62  ;;  %v830_v38 = vadd.f32 %v828_v28, %v821_v34  ;;  %v3972_v34 = vld [vmem:[%s6169_s3 + $0xe] ss:$0 sm:$0xff] }
 0x227   : > { %v822_v32 = vadd.f32 %v820_v21, %v813_v25  ;;  %v987_v21 = vmul.f32 %v3971_v56, %v4733_v12 }
 0x229   : > { %1176 = vrot.lane.b32.xlu1 %v1113_v30, %s6191_s15  ;;  %1174 = vrot.lane.b32.xlu0 %v1111_v31, %s6191_s15 }
 0x22d   : > { %1276 = vrot.lane.b32.xlu1 %v1273_v36, %s6187_s23  ;;  %1274 = vrot.lane.b32.xlu0 %v1271_v37, %s6187_s23 }
 0x231   : > { %1296 = vrot.lane.b32.xlu1 %v1293_v42, %s6187_s23  ;;  %1294 = vrot.lane.b32.xlu0 %v1291_v43, %s6187_s23 }
 0x235   : > { %1316 = vrot.lane.b32.xlu1 %v1313_v45, %s6187_s23  ;;  %1314 = vrot.lane.b32.xlu0 %v1311_v46, %s6187_s23 }
 0x239   : > { %1336 = vrot.lane.b32.xlu1 %v1333_v50, %s6187_s23  ;;  %1334 = vrot.lane.b32.xlu0 %v1331_v51, %s6187_s23  ;;  %s6213_s23 = smov 93  }
 0x23d   : > { %1351 = vrot.lane.b32.xlu1 %v1273_v36, %s6191_s15  ;;  %1349 = vrot.lane.b32.xlu0 %v1271_v37, %s6191_s15  ;;  %v3964_v36 = vld [vmem:[%s6169_s3 + $0x6] ss:$0 sm:$0xff]  ;;  %v831_v37 = vadd.f32 %v829_v26, %v822_v32 }
 0x241   : > { %1366 = vrot.lane.b32.xlu1 %v1293_v42, %s6191_s15  ;;  %1364 = vrot.lane.b32.xlu0 %v1291_v43, %s6191_s15 }
 0x245   : > { %1381 = vrot.lane.b32.xlu1 %v1313_v45, %s6191_s15  ;;  %1379 = vrot.lane.b32.xlu0 %v1311_v46, %s6191_s15 }
 0x249   : > { %1396 = vrot.lane.b32.xlu1 %v1333_v50, %s6191_s15  ;;  %1394 = vrot.lane.b32.xlu0 %v1331_v51, %s6191_s15  ;;  %s6215_s15 = smov 127  }
 0x25f   : > { %v842_v52 = vpop.permute.xlu1 %841  ;;  %v840_v53 = vpop.permute.xlu0 %839 }
 0x260   : > { %v846_v33 = vmul.f32 %v3962_v23, %v842_v52  ;;  %v845_v35 = vmul.f32 %v3962_v23, %v840_v53  ;;  %v3970_v53 = vld [vmem:[%s6169_s3 + $0xc] ss:$0 sm:$0xff] }
 0x261   : > { %v966_v19 = vmul.f32 %v3970_v53, %v4676_v55 }
 0x262   : > { %v848_v44 = vadd.f32 %v846_v33, %v831_v37  ;;  %v847_v45 = vadd.f32 %v845_v35, %v830_v38  ;;  %v3969_v35 = vld [vmem:[%s6169_s3 + $0xb] ss:$0 sm:$0xff]  ;;  %v985_v38 = vmul.f32 %v3971_v56, %v4690_v58 }
 0x263   : > { %v859_v1 = vpop.permute.xlu1 %858  ;;  %v857_v2 = vpop.permute.xlu0 %856 }
 0x264   : > { %v863_v39 = vmul.f32 %v3963_v29, %v859_v1  ;;  %v862_v40 = vmul.f32 %v3963_v29, %v857_v2  ;;  %v965_v29 = vmul.f32 %v3970_v53, %v4674_v54 }
 0x266   : > { %v865_v49 = vadd.f32 %v863_v39, %v848_v44  ;;  %v864_v50 = vadd.f32 %v862_v40, %v847_v45  ;;  %v971_v45 = vrot.slane %v965_v29, 1 }
 0x267   : > { %v876_v11 = vpop.permute.xlu1 %875  ;;  %v874_v20 = vpop.permute.xlu0 %873 }
 0x268   : > { %v880_v46 = vmul.f32 %v3964_v36, %v876_v11  ;;  %v879_v47 = vmul.f32 %v3964_v36, %v874_v20  ;;  %v967_v11 = vmul.f32 %v3970_v53, %v4724_v0  ;;  %v986_v20 = vmul.f32 %v3971_v56, %v4692_v59 }
 0x269   : > { %v972_v36 = vrot.slane %v966_v19, 1  ;;  %v991_v56 = vrot.slane %v985_v38, 1  ;;  %v3974_v38 = vld [vmem:[%s6169_s3 + $0x10] ss:$0 sm:$0xff] }
 0x26a   : > { %v882_v14 = vadd.f32 %v880_v46, %v865_v49  ;;  %v881_v15 = vadd.f32 %v879_v47, %v864_v50  ;;  %v974_v37 = vrot.slane %v967_v11, 1  ;;  %v1006_v47 = vmul.f32 %v3972_v34, %v4700_v60 }
 0x26b   : > { %v893_v30 = vpop.permute.xlu1 %892  ;;  %v891_v31 = vpop.permute.xlu0 %890  ;;  %v1005_v49 = vmul.f32 %v3972_v34, %v4702_v61 }
 0x26c   : > { %v897_v51 = vmul.f32 %v3965_v41, %v893_v30  ;;  %v896_v52 = vmul.f32 %v3965_v41, %v891_v31  ;;  %v992_v41 = vrot.slane %v986_v20, 1 }
 0x26d   : > { %v1011_v20 = vrot.slane %v1005_v49, 1 }
 0x26e   : > { %v899_v22 = vadd.f32 %v897_v51, %v882_v14  ;;  %v898_v23 = vadd.f32 %v896_v52, %v881_v15  ;;  %v975_v14 = vsel %vm590_vm6, %v972_v36, %v974_v37 }
 0x26f   : > { %v908_v42 = vpop.permute.xlu1 %907  ;;  %v906_v43 = vpop.permute.xlu0 %905 }
 0x270   : > { %v912_v16 = vmul.f32 %v3966_v48, %v908_v42  ;;  %v911_v17 = vmul.f32 %v3966_v48, %v906_v43  ;;  %v994_v42 = vrot.slane %v987_v21, 1  ;;  %v3973_v43 = vld [vmem:[%s6169_s3 + $0xf] ss:$0 sm:$0xff]  ;;  %v1007_v48 = vmul.f32 %v3972_v34, %v4744_v13 }
 0x272   : > { %v914_v30 = vadd.f32 %v912_v16, %v899_v22  ;;  %v913_v31 = vadd.f32 %v911_v17, %v898_v23  ;;  %v973_v17 = vsel %vm590_vm6, %v971_v45, %v972_v36  ;;  %v1014_v19 = vrot.slane %v1007_v48, 1 }
 0x273   : > { %v923_v1 = vpop.permute.xlu1 %922  ;;  %v921_v2 = vpop.permute.xlu0 %920  ;;  %v995_v22 = vsel %vm590_vm6, %v992_v41, %v994_v42 }
 0x274   : > { %v927_v25 = vmul.f32 %v3967_v57, %v923_v1  ;;  %v926_v26 = vmul.f32 %v3967_v57, %v921_v2  ;;  %v1027_v57 = vmul.f32 %v3973_v43, %v4755_v24  ;;  %v1026_v1 = vmul.f32 %v3973_v43, %v4708_v62 }
 0x275   : > { %v1025_v2 = vmul.f32 %v3973_v43, %v4710_v63 }
 0x276   : > { %v929_v39 = vadd.f32 %v927_v25, %v914_v30  ;;  %v928_v40 = vadd.f32 %v926_v26, %v913_v31  ;;  %v993_v26 = vsel %vm590_vm6, %v991_v56, %v992_v41  ;;  %v3976_v56 = vld [vmem:[%s6169_s3 + $0x12] ss:$0 sm:$0xff] }
 0x277   : > { %v938_v27 = vpop.permute.xlu1 %937  ;;  %v936_v28 = vpop.permute.xlu0 %935  ;;  %v1031_v29 = vrot.slane %v1025_v2, 1  ;;  %v3977_v2 = vld [vmem:[%s6169_s3 + $0x13] ss:$0 sm:$0xff] }
 0x278   : > { %v942_v32 = vmul.f32 %v3968_v18, %v938_v27  ;;  %v941_v33 = vmul.f32 %v3968_v18, %v936_v28  ;;  %v1012_v18 = vrot.slane %v1006_v47, 1  ;;  %v1034_v27 = vrot.slane %v1027_v57, 1  ;;  %v3975_v47 = vld [vmem:[%s6169_s3 + $0x11] ss:$0 sm:$0xff] }
 0x279   : > { %v1032_v28 = vrot.slane %v1026_v1, 1 }
 0x27a   : > { %v944_v50 = vadd.f32 %v942_v32, %v929_v39  ;;  %v943_v51 = vadd.f32 %v941_v33, %v928_v40  ;;  %v1015_v32 = vsel %vm590_vm6, %v1012_v18, %v1014_v19  ;;  %v1013_v33 = vsel %vm590_vm6, %v1011_v20, %v1012_v18  ;;  %v3978_v18 = vld [vmem:[%s6169_s3 + $0x14] ss:$0 sm:$0xff] }
 0x27b   : > { %v953_v44 = vpop.permute.xlu1 %952  ;;  %v951_v46 = vpop.permute.xlu0 %950  ;;  %v1035_v39 = vsel %vm590_vm6, %v1032_v28, %v1034_v27  ;;  %v1033_v40 = vsel %vm590_vm6, %v1031_v29, %v1032_v28 }
 0x27c   : > { %v957_v52 = vmul.f32 %v3969_v35, %v953_v44  ;;  %v956_v53 = vmul.f32 %v3969_v35, %v951_v46 }
 0x27e   : > { %v959_v15 = vadd.f32 %v957_v52, %v944_v50  ;;  %v958_v16 = vadd.f32 %v956_v53, %v943_v51 }
 0x27f   : > { %v1054_v11 = vpop.permute.xlu1 %1053  ;;  %v1052_v21 = vpop.permute.xlu0 %1051 }
 0x280   : > { %v979_v23 = vadd.f32 %v975_v14, %v959_v15  ;;  %v978_v25 = vadd.f32 %v973_v17, %v958_v16  ;;  %v1058_v45 = vmul.f32 %v3974_v38, %v1054_v11  ;;  %v1057_v46 = vmul.f32 %v3974_v38, %v1052_v21 }
 0x282   : > { %v999_v30 = vadd.f32 %v995_v22, %v979_v23  ;;  %v998_v31 = vadd.f32 %v993_v26, %v978_v25  ;;  %v3982_v22 = vld [vmem:[%s6169_s3 + $0x18] ss:$0 sm:$0xff]  ;;  %v3983_v23 = vld [vmem:[%s6169_s3 + $0x19] ss:$0 sm:$0xff]  ;;  %v3979_v25 = vld [vmem:[%s6169_s3 + $0x15] ss:$0 sm:$0xff] }
 0x283   : > { %v1075_v34 = vpop.permute.xlu1 %1074  ;;  %v1073_v35 = vpop.permute.xlu0 %1072 }
 0x284   : > { %v1019_v36 = vadd.f32 %v1015_v32, %v999_v30  ;;  %v1018_v37 = vadd.f32 %v1013_v33, %v998_v31  ;;  %v1079_v52 = vmul.f32 %v3975_v47, %v1075_v34  ;;  %v1078_v53 = vmul.f32 %v3975_v47, %v1073_v35  ;;  %v3980_v30 = vld [vmem:[%s6169_s3 + $0x16] ss:$0 sm:$0xff] }
 0x285   : > { %v1190_v31 = vmul.f32 %v3982_v22, %v4676_v55  ;;  %v1191_v32 = vmul.f32 %v3982_v22, %v4724_v0  ;;  %v1210_v33 = vmul.f32 %v3983_v23, %v4692_v59  ;;  %v1211_v34 = vmul.f32 %v3983_v23, %v4733_v12  ;;  %v3984_v55 = vld [vmem:[%s6169_s3 + $0x1a] ss:$0 sm:$0xff]  ;;  %v3981_v59 = vld [vmem:[%s6169_s3 + $0x17] ss:$0 sm:$0xff] }
 0x286   : > { %v1039_v41 = vadd.f32 %v1035_v39, %v1019_v36  ;;  %v1038_v42 = vadd.f32 %v1033_v40, %v1018_v37 }
 0x287   : > { %v1096_v43 = vpop.permute.xlu1 %1095  ;;  %v1094_v44 = vpop.permute.xlu0 %1093  ;;  %v1196_v0 = vrot.slane %v1190_v31, 2  ;;  %v1198_v12 = vrot.slane %v1191_v32, 2 }
 0x288   : > { %v1060_v48 = vadd.f32 %v1058_v45, %v1039_v41  ;;  %v1059_v49 = vadd.f32 %v1057_v46, %v1038_v42  ;;  %v1100_v16 = vmul.f32 %v3976_v56, %v1096_v43  ;;  %v1099_v17 = vmul.f32 %v3976_v56, %v1094_v44 }
 0x289   : > { %v1189_v41 = vmul.f32 %v3982_v22, %v4674_v54  ;;  %v1209_v46 = vmul.f32 %v3983_v23, %v4690_v58  ;;  %v1218_v54 = vrot.slane %v1211_v34, 2  ;;  %v1230_v56 = vmul.f32 %v3984_v55, %v4700_v60 }
 0x28a   : > { %v1081_v57 = vadd.f32 %v1079_v52, %v1060_v48  ;;  %v1080_v1 = vadd.f32 %v1078_v53, %v1059_v49  ;;  %v1216_v49 = vrot.slane %v1210_v33, 2 }
 0x28b   : > { %v1117_v50 = vpop.permute.xlu1 %1116  ;;  %v1115_v51 = vpop.permute.xlu0 %1114  ;;  %v1195_v52 = vrot.slane %v1189_v41, 2 }
 0x28c   : > { %v1102_v19 = vadd.f32 %v1100_v16, %v1081_v57  ;;  %v1101_v11 = vadd.f32 %v1099_v17, %v1080_v1  ;;  %v1121_v20 = vmul.f32 %v3977_v2, %v1117_v50  ;;  %v1120_v21 = vmul.f32 %v3977_v2, %v1115_v51  ;;  %v3985_v50 = vld [vmem:[%s6169_s3 + $0x1b] ss:$0 sm:$0xff] }
 0x28d   : > { %v1231_v57 = vmul.f32 %v3984_v55, %v4744_v13  ;;  %v1229_v1 = vmul.f32 %v3984_v55, %v4702_v61  ;;  %v1215_v16 = vrot.slane %v1209_v46, 2  ;;  %v1250_v17 = vmul.f32 %v3985_v50, %v4708_v62 }
 0x28e   : > { %v1123_v35 = vadd.f32 %v1121_v20, %v1102_v19  ;;  %v1122_v36 = vadd.f32 %v1120_v21, %v1101_v11  ;;  %v1249_v19 = vmul.f32 %v3985_v50, %v4710_v63  ;;  %v1199_v11 = vsel %vm647_vm7, %v1196_v0, %v1198_v12 }
 0x28f   : > { %v1132_v14 = vpop.permute.xlu1 %1131  ;;  %v1130_v15 = vpop.permute.xlu0 %1129  ;;  %v1197_v60 = vsel %vm647_vm7, %v1195_v52, %v1196_v0  ;;  %v1236_v13 = vrot.slane %v1230_v56, 2  ;;  %v1238_v22 = vrot.slane %v1231_v57, 2  ;;  %v1235_v23 = vrot.slane %v1229_v1, 2  ;;  %v3989_v52 = vld [vmem:[%s6169_s3 + $0x1f] ss:$0 sm:$0xff] }
 0x290   : > { %v1136_v28 = vmul.f32 %v3978_v18, %v1132_v14  ;;  %v1135_v29 = vmul.f32 %v3978_v18, %v1130_v15  ;;  %v1251_v18 = vmul.f32 %v3985_v50, %v4755_v24  ;;  %v1217_v62 = vsel %vm647_vm7, %v1215_v16, %v1216_v49 }
 0x291   : > { %v1256_v24 = vrot.slane %v1250_v17, 2  ;;  %v1255_v63 = vrot.slane %v1249_v19, 2  ;;  %v1239_v32 = vsel %vm647_vm7, %v1236_v13, %v1238_v22  ;;  %v1237_v33 = vsel %vm647_vm7, %v1235_v23, %v1236_v13  ;;  %v3991_v17 = vld [vmem:[%s6169_s3 + $0x21] ss:$0 sm:$0xff] }
 0x292   : > { %v1138_v42 = vadd.f32 %v1136_v28, %v1123_v35  ;;  %v1137_v43 = vadd.f32 %v1135_v29, %v1122_v36  ;;  %v1258_v29 = vrot.slane %v1251_v18, 2 }
 0x293   : > { %v1147_v26 = vpop.permute.xlu1 %1146  ;;  %v1145_v27 = vpop.permute.xlu0 %1144 }
 0x294   : > { %v1151_v37 = vmul.f32 %v3979_v25, %v1147_v26  ;;  %v1150_v38 = vmul.f32 %v3979_v25, %v1145_v27  ;;  %v1219_v26 = vsel %vm647_vm7, %v1216_v49, %v1218_v54  ;;  %v3988_v54 = vld [vmem:[%s6169_s3 + $0x1e] ss:$0 sm:$0xff] }
 0x296   : > { %v1153_v47 = vadd.f32 %v1151_v37, %v1138_v42  ;;  %v1152_v48 = vadd.f32 %v1150_v38, %v1137_v43  ;;  %v1259_v38 = vsel %vm647_vm7, %v1256_v24, %v1258_v29 }
 0x297   : > { %v1162_v39 = vpop.permute.xlu1 %1161  ;;  %v1160_v40 = vpop.permute.xlu0 %1159 }
 0x298   : > { %v1166_v44 = vmul.f32 %v3980_v30, %v1162_v39  ;;  %v1165_v45 = vmul.f32 %v3980_v30, %v1160_v40  ;;  %v3986_v39 = vld [vmem:[%s6169_s3 + $0x1c] ss:$0 sm:$0xff]  ;;  %v1257_v40 = vsel %vm647_vm7, %v1255_v63, %v1256_v24  ;;  %v3993_v24 = vld [vmem:[%s6169_s3 + $0x23] ss:$0 sm:$0xff] }
 0x29a   : > { %v1168_v2 = vadd.f32 %v1166_v44, %v1153_v47  ;;  %v1167_v14 = vadd.f32 %v1165_v45, %v1152_v48 }
 0x29b   : > { %v1177_v51 = vpop.permute.xlu1 %1176  ;;  %v1175_v53 = vpop.permute.xlu0 %1174 }
 0x29c   : > { %v1181_v58 = vmul.f32 %v3981_v59, %v1177_v51  ;;  %v1180_v15 = vmul.f32 %v3981_v59, %v1175_v53  ;;  %v3987_v59 = vld [vmem:[%s6169_s3 + $0x1d] ss:$0 sm:$0xff] }
 0x29e   : > { %v1183_v20 = vadd.f32 %v1181_v58, %v1168_v2  ;;  %v1182_v21 = vadd.f32 %v1180_v15, %v1167_v14  ;;  %v3990_v2 = vld [vmem:[%s6169_s3 + $0x20] ss:$0 sm:$0xff] }
 0x29f   : > { %v1277_v61 = vpop.permute.xlu1 %1276  ;;  %v1275_v25 = vpop.permute.xlu0 %1274 }
 0x2a0   : > { %v1203_v27 = vadd.f32 %v1199_v11, %v1183_v20  ;;  %v1202_v28 = vadd.f32 %v1197_v60, %v1182_v21  ;;  %v1281_v45 = vmul.f32 %v3986_v39, %v1277_v61  ;;  %v1280_v55 = vmul.f32 %v3986_v39, %v1275_v25  ;;  %v3992_v21 = vld [vmem:[%s6169_s3 + $0x22] ss:$0 sm:$0xff] }
 0x2a2   : > { %v1223_v30 = vadd.f32 %v1219_v26, %v1203_v27  ;;  %v1222_v31 = vadd.f32 %v1217_v62, %v1202_v28 }
 0x2a3   : > { %v1297_v34 = vpop.permute.xlu1 %1296  ;;  %v1295_v35 = vpop.permute.xlu0 %1294 }
 0x2a4   : > { %v1243_v36 = vadd.f32 %v1239_v32, %v1223_v30  ;;  %v1242_v37 = vadd.f32 %v1237_v33, %v1222_v31  ;;  %v1301_v48 = vmul.f32 %v3987_v59, %v1297_v34  ;;  %v1300_v49 = vmul.f32 %v3987_v59, %v1295_v35 }
 0x2a6   : > { %v1263_v41 = vadd.f32 %v1259_v38, %v1243_v36  ;;  %v1262_v42 = vadd.f32 %v1257_v40, %v1242_v37  ;;  %v3994_v36 = vld [vmem:[#allocation6] ss:$0 sm:$0xff] }
 0x2a7   : > { %v1317_v43 = vpop.permute.xlu1 %1316  ;;  %v1315_v44 = vpop.permute.xlu0 %1314 }
 0x2a8   : > { %v1283_v0 = vadd.f32 %v1281_v45, %v1263_v41  ;;  %v1282_v12 = vadd.f32 %v1280_v55, %v1262_v42  ;;  %v1321_v57 = vmul.f32 %v3988_v54, %v1317_v43  ;;  %v1320_v1 = vmul.f32 %v3988_v54, %v1315_v44 }
 0x2aa   : > { %v1303_v50 = vadd.f32 %v1301_v48, %v1283_v0  ;;  %v1302_v51 = vadd.f32 %v1300_v49, %v1282_v12 }
 0x2ab   : > { %v1337_v46 = vpop.permute.xlu1 %1336  ;;  %v1335_v47 = vpop.permute.xlu0 %1334 }
 0x2ac   : > { %v1323_v14 = vadd.f32 %v1321_v57, %v1303_v50  ;;  %v1322_v58 = vadd.f32 %v1320_v1, %v1302_v51  ;;  %v1341_v15 = vmul.f32 %v3989_v52, %v1337_v46  ;;  %v1340_v16 = vmul.f32 %v3989_v52, %v1335_v47 }
 0x2ae   : > { %v1343_v60 = vadd.f32 %v1341_v15, %v1323_v14  ;;  %v1342_v13 = vadd.f32 %v1340_v16, %v1322_v58 }
 0x2af   : > { %v1352_v53 = vpop.permute.xlu1 %1351  ;;  %v1350_v56 = vpop.permute.xlu0 %1349 }
 0x2b0   : > { %v1356_v11 = vmul.f32 %v3990_v2, %v1352_v53  ;;  %v1355_v20 = vmul.f32 %v3990_v2, %v1350_v56 }
 0x2b2   : > { %v1358_v26 = vadd.f32 %v1356_v11, %v1343_v60  ;;  %v1357_v27 = vadd.f32 %v1355_v20, %v1342_v13 }
 0x2b3   : > { %v1367_v18 = vpop.permute.xlu1 %1366  ;;  %v1365_v19 = vpop.permute.xlu0 %1364 }
 0x2b4   : > { %v1371_v22 = vmul.f32 %v3991_v17, %v1367_v18  ;;  %v1370_v61 = vmul.f32 %v3991_v17, %v1365_v19 }
 0x2b6   : > { %v1373_v29 = vadd.f32 %v1371_v22, %v1358_v26  ;;  %v1372_v63 = vadd.f32 %v1370_v61, %v1357_v27 }
 0x2b7   : > { %v1382_v23 = vpop.permute.xlu1 %1381  ;;  %v1380_v25 = vpop.permute.xlu0 %1379 }
 0x2b8   : > { %v1386_v28 = vmul.f32 %v3992_v21, %v1382_v23  ;;  %v1385_v62 = vmul.f32 %v3992_v21, %v1380_v25 }
 0x2ba   : > { %v1388_v32 = vadd.f32 %v1386_v28, %v1373_v29  ;;  %v1387_v33 = vadd.f32 %v1385_v62, %v1372_v63 }
 0x2bb   : > { %v1397_v30 = vpop.permute.xlu1 %1396  ;;  %v1395_v31 = vpop.permute.xlu0 %1394 }
 0x2bc   : > { %v1401_v34 = vmul.f32 %v3993_v24, %v1397_v30  ;;  %v1400_v35 = vmul.f32 %v3993_v24, %v1395_v31 }
 0x2be   : > { %v1403_v37 = vadd.f32 %v1401_v34, %v1388_v32  ;;  %v1402_v38 = vadd.f32 %v1400_v35, %v1387_v33 }
 0x2c0   : > { %v1412_v39 = vadd.f32 %v3994_v36, %v1403_v37  ;;  %v1411_v40 = vadd.f32 %v3994_v36, %v1402_v38 }
 0x2c2   : > { %v1414_v41 = vmul.f32 0.2, %v1412_v39  ;;  %v1413_v42 = vmul.f32 0.2, %v1411_v40 }
 0x2c4   : > { %v1416_v43 = vmax.f32 %v1412_v39, %v1414_v41  ;;  %v1415_v44 = vmax.f32 %v1411_v40, %v1413_v42 }
 0x2c6   : > { %1421 = vrot.lane.b32.xlu1 %v1416_v43, %s6197_s27  ;;  %1419 = vrot.lane.b32.xlu0 %v1415_v44, %s6197_s27  ;;  %s4131_s27 = sshll.u32 %s4483_s29, 8  ;;  %s6126_s29 = scalar_lea.sflag [#allocation5], %s473_s20 }
 0x2ca   : > { %1429 = vrot.lane.b32.xlu1 %v1416_v43, %s6195_s24  ;;  %1427 = vrot.lane.b32.xlu0 %v1415_v44, %s6195_s24  ;;  %s475_s24 = scalar_lea.vmem [#allocation9], %s3945_s17 }
 0x2ce   : > { %1437 = vrot.lane.b32.xlu1 %v1416_v43, %s6213_s23  ;;  %1435 = vrot.lane.b32.xlu0 %v1415_v44, %s6213_s23 }
 0x2d2   : > { %1445 = vrot.lane.b32.xlu1 %v1416_v43, %s6214_s4  ;;  %1443 = vrot.lane.b32.xlu0 %v1415_v44, %s6214_s4  ;;  %v3996_v43 = vld [vmem:[%s6171_s5 + $0x1] ss:$0 sm:$0xff] }
 0x338   : > { %v1422_v45 = vpop.permute.xlu1 %1421  ;;  %v1420_v55 = vpop.permute.xlu0 %1419 }
 0x339   : > { %1426 = vst.msk [vmem:[#allocation2 + $0x9] sm:$0xff] %vm505_vm2, %v1422_v45  ;;  %1425 = vst.msk [vmem:[#allocation2 + $0x1] sm:$0xff] %vm505_vm2, %v1420_v55  ;;  %v3995_v55 = vld [vmem:[%s6171_s5] ss:$0 sm:$0xff] }
 0x33c   : > { %v1430_v59 = vpop.permute.xlu1 %1429  ;;  %v1428_v0 = vpop.permute.xlu0 %1427 }
 0x33d   : > { %1434 = vst.msk [vmem:[#allocation2 + $0x21] sm:$0xff] %vm505_vm2, %v1430_v59  ;;  %1433 = vst.msk [vmem:[#allocation2 + $0x19] sm:$0xff] %vm505_vm2, %v1428_v0  ;;  %v3997_v59 = vld [vmem:[%s6171_s5 + $0x2] ss:$0 sm:$0xff] }
 0x340   : > { %v4980_v12 = vld [vmem:[#allocation2 + $0x10] sm:$0x3]  ;;  %v4982_v46 = vld [vmem:[#allocation2] sm:$0xff]  ;;  %v4984_v47 = vld [vmem:[#allocation2 + $0x8] sm:$0xff]  ;;  %v1438_v48 = vpop.permute.xlu1 %1437  ;;  %v1436_v49 = vpop.permute.xlu0 %1435 }
 0x341   : > { %2084 = vst.msk [vmem:[#allocation2 + $0x1] sm:$0xff] %vm505_vm2, %v4585_v4  ;;  %2085 = vst.msk [vmem:[#allocation2 + $0x9] sm:$0xff] %vm505_vm2, %v4593_v6  ;;  %1508 = vrot.lane.b32.xlu1 %v4984_v47, %s6215_s15  ;;  %1506 = vrot.lane.b32.xlu0 %v4982_v46, %s6215_s15  ;;  %v1716_v50 = vrot.slane %v4980_v12, 1  ;;  %v1713_v51 = vrot.slane %v4982_v46, 1  ;;  %v1937_v23 = vrot.slane %v4984_v47, 2  ;;  %v1939_v25 = vrot.slane %v4980_v12, 2 }
 0x342   : > { %1442 = vst.msk [vmem:[#allocation2 + $0x39] sm:$0xff] %vm505_vm2, %v1438_v48  ;;  %1441 = vst.msk [vmem:[#allocation2 + $0x31] sm:$0xff] %vm505_vm2, %v1436_v49  ;;  %v1936_v26 = vrot.slane %v4982_v46, 2  ;;  %v3998_v49 = vld [vmem:[%s6171_s5 + $0x3] ss:$0 sm:$0xff] }
 0x343   : > { %2086 = vst.msk [vmem:[#allocation2 + $0x1] sm:$0xff] %vm514_vm3, %v4583_v3  ;;  %2087 = vst.msk [vmem:[#allocation2 + $0x9] sm:$0xff] %vm514_vm3, %v4591_v5  ;;  %v1940_v27 = vsel %vm647_vm7, %v1937_v23, %v1939_v25  ;;  %v4002_v25 = vld [vmem:[%s6171_s5 + $0x7] ss:$0 sm:$0xff] }
 0x344   : > { %2088 = vst.msk [vmem:[#allocation2 + $0x1] sm:$0xff] %vm523_vm4, %v4601_v8  ;;  %2089 = vst.msk [vmem:[#allocation2 + $0x9] sm:$0xff] %vm523_vm4, %v4599_v7  ;;  %v5006_v4 = vld [vmem:[#allocation2 + $0x18] sm:$0xff]  ;;  %v5008_v6 = vld [vmem:[#allocation2 + $0x20] sm:$0xff]  ;;  %v1446_v3 = vpop.permute.xlu1 %1445  ;;  %v1444_v54 = vpop.permute.xlu0 %1443  ;;  %v1938_v28 = vsel %vm647_vm7, %v1936_v26, %v1937_v23 }
 0x345   : > { %2090 = vst.msk [vmem:[#allocation2 + $0x1] sm:$0xff] %vm532_vm5, %v4609_v10  ;;  %2091 = vst.msk [vmem:[#allocation2 + $0x9] sm:$0xff] %vm532_vm5, %v4607_v9  ;;  %1525 = vrot.lane.b32.xlu1 %v5008_v6, %s6215_s15  ;;  %1523 = vrot.lane.b32.xlu0 %v5006_v4, %s6215_s15  ;;  %v1714_v10 = vrot.slane %v4984_v47, 1  ;;  %v5049_v52 = vld [vmem:[#allocation2 + $0x28] sm:$0x3]  ;;  %v1735_v57 = vrot.slane %v5008_v6, 1  ;;  %v1478_v0 = vmul.f32 %v3996_v43, %v5008_v6 }
 0x346   : > { %1450 = vst.msk [vmem:[#allocation2 + $0x51] sm:$0xff] %vm505_vm2, %v1446_v3  ;;  %1449 = vst.msk [vmem:[#allocation2 + $0x49] sm:$0xff] %vm505_vm2, %v1444_v54  ;;  %v1737_v1 = vrot.slane %v5049_v52, 1  ;;  %v1734_v2 = vrot.slane %v5006_v4, 1  ;;  %v1957_v62 = vrot.slane %v5008_v6, 2  ;;  %v1959_v24 = vrot.slane %v5049_v52, 2 }
 0x347   : > { %v1717_v53 = vsel %vm590_vm6, %v1714_v10, %v1716_v50  ;;  %v1715_v56 = vsel %vm590_vm6, %v1713_v51, %v1714_v10  ;;  %v1956_v29 = vrot.slane %v5006_v4, 2  ;;  %v1477_v48 = vmul.f32 %v3996_v43, %v5006_v4  ;;  %v4005_v43 = vld [vmem:[%s6171_s5 + $0xa] ss:$0 sm:$0xff] }
 0x348   : > { %v1738_v16 = vsel %vm590_vm6, %v1735_v57, %v1737_v1  ;;  %v1736_v17 = vsel %vm590_vm6, %v1734_v2, %v1735_v57  ;;  %v1960_v31 = vsel %vm647_vm7, %v1957_v62, %v1959_v24  ;;  %v1469_v10 = vmul.f32 %v3995_v55, %v4984_v47 }
 0x349   : > { %v5018_v5 = vld [vmem:[#allocation2 + $0x38] sm:$0xff]  ;;  %v5020_v7 = vld [vmem:[#allocation2 + $0x30] sm:$0xff]  ;;  %v5060_v14 = vld [vmem:[#allocation2 + $0x40] sm:$0x3]  ;;  %v1958_v32 = vsel %vm647_vm7, %v1956_v29, %v1957_v62  ;;  %v1468_v51 = vmul.f32 %v3995_v55, %v4982_v46 }
 0x34a   : > { %1542 = vrot.lane.b32.xlu1 %v5018_v5, %s6215_s15  ;;  %1540 = vrot.lane.b32.xlu0 %v5020_v7, %s6215_s15  ;;  %v1756_v58 = vrot.slane %v5018_v5, 1  ;;  %v1758_v15 = vrot.slane %v5060_v14, 1  ;;  %v1755_v18 = vrot.slane %v5020_v7, 1  ;;  %v1977_v63 = vrot.slane %v5018_v5, 2 }
 0x34b   : > { %v1979_v30 = vrot.slane %v5060_v14, 2  ;;  %v1976_v33 = vrot.slane %v5020_v7, 2  ;;  %v1487_v50 = vmul.f32 %v3997_v59, %v5018_v5  ;;  %v1480_v57 = vadd.f32 %v1478_v0, %v1469_v10 }
 0x34c   : > { %v1759_v11 = vsel %vm590_vm6, %v1756_v58, %v1758_v15  ;;  %v1757_v20 = vsel %vm590_vm6, %v1755_v18, %v1756_v58  ;;  %v1479_v2 = vadd.f32 %v1477_v48, %v1468_v51  ;;  %v4000_v15 = vld [vmem:[%s6171_s5 + $0x5] ss:$0 sm:$0xff] }
 0x34d   : > { %v5026_v8 = vld [vmem:[#allocation2 + $0x50] sm:$0xff]  ;;  %v5028_v9 = vld [vmem:[#allocation2 + $0x48] sm:$0xff]  ;;  %v5071_v19 = vld [vmem:[#allocation2 + $0x58] sm:$0x3]  ;;  %v1980_v34 = vsel %vm647_vm7, %v1977_v63, %v1979_v30  ;;  %v1978_v35 = vsel %vm647_vm7, %v1976_v33, %v1977_v63  ;;  %v1489_v18 = vadd.f32 %v1487_v50, %v1480_v57 }
 0x34e   : > { %1559 = vrot.lane.b32.xlu1 %v5026_v8, %s6215_s15  ;;  %1557 = vrot.lane.b32.xlu0 %v5028_v9, %s6215_s15  ;;  %v1777_v21 = vrot.slane %v5026_v8, 1  ;;  %v1779_v60 = vrot.slane %v5071_v19, 1  ;;  %v1776_v13 = vrot.slane %v5028_v9, 1  ;;  %v1997_v36 = vrot.slane %v5026_v8, 2  ;;  %v4003_v63 = vld [vmem:[%s6171_s5 + $0x8] ss:$0 sm:$0xff] }
 0x34f   : > { %v1999_v37 = vrot.slane %v5071_v19, 2  ;;  %v1996_v38 = vrot.slane %v5028_v9, 2  ;;  %v1496_v1 = vmul.f32 %v3998_v49, %v5026_v8  ;;  %v1495_v58 = vmul.f32 %v3998_v49, %v5028_v9 }
 0x350   : > { %v1780_v22 = vsel %vm590_vm6, %v1777_v21, %v1779_v60  ;;  %v1778_v61 = vsel %vm590_vm6, %v1776_v13, %v1777_v21  ;;  %v4001_v60 = vld [vmem:[%s6171_s5 + $0x6] ss:$0 sm:$0xff] }
 0x351   : > { %v2000_v39 = vsel %vm647_vm7, %v1997_v36, %v1999_v37  ;;  %v1998_v40 = vsel %vm647_vm7, %v1996_v38, %v1997_v36  ;;  %v1498_v13 = vadd.f32 %v1496_v1, %v1489_v18  ;;  %v4004_v36 = vld [vmem:[%s6171_s5 + $0x9] ss:$0 sm:$0xff]  ;;  %v4009_v1 = vld [vmem:[%s6171_s5 + $0xe] ss:$0 sm:$0xff] }
 0x352   : > { %1574 = vrot.lane.b32.xlu1 %v4984_v47, %s6216_s30  ;;  %1572 = vrot.lane.b32.xlu0 %v4982_v46, %s6216_s30 }
 0x356   : > { %1589 = vrot.lane.b32.xlu1 %v5008_v6, %s6216_s30  ;;  %1587 = vrot.lane.b32.xlu0 %v5006_v4, %s6216_s30 }
 0x35a   : > { %1604 = vrot.lane.b32.xlu1 %v5018_v5, %s6216_s30  ;;  %1602 = vrot.lane.b32.xlu0 %v5020_v7, %s6216_s30 }
 0x35e   : > { %1619 = vrot.lane.b32.xlu1 %v5026_v8, %s6216_s30  ;;  %1617 = vrot.lane.b32.xlu0 %v5028_v9, %s6216_s30 }
 0x362   : > { %1720 = vrot.lane.b32.xlu1 %v1717_v53, %s6215_s15  ;;  %1718 = vrot.lane.b32.xlu0 %v1715_v56, %s6215_s15 }
 0x366   : > { %1741 = vrot.lane.b32.xlu1 %v1738_v16, %s6215_s15  ;;  %1739 = vrot.lane.b32.xlu0 %v1736_v17, %s6215_s15 }
 0x36a   : > { %1762 = vrot.lane.b32.xlu1 %v1759_v11, %s6215_s15  ;;  %1760 = vrot.lane.b32.xlu0 %v1757_v20, %s6215_s15 }
 0x36e   : > { %1783 = vrot.lane.b32.xlu1 %v1780_v22, %s6215_s15  ;;  %1781 = vrot.lane.b32.xlu0 %v1778_v61, %s6215_s15 }
 0x372   : > { %1798 = vrot.lane.b32.xlu1 %v1717_v53, %s6216_s30  ;;  %1796 = vrot.lane.b32.xlu0 %v1715_v56, %s6216_s30  ;;  %v1486_v53 = vmul.f32 %v3997_v59, %v5020_v7  ;;  %v3999_v56 = vld [vmem:[%s6171_s5 + $0x4] ss:$0 sm:$0xff] }
 0x376   : > { %1813 = vrot.lane.b32.xlu1 %v1738_v16, %s6216_s30  ;;  %1811 = vrot.lane.b32.xlu0 %v1736_v17, %s6216_s30 }
 0x37a   : > { %1828 = vrot.lane.b32.xlu1 %v1759_v11, %s6216_s30  ;;  %1826 = vrot.lane.b32.xlu0 %v1757_v20, %s6216_s30  ;;  %v1488_v20 = vadd.f32 %v1486_v53, %v1479_v2  ;;  %v4006_v2 = vld [vmem:[%s6171_s5 + $0xb] ss:$0 sm:$0xff] }
 0x37e   : > { %1843 = vrot.lane.b32.xlu1 %v1780_v22, %s6216_s30  ;;  %1841 = vrot.lane.b32.xlu0 %v1778_v61, %s6216_s30  ;;  %v1497_v22 = vadd.f32 %v1495_v58, %v1488_v20 }
 0x382   : > { %1943 = vrot.lane.b32.xlu1 %v1940_v27, %s6215_s15  ;;  %1941 = vrot.lane.b32.xlu0 %v1938_v28, %s6215_s15 }
 0x386   : > { %1963 = vrot.lane.b32.xlu1 %v1960_v31, %s6215_s15  ;;  %1961 = vrot.lane.b32.xlu0 %v1958_v32, %s6215_s15 }
 0x38a   : > { %1983 = vrot.lane.b32.xlu1 %v1980_v34, %s6215_s15  ;;  %1981 = vrot.lane.b32.xlu0 %v1978_v35, %s6215_s15 }
 0x38e   : > { %2003 = vrot.lane.b32.xlu1 %v2000_v39, %s6215_s15  ;;  %2001 = vrot.lane.b32.xlu0 %v1998_v40, %s6215_s15 }
 0x392   : > { %2018 = vrot.lane.b32.xlu1 %v1940_v27, %s6216_s30  ;;  %2016 = vrot.lane.b32.xlu0 %v1938_v28, %s6216_s30 }
 0x396   : > { %2033 = vrot.lane.b32.xlu1 %v1960_v31, %s6216_s30  ;;  %2031 = vrot.lane.b32.xlu0 %v1958_v32, %s6216_s30 }
 0x39a   : > { %2048 = vrot.lane.b32.xlu1 %v1980_v34, %s6216_s30  ;;  %2046 = vrot.lane.b32.xlu0 %v1978_v35, %s6216_s30  ;;  %v4007_v34 = vld [vmem:[%s6171_s5 + $0xc] ss:$0 sm:$0xff]  ;;  %v4008_v35 = vld [vmem:[%s6171_s5 + $0xd] ss:$0 sm:$0xff] }
 0x39b   : > { %v1653_v55 = vmul.f32 %v4008_v35, %v5008_v6  ;;  %v1654_v59 = vmul.f32 %v4008_v35, %v5049_v52  ;;  %v1632_v50 = vmul.f32 %v4007_v34, %v4982_v46 }
 0x39d   : > { %v1661_v20 = vrot.slane %v1654_v59, 1 }
 0x39e   : > { %2063 = vrot.lane.b32.xlu1 %v2000_v39, %s6216_s30  ;;  %2061 = vrot.lane.b32.xlu0 %v1998_v40, %s6216_s30 }
 0x3b3   : > { %v1509_v41 = vpop.permute.xlu1 %1508  ;;  %v1507_v42 = vpop.permute.xlu0 %1506 }
 0x3b4   : > { %v1513_v11 = vmul.f32 %v3999_v56, %v1509_v41  ;;  %v1512_v21 = vmul.f32 %v3999_v56, %v1507_v42 }
 0x3b6   : > { %v1515_v28 = vadd.f32 %v1513_v11, %v1498_v13  ;;  %v1514_v62 = vadd.f32 %v1512_v21, %v1497_v22  ;;  %v1659_v11 = vrot.slane %v1653_v55, 1  ;;  %v4010_v21 = vld [vmem:[%s6171_s5 + $0xf] ss:$0 sm:$0xff]  ;;  %v1638_v13 = vrot.slane %v1632_v50, 1 }
 0x3b7   : > { %v1526_v44 = vpop.permute.xlu1 %1525  ;;  %v1524_v45 = vpop.permute.xlu0 %1523 }
 0x3b8   : > { %v1530_v61 = vmul.f32 %v4000_v15, %v1526_v44  ;;  %v1529_v23 = vmul.f32 %v4000_v15, %v1524_v45  ;;  %v1633_v44 = vmul.f32 %v4007_v34, %v4984_v47  ;;  %v1634_v45 = vmul.f32 %v4007_v34, %v4980_v12 }
 0x3ba   : > { %v1532_v30 = vadd.f32 %v1530_v61, %v1515_v28  ;;  %v1531_v31 = vadd.f32 %v1529_v23, %v1514_v62  ;;  %v1639_v58 = vrot.slane %v1633_v44, 1  ;;  %v1641_v15 = vrot.slane %v1634_v45, 1 }
 0x3bb   : > { %v1673_v61 = vmul.f32 %v4009_v1, %v5018_v5  ;;  %v1674_v23 = vmul.f32 %v4009_v1, %v5060_v14 }
 0x3bc   : > { %v1543_v3 = vpop.permute.xlu1 %1542  ;;  %v1541_v54 = vpop.permute.xlu0 %1540  ;;  %v1640_v34 = vsel %vm590_vm6, %v1638_v13, %v1639_v58 }
 0x3bd   : > { %v1547_v24 = vmul.f32 %v4001_v60, %v1543_v3  ;;  %v1546_v29 = vmul.f32 %v4001_v60, %v1541_v54 }
 0x3bf   : > { %v1549_v39 = vadd.f32 %v1547_v24, %v1532_v30  ;;  %v1548_v40 = vadd.f32 %v1546_v29, %v1531_v31  ;;  %v1694_v29 = vmul.f32 %v4010_v21, %v5071_v19  ;;  %v1692_v30 = vmul.f32 %v4010_v21, %v5028_v9 }
 0x3c0   : > { %v1560_v16 = vpop.permute.xlu1 %1559  ;;  %v1558_v17 = vpop.permute.xlu0 %1557  ;;  %v1642_v31 = vsel %vm590_vm6, %v1639_v58, %v1641_v15 }
 0x3c1   : > { %v1564_v32 = vmul.f32 %v4002_v25, %v1560_v16  ;;  %v1563_v33 = vmul.f32 %v4002_v25, %v1558_v17  ;;  %v1652_v16 = vmul.f32 %v4008_v35, %v5006_v4  ;;  %v1672_v25 = vmul.f32 %v4009_v1, %v5020_v7 }
 0x3c2   : > { %v1679_v35 = vrot.slane %v1673_v61, 1  ;;  %v1701_v44 = vrot.slane %v1694_v29, 1  ;;  %v1698_v55 = vrot.slane %v1692_v30, 1 }
 0x3c3   : > { %v1566_v0 = vadd.f32 %v1564_v32, %v1549_v39  ;;  %v1565_v48 = vadd.f32 %v1563_v33, %v1548_v40  ;;  %v1658_v24 = vrot.slane %v1652_v16, 1  ;;  %v1662_v40 = vsel %vm590_vm6, %v1659_v11, %v1661_v20 }
 0x3c4   : > { %v1575_v26 = vpop.permute.xlu1 %1574  ;;  %v1573_v27 = vpop.permute.xlu0 %1572 }
 0x3c5   : > { %v1579_v41 = vmul.f32 %v4003_v63, %v1575_v26  ;;  %v1578_v42 = vmul.f32 %v4003_v63, %v1573_v27  ;;  %v1693_v63 = vmul.f32 %v4010_v21, %v5026_v8 }
 0x3c7   : > { %v1581_v51 = vadd.f32 %v1579_v41, %v1566_v0  ;;  %v1580_v53 = vadd.f32 %v1578_v42, %v1565_v48  ;;  %v1699_v45 = vrot.slane %v1693_v63, 1 }
 0x3c8   : > { %v1590_v37 = vpop.permute.xlu1 %1589  ;;  %v1588_v38 = vpop.permute.xlu0 %1587 }
 0x3c9   : > { %v1594_v49 = vmul.f32 %v4004_v36, %v1590_v37  ;;  %v1593_v3 = vmul.f32 %v4004_v36, %v1588_v38  ;;  %v1681_v36 = vrot.slane %v1674_v23, 1  ;;  %v1678_v38 = vrot.slane %v1672_v25, 1  ;;  %v4014_v25 = vld [vmem:[%s6171_s5 + $0x13] ss:$0 sm:$0xff] }
 0x3cb   : > { %v1596_v17 = vadd.f32 %v1594_v49, %v1581_v51  ;;  %v1595_v18 = vadd.f32 %v1593_v3, %v1580_v53  ;;  %v1682_v48 = vsel %vm590_vm6, %v1679_v35, %v1681_v36  ;;  %v1680_v49 = vsel %vm590_vm6, %v1678_v38, %v1679_v35  ;;  %v4011_v51 = vld [vmem:[%s6171_s5 + $0x10] ss:$0 sm:$0xff] }
 0x3cc   : > { %v1605_v54 = vpop.permute.xlu1 %1604  ;;  %v1603_v10 = vpop.permute.xlu0 %1602  ;;  %v1702_v53 = vsel %vm590_vm6, %v1699_v45, %v1701_v44 }
 0x3cd   : > { %v1609_v56 = vmul.f32 %v4005_v43, %v1605_v54  ;;  %v1608_v57 = vmul.f32 %v4005_v43, %v1603_v10  ;;  %v1660_v43 = vsel %vm590_vm6, %v1658_v24, %v1659_v11  ;;  %v4015_v24 = vld [vmem:[%s6171_s5 + $0x14] ss:$0 sm:$0xff] }
 0x3cf   : > { %v1611_v26 = vadd.f32 %v1609_v56, %v1596_v17  ;;  %v1610_v27 = vadd.f32 %v1608_v57, %v1595_v18  ;;  %v1700_v56 = vsel %vm590_vm6, %v1698_v55, %v1699_v45  ;;  %v4012_v17 = vld [vmem:[%s6171_s5 + $0x11] ss:$0 sm:$0xff] }
 0x3d0   : > { %v1620_v60 = vpop.permute.xlu1 %1619  ;;  %v1618_v22 = vpop.permute.xlu0 %1617 }
 0x3d1   : > { %v1624_v28 = vmul.f32 %v4006_v2, %v1620_v60  ;;  %v1623_v62 = vmul.f32 %v4006_v2, %v1618_v22  ;;  %v4013_v22 = vld [vmem:[%s6171_s5 + $0x12] ss:$0 sm:$0xff] }
 0x3d3   : > { %v1626_v32 = vadd.f32 %v1624_v28, %v1611_v26  ;;  %v1625_v33 = vadd.f32 %v1623_v62, %v1610_v27 }
 0x3d4   : > { %v1721_v37 = vpop.permute.xlu1 %1720  ;;  %v1719_v39 = vpop.permute.xlu0 %1718 }
 0x3d5   : > { %v1646_v41 = vadd.f32 %v1642_v31, %v1626_v32  ;;  %v1645_v42 = vadd.f32 %v1640_v34, %v1625_v33  ;;  %v1725_v15 = vmul.f32 %v4011_v51, %v1721_v37  ;;  %v1724_v16 = vmul.f32 %v4011_v51, %v1719_v39  ;;  %v4019_v32 = vld [vmem:[%s6171_s5 + $0x18] ss:$0 sm:$0xff]  ;;  %v4020_v33 = vld [vmem:[%s6171_s5 + $0x19] ss:$0 sm:$0xff]  ;;  %v4016_v34 = vld [vmem:[%s6171_s5 + $0x15] ss:$0 sm:$0xff] }
 0x3d6   : > { %v4017_v39 = vld [vmem:[%s6171_s5 + $0x16] ss:$0 sm:$0xff] }
 0x3d7   : > { %v1666_v59 = vadd.f32 %v1662_v40, %v1646_v41  ;;  %v1665_v0 = vadd.f32 %v1660_v43, %v1645_v42  ;;  %v1857_v40 = vmul.f32 %v4019_v32, %v4984_v47  ;;  %v1858_v41 = vmul.f32 %v4019_v32, %v4980_v12 }
 0x3d8   : > { %v1742_v3 = vpop.permute.xlu1 %1741  ;;  %v1740_v54 = vpop.permute.xlu0 %1739  ;;  %v1877_v42 = vmul.f32 %v4020_v33, %v5008_v6  ;;  %v4018_v6 = vld [vmem:[%s6171_s5 + $0x17] ss:$0 sm:$0xff] }
 0x3d9   : > { %v1686_v10 = vadd.f32 %v1682_v48, %v1666_v59  ;;  %v1685_v50 = vadd.f32 %v1680_v49, %v1665_v0  ;;  %v1746_v60 = vmul.f32 %v4012_v17, %v1742_v3  ;;  %v1745_v13 = vmul.f32 %v4012_v17, %v1740_v54  ;;  %v4021_v3 = vld [vmem:[%s6171_s5 + $0x1a] ss:$0 sm:$0xff] }
 0x3da   : > { %v1878_v48 = vmul.f32 %v4020_v33, %v5049_v52  ;;  %v1856_v49 = vmul.f32 %v4019_v32, %v4982_v46  ;;  %v1865_v51 = vrot.slane %v1858_v41, 2  ;;  %v1897_v46 = vmul.f32 %v4021_v3, %v5018_v5 }
 0x3db   : > { %v1706_v57 = vadd.f32 %v1702_v53, %v1686_v10  ;;  %v1705_v1 = vadd.f32 %v1700_v56, %v1685_v50  ;;  %v1863_v50 = vrot.slane %v1857_v40, 2  ;;  %v1876_v53 = vmul.f32 %v4020_v33, %v5006_v4  ;;  %v4023_v40 = vld [vmem:[%s6171_s5 + $0x1c] ss:$0 sm:$0xff] }
 0x3dc   : > { %v1763_v2 = vpop.permute.xlu1 %1762  ;;  %v1761_v58 = vpop.permute.xlu0 %1760  ;;  %v1898_v17 = vmul.f32 %v4021_v3, %v5060_v14  ;;  %v1903_v14 = vrot.slane %v1897_v46, 2  ;;  %v4027_v46 = vld [vmem:[%s6171_s5 + $0x20] ss:$0 sm:$0xff] }
 0x3dd   : > { %v1727_v18 = vadd.f32 %v1725_v15, %v1706_v57  ;;  %v1726_v11 = vadd.f32 %v1724_v16, %v1705_v1  ;;  %v1767_v28 = vmul.f32 %v4013_v22, %v1763_v2  ;;  %v1766_v62 = vmul.f32 %v4013_v22, %v1761_v58  ;;  %v4022_v1 = vld [vmem:[%s6171_s5 + $0x1b] ss:$0 sm:$0xff] }
 0x3de   : > { %v1883_v57 = vrot.slane %v1877_v42, 2  ;;  %v1885_v2 = vrot.slane %v1878_v48, 2  ;;  %v1862_v15 = vrot.slane %v1856_v49, 2  ;;  %v1918_v5 = vmul.f32 %v4022_v1, %v5071_v19 }
 0x3df   : > { %v1748_v61 = vadd.f32 %v1746_v60, %v1727_v18  ;;  %v1747_v23 = vadd.f32 %v1745_v13, %v1726_v11  ;;  %v1896_v18 = vmul.f32 %v4021_v3, %v5020_v7  ;;  %v1882_v60 = vrot.slane %v1876_v53, 2 }
 0x3e0   : > { %v1784_v20 = vpop.permute.xlu1 %1783  ;;  %v1782_v21 = vpop.permute.xlu0 %1781  ;;  %v1917_v13 = vmul.f32 %v4022_v1, %v5026_v8  ;;  %v1916_v22 = vmul.f32 %v4022_v1, %v5028_v9 }
 0x3e1   : > { %v1769_v29 = vadd.f32 %v1767_v28, %v1748_v61  ;;  %v1768_v63 = vadd.f32 %v1766_v62, %v1747_v23  ;;  %v1788_v30 = vmul.f32 %v4014_v25, %v1784_v20  ;;  %v1787_v31 = vmul.f32 %v4014_v25, %v1782_v21 }
 0x3e2   : > { %v1866_v61 = vsel %vm647_vm7, %v1863_v50, %v1865_v51  ;;  %v1902_v28 = vrot.slane %v1896_v18, 2  ;;  %v1884_v8 = vsel %vm647_vm7, %v1882_v60, %v1883_v57  ;;  %v1923_v19 = vrot.slane %v1917_v13, 2  ;;  %v4026_v51 = vld [vmem:[%s6171_s5 + $0x1f] ss:$0 sm:$0xff] }
 0x3e3   : > { %v1790_v43 = vadd.f32 %v1788_v30, %v1769_v29  ;;  %v1789_v44 = vadd.f32 %v1787_v31, %v1768_v63  ;;  %v1925_v30 = vrot.slane %v1918_v5, 2  ;;  %v1922_v9 = vrot.slane %v1916_v22, 2 }
 0x3e4   : > { %v1799_v26 = vpop.permute.xlu1 %1798  ;;  %v1797_v27 = vpop.permute.xlu0 %1796 }
 0x3e5   : > { %v1803_v37 = vmul.f32 %v4015_v24, %v1799_v26  ;;  %v1802_v38 = vmul.f32 %v4015_v24, %v1797_v27  ;;  %v1864_v26 = vsel %vm647_vm7, %v1862_v15, %v1863_v50  ;;  %v1905_v27 = vrot.slane %v1898_v17, 2 }
 0x3e6   : > { %v1886_v24 = vsel %vm647_vm7, %v1883_v57, %v1885_v2  ;;  %v1924_v41 = vsel %vm647_vm7, %v1922_v9, %v1923_v19 }
 0x3e7   : > { %v1805_v54 = vadd.f32 %v1803_v37, %v1790_v43  ;;  %v1804_v47 = vadd.f32 %v1802_v38, %v1789_v44  ;;  %v1906_v33 = vsel %vm647_vm7, %v1903_v14, %v1905_v27  ;;  %v4030_v27 = vld [vmem:[%s6171_s5 + $0x23] ss:$0 sm:$0xff] }
 0x3e8   : > { %v1814_v35 = vpop.permute.xlu1 %1813  ;;  %v1812_v36 = vpop.permute.xlu0 %1811 }
 0x3e9   : > { %v1818_v45 = vmul.f32 %v4016_v34, %v1814_v35  ;;  %v1817_v55 = vmul.f32 %v4016_v34, %v1812_v36  ;;  %v1904_v34 = vsel %vm647_vm7, %v1902_v28, %v1903_v14 }
 0x3eb   : > { %v1820_v56 = vadd.f32 %v1818_v45, %v1805_v54  ;;  %v1819_v52 = vadd.f32 %v1817_v55, %v1804_v47 }
 0x3ec   : > { %v1829_v59 = vpop.permute.xlu1 %1828  ;;  %v1827_v0 = vpop.permute.xlu0 %1826 }
 0x3ed   : > { %v1833_v10 = vmul.f32 %v4017_v39, %v1829_v59  ;;  %v1832_v12 = vmul.f32 %v4017_v39, %v1827_v0  ;;  %v1926_v39 = vsel %vm647_vm7, %v1923_v19, %v1925_v30  ;;  %v4024_v0 = vld [vmem:[%s6171_s5 + $0x1d] ss:$0 sm:$0xff]  ;;  %v4031_v30 = vld [vmem:[%s6172_s6] ss:$0 sm:$0xff] }
 0x3ef   : > { %v1835_v11 = vadd.f32 %v1833_v10, %v1820_v56  ;;  %v1834_v20 = vadd.f32 %v1832_v12, %v1819_v52  ;;  %v4025_v12 = vld [vmem:[%s6171_s5 + $0x1e] ss:$0 sm:$0xff] }
 0x3f0   : > { %v1844_v58 = vpop.permute.xlu1 %1843  ;;  %v1842_v16 = vpop.permute.xlu0 %1841 }
 0x3f1   : > { %v1848_v4 = vmul.f32 %v4018_v6, %v1844_v58  ;;  %v1847_v21 = vmul.f32 %v4018_v6, %v1842_v16  ;;  %v4028_v16 = vld [vmem:[%s6171_s5 + $0x21] ss:$0 sm:$0xff] }
 0x3f3   : > { %v1850_v23 = vadd.f32 %v1848_v4, %v1835_v11  ;;  %v1849_v25 = vadd.f32 %v1847_v21, %v1834_v20  ;;  %v4029_v4 = vld [vmem:[%s6171_s5 + $0x22] ss:$0 sm:$0xff] }
 0x3f4   : > { %v1944_v7 = vpop.permute.xlu1 %1943  ;;  %v1942_v62 = vpop.permute.xlu0 %1941 }
 0x3f5   : > { %v1870_v29 = vadd.f32 %v1866_v61, %v1850_v23  ;;  %v1869_v63 = vadd.f32 %v1864_v26, %v1849_v25  ;;  %v1948_v55 = vmul.f32 %v4023_v40, %v1944_v7  ;;  %v1947_v59 = vmul.f32 %v4023_v40, %v1942_v62  ;;  %v5309_v40 = vld [vmem:[#allocation2 + $0x8] sm:$0xff] }
 0x3f7   : > { %v1890_v31 = vadd.f32 %v1886_v24, %v1870_v29  ;;  %v1889_v32 = vadd.f32 %v1884_v8, %v1869_v63 }
 0x3f8   : > { %v1964_v35 = vpop.permute.xlu1 %1963  ;;  %v1962_v36 = vpop.permute.xlu0 %1961 }
 0x3f9   : > { %v1910_v37 = vadd.f32 %v1906_v33, %v1890_v31  ;;  %v1909_v38 = vadd.f32 %v1904_v34, %v1889_v32  ;;  %v1968_v47 = vmul.f32 %v4024_v0, %v1964_v35  ;;  %v1967_v10 = vmul.f32 %v4024_v0, %v1962_v36  ;;  %v4224_v36 = vld [vmem:[%s4571_s16 + $0x8] sm:$0xff] }
 0x3fb   : > { %v1930_v42 = vadd.f32 %v1926_v39, %v1910_v37  ;;  %v1929_v43 = vadd.f32 %v1924_v41, %v1909_v38  ;;  %v4225_v38 = vld [vmem:[%s4571_s16] sm:$0xff]  ;;  %s6220_s16 = smov 55  }
 0x3fc   : > { %v1984_v44 = vpop.permute.xlu1 %1983  ;;  %v1982_v45 = vpop.permute.xlu0 %1981  ;;  %v5313_v41 = vld [vmem:[#allocation2] sm:$0xff] }
 0x3fd   : > { %v1950_v48 = vadd.f32 %v1948_v55, %v1930_v42  ;;  %v1949_v49 = vadd.f32 %v1947_v59, %v1929_v43  ;;  %v1988_v52 = vmul.f32 %v4025_v12, %v1984_v44  ;;  %v1987_v57 = vmul.f32 %v4025_v12, %v1982_v45  ;;  %v5315_v42 = vld [vmem:[#allocation2 + $0x10] sm:$0x3] }
 0x3fe   : > { %v2261_v43 = vrot.slane %v5309_v40, 1  ;;  %v2263_v44 = vrot.slane %v5315_v42, 1  ;;  %v2260_v45 = vrot.slane %v5313_v41, 1 }
 0x3ff   : > { %v1970_v6 = vadd.f32 %v1968_v47, %v1950_v48  ;;  %v1969_v50 = vadd.f32 %v1967_v10, %v1949_v49 }
 0x400   : > { %v2004_v3 = vpop.permute.xlu1 %2003  ;;  %v2002_v54 = vpop.permute.xlu0 %2001  ;;  %v2264_v55 = vsel %vm590_vm6, %v2261_v43, %v2263_v44  ;;  %v2262_v59 = vsel %vm590_vm6, %v2260_v45, %v2261_v43 }
 0x401   : > { %v1990_v1 = vadd.f32 %v1988_v52, %v1970_v6  ;;  %v1989_v2 = vadd.f32 %v1987_v57, %v1969_v50  ;;  %v2008_v58 = vmul.f32 %v4026_v51, %v2004_v3  ;;  %v2007_v15 = vmul.f32 %v4026_v51, %v2002_v54 }
 0x402   : > { %v2372_v51 = vrot.slane %v5309_v40, 2 }
 0x403   : > { %v2010_v21 = vadd.f32 %v2008_v58, %v1990_v1  ;;  %v2009_v60 = vadd.f32 %v2007_v15, %v1989_v2 }
 0x404   : > { %v2019_v53 = vpop.permute.xlu1 %2018  ;;  %v2017_v56 = vpop.permute.xlu0 %2016 }
 0x405   : > { %v2023_v11 = vmul.f32 %v4027_v46, %v2019_v53  ;;  %v2022_v20 = vmul.f32 %v4027_v46, %v2017_v56  ;;  %v2374_v53 = vrot.slane %v5315_v42, 2  ;;  %v2371_v56 = vrot.slane %v5313_v41, 2 }
 0x407   : > { %v2025_v23 = vadd.f32 %v2023_v11, %v2010_v21  ;;  %v2024_v25 = vadd.f32 %v2022_v20, %v2009_v60  ;;  %v2375_v57 = vsel %vm647_vm7, %v2372_v51, %v2374_v53  ;;  %v2373_v46 = vsel %vm647_vm7, %v2371_v56, %v2372_v51 }
 0x408   : > { %v2034_v17 = vpop.permute.xlu1 %2033  ;;  %v2032_v18 = vpop.permute.xlu0 %2031 }
 0x409   : > { %v2038_v13 = vmul.f32 %v4028_v16, %v2034_v17  ;;  %v2037_v5 = vmul.f32 %v4028_v16, %v2032_v18 }
 0x40b   : > { %v2040_v7 = vadd.f32 %v2038_v13, %v2025_v23  ;;  %v2039_v28 = vadd.f32 %v2037_v5, %v2024_v25  ;;  %v4032_v25 = vld [vmem:[#allocation8] ss:$0 sm:$0xff] }
 0x40c   : > { %v2049_v22 = vpop.permute.xlu1 %2048  ;;  %v2047_v61 = vpop.permute.xlu0 %2046 }
 0x40d   : > { %v2053_v26 = vmul.f32 %v4029_v4, %v2049_v22  ;;  %v2052_v14 = vmul.f32 %v4029_v4, %v2047_v61  ;;  %v4033_v22 = vld [vmem:[#allocation8 + $0x1] ss:$0 sm:$0xff] }
 0x40f   : > { %v2055_v29 = vadd.f32 %v2053_v26, %v2040_v7  ;;  %v2054_v63 = vadd.f32 %v2052_v14, %v2039_v28  ;;  %v2137_v7 = vmul.f32 %v4032_v25, %v5313_v41  ;;  %v4034_v28 = vld [vmem:[#allocation8 + $0x2] ss:$0 sm:$0xff] }
 0x410   : > { %v2064_v62 = vpop.permute.xlu1 %2063  ;;  %v2062_v24 = vpop.permute.xlu0 %2061 }
 0x411   : > { %v2068_v8 = vmul.f32 %v4030_v27, %v2064_v62  ;;  %v2067_v19 = vmul.f32 %v4030_v27, %v2062_v24  ;;  %v2138_v27 = vmul.f32 %v4032_v25, %v5309_v40  ;;  %v4044_v25 = vld [vmem:[#allocation8 + $0xc] ss:$0 sm:$0xff] }
 0x413   : > { %v2070_v9 = vadd.f32 %v2068_v8, %v2055_v29  ;;  %v2069_v31 = vadd.f32 %v2067_v19, %v2054_v63  ;;  %v4038_v8 = vld [vmem:[#allocation8 + $0x6] ss:$0 sm:$0xff]  ;;  %v4035_v19 = vld [vmem:[#allocation8 + $0x3] ss:$0 sm:$0xff] }
 0x415   : > { %v2079_v32 = vadd.f32 %v4031_v30, %v2070_v9  ;;  %v2078_v33 = vadd.f32 %v4031_v30, %v2069_v31  ;;  %v4039_v31 = vld [vmem:[#allocation8 + $0x7] ss:$0 sm:$0xff] }
 0x417   : > { %4216 = vtanh.f32 %v2079_v32  ;;  %v4036_v32 = vld [vmem:[#allocation8 + $0x4] ss:$0 sm:$0xff] }
 0x418   : > { %4218 = vtanh.f32 %v2078_v33 }
 0x424   : > { %v4217_v34 = vpop.eup %4216 }
 0x425   : > { %v4219_v35 = vpop.eup %4218  ;;  %v5288_v37 = vsub.f32 %v4224_v36, %v4217_v34  ;;  %v2221_v36 = vmul.f32 %v4038_v8, %v5315_v42 }
 0x426   : > { %v5291_v39 = vsub.f32 %v4225_v38, %v4219_v35  ;;  %v2220_v35 = vmul.f32 %v4038_v8, %v5309_v40  ;;  %v2219_v38 = vmul.f32 %v4038_v8, %v5313_v41  ;;  %v4045_v8 = vld [vmem:[#allocation8 + $0xd] ss:$0 sm:$0xff] }
 0x427   : > { %2096 = vrot.lane.b32.xlu1 %v5288_v37, %s6217_s0  ;;  %v2228_v51 = vrot.slane %v2221_v36, 1 }
 0x428   : > { %2094 = vrot.lane.b32.xlu0 %v5291_v39, %s6217_s0  ;;  %v2225_v56 = vrot.slane %v2219_v38, 1 }
 0x42b   : > { %2104 = vrot.lane.b32.xlu1 %v5288_v37, %s6218_s1 }
 0x42c   : > { %2102 = vrot.lane.b32.xlu0 %v5291_v39, %s6218_s1 }
 0x42f   : > { %2112 = vrot.lane.b32.xlu1 %v5288_v37, %s6219_s22 }
 0x430   : > { %2110 = vrot.lane.b32.xlu0 %v5291_v39, %s6219_s22 }
 0x433   : > { %2120 = vrot.lane.b32.xlu1 %v5288_v37, %s6220_s16 }
 0x434   : > { %2118 = vrot.lane.b32.xlu0 %v5291_v39, %s6220_s16 }
 0x437   : > { %2159 = vrot.lane.b32.xlu1 %v5309_v40, %s6215_s15 }
 0x438   : > { %2157 = vrot.lane.b32.xlu0 %v5313_v41, %s6215_s15 }
 0x43b   : > { %2191 = vrot.lane.b32.xlu1 %v5309_v40, %s6216_s30 }
 0x43c   : > { %2189 = vrot.lane.b32.xlu0 %v5313_v41, %s6216_s30 }
 0x43f   : > { %2267 = vrot.lane.b32.xlu1 %v2264_v55, %s6215_s15 }
 0x440   : > { %2265 = vrot.lane.b32.xlu0 %v2262_v59, %s6215_s15 }
 0x443   : > { %2303 = vrot.lane.b32.xlu1 %v2264_v55, %s6216_s30 }
 0x444   : > { %2301 = vrot.lane.b32.xlu0 %v2262_v59, %s6216_s30  ;;  %v4037_v59 = vld [vmem:[#allocation8 + $0x5] ss:$0 sm:$0xff] }
 0x499   : > { %v2097_v0 = vpop.permute.xlu1 %2096 }
 0x49a   : > { %2101 = vst.msk [vmem:[#allocation2 + $0x21] sm:$0xff] %vm505_vm2, %v2097_v0  ;;  %v2095_v48 = vpop.permute.xlu0 %2094 }
 0x49b   : > { %2100 = vst.msk [vmem:[#allocation2 + $0x19] sm:$0xff] %vm505_vm2, %v2095_v48 }
 0x49d   : > { %v2105_v49 = vpop.permute.xlu1 %2104 }
 0x49e   : > { %2109 = vst.msk [vmem:[#allocation2 + $0x21] sm:$0xff] %vm514_vm3, %v2105_v49  ;;  %v2103_v3 = vpop.permute.xlu0 %2102 }
 0x49f   : > { %2108 = vst.msk [vmem:[#allocation2 + $0x19] sm:$0xff] %vm514_vm3, %v2103_v3 }
 0x4a1   : > { %v2113_v54 = vpop.permute.xlu1 %2112 }
 0x4a2   : > { %2117 = vst.msk [vmem:[#allocation2 + $0x21] sm:$0xff] %vm523_vm4, %v2113_v54  ;;  %v2111_v47 = vpop.permute.xlu0 %2110 }
 0x4a3   : > { %2116 = vst.msk [vmem:[#allocation2 + $0x19] sm:$0xff] %vm523_vm4, %v2111_v47 }
 0x4a5   : > { %v2121_v10 = vpop.permute.xlu1 %2120 }
 0x4a6   : > { %2125 = vst.msk [vmem:[#allocation2 + $0x21] sm:$0xff] %vm532_vm5, %v2121_v10  ;;  %v2119_v12 = vpop.permute.xlu0 %2118 }
 0x4a7   : > { %2124 = vst.msk [vmem:[#allocation2 + $0x19] sm:$0xff] %vm532_vm5, %v2119_v12  ;;  %v2226_v12 = vrot.slane %v2220_v35, 1 }
 0x4a9   : > { %v2160_v21 = vpop.permute.xlu1 %2159 }
 0x4aa   : > { %v2158_v60 = vpop.permute.xlu0 %2157  ;;  %v2164_v30 = vmul.f32 %v4034_v28, %v2160_v21  ;;  %v2227_v21 = vsel %vm590_vm6, %v2225_v56, %v2226_v12 }
 0x4ab   : > { %v2163_v9 = vmul.f32 %v4034_v28, %v2158_v60 }
 0x4ad   : > { %v5355_v52 = vld [vmem:[#allocation2 + $0x28] sm:$0x3]  ;;  %v2192_v13 = vpop.permute.xlu1 %2191 }
 0x4ae   : > { %v5340_v6 = vld [vmem:[#allocation2 + $0x20] sm:$0xff]  ;;  %v5342_v50 = vld [vmem:[#allocation2 + $0x18] sm:$0xff]  ;;  %v2284_v2 = vrot.slane %v5355_v52, 1  ;;  %v2394_v18 = vrot.slane %v5355_v52, 2  ;;  %v2190_v5 = vpop.permute.xlu0 %2189  ;;  %v2241_v0 = vmul.f32 %v4039_v31, %v5355_v52  ;;  %v2196_v3 = vmul.f32 %v4036_v32, %v2192_v13 }
 0x4af   : > { %2176 = vrot.lane.b32.xlu1 %v5340_v6, %s6215_s15  ;;  %2174 = vrot.lane.b32.xlu0 %v5342_v50, %s6215_s15  ;;  %v2282_v1 = vrot.slane %v5340_v6, 1  ;;  %v2281_v58 = vrot.slane %v5342_v50, 1  ;;  %v2392_v17 = vrot.slane %v5340_v6, 2  ;;  %v2391_v11 = vrot.slane %v5342_v50, 2 }
 0x4b0   : > { %v2147_v26 = vmul.f32 %v4033_v22, %v5340_v6  ;;  %v2146_v14 = vmul.f32 %v4033_v22, %v5342_v50  ;;  %v2240_v48 = vmul.f32 %v4039_v31, %v5340_v6  ;;  %v2239_v49 = vmul.f32 %v4039_v31, %v5342_v50 }
 0x4b1   : > { %v2285_v15 = vsel %vm590_vm6, %v2282_v1, %v2284_v2  ;;  %v2283_v16 = vsel %vm590_vm6, %v2281_v58, %v2282_v1  ;;  %v2395_v20 = vsel %vm647_vm7, %v2392_v17, %v2394_v18  ;;  %v2393_v4 = vsel %vm647_vm7, %v2391_v11, %v2392_v17  ;;  %v2268_v61 = vpop.permute.xlu1 %2267 }
 0x4b2   : > { %v2266_v23 = vpop.permute.xlu0 %2265  ;;  %v2149_v29 = vadd.f32 %v2147_v26, %v2138_v27  ;;  %v2148_v63 = vadd.f32 %v2146_v14, %v2137_v7  ;;  %v2195_v54 = vmul.f32 %v4036_v32, %v2190_v5  ;;  %v2245_v17 = vrot.slane %v2239_v49, 1  ;;  %v4041_v26 = vld [vmem:[#allocation8 + $0x9] ss:$0 sm:$0xff] }
 0x4b3   : > { %2206 = vrot.lane.b32.xlu1 %v5340_v6, %s6216_s30  ;;  %2204 = vrot.lane.b32.xlu0 %v5342_v50, %s6216_s30  ;;  %v2332_v31 = vmul.f32 %v4044_v25, %v5309_v40  ;;  %v2333_v32 = vmul.f32 %v4044_v25, %v5315_v42 }
 0x4b4   : > { %v2166_v43 = vadd.f32 %v2164_v30, %v2149_v29  ;;  %v2165_v44 = vadd.f32 %v2163_v9, %v2148_v63 }
 0x4b5   : > { %v5385_v62 = vpop.permute.xlu1 %2303  ;;  %v2338_v42 = vrot.slane %v2332_v31, 2 }
 0x4b6   : > { %v5387_v24 = vpop.permute.xlu0 %2301 }
 0x4b7   : > { %2378 = vrot.lane.b32.xlu1 %v2375_v57, %s6215_s15  ;;  %2376 = vrot.lane.b32.xlu0 %v2373_v46, %s6215_s15 }
 0x4bb   : > { %2288 = vrot.lane.b32.xlu1 %v2285_v15, %s6215_s15  ;;  %2286 = vrot.lane.b32.xlu0 %v2283_v16, %s6215_s15 }
 0x4bf   : > { %2318 = vrot.lane.b32.xlu1 %v2285_v15, %s6216_s30  ;;  %2316 = vrot.lane.b32.xlu0 %v2283_v16, %s6216_s30  ;;  %v2248_v15 = vrot.slane %v2241_v0, 1  ;;  %v2246_v16 = vrot.slane %v2240_v48, 1  ;;  %v2340_v0 = vrot.slane %v2333_v32, 2 }
 0x4c1   : > { %v2249_v14 = vsel %vm590_vm6, %v2246_v16, %v2248_v15  ;;  %v2247_v27 = vsel %vm590_vm6, %v2245_v17, %v2246_v16 }
 0x4c3   : > { %2413 = vrot.lane.b32.xlu1 %v2375_v57, %s6216_s30  ;;  %2411 = vrot.lane.b32.xlu0 %v2373_v46, %s6216_s30 }
 0x4c7   : > { %2398 = vrot.lane.b32.xlu1 %v2395_v20, %s6215_s15  ;;  %2396 = vrot.lane.b32.xlu0 %v2393_v4, %s6215_s15 }
 0x4cb   : > { %2428 = vrot.lane.b32.xlu1 %v2395_v20, %s6216_s30  ;;  %2426 = vrot.lane.b32.xlu0 %v2393_v4, %s6216_s30  ;;  %v4040_v20 = vld [vmem:[#allocation8 + $0x8] ss:$0 sm:$0xff]  ;;  %v2229_v4 = vsel %vm590_vm6, %v2226_v12, %v2228_v51 }
 0x4cc   : > { %v2272_v7 = vmul.f32 %v4040_v20, %v2268_v61  ;;  %v2271_v28 = vmul.f32 %v4040_v20, %v2266_v23  ;;  %v2352_v61 = vmul.f32 %v4045_v8, %v5340_v6  ;;  %v2353_v23 = vmul.f32 %v4045_v8, %v5355_v52  ;;  %v4048_v20 = vld [vmem:[#allocation8 + $0x10] ss:$0 sm:$0xff] }
 0x4ce   : > { %v2358_v6 = vrot.slane %v2352_v61, 2  ;;  %v2360_v12 = vrot.slane %v2353_v23, 2 }
 0x521   : > { %v2177_v33 = vpop.permute.xlu1 %2176  ;;  %v2175_v34 = vpop.permute.xlu0 %2174 }
 0x522   : > { %v2181_v45 = vmul.f32 %v4035_v19, %v2177_v33  ;;  %v2180_v55 = vmul.f32 %v4035_v19, %v2175_v34  ;;  %v4042_v19 = vld [vmem:[#allocation8 + $0xa] ss:$0 sm:$0xff]  ;;  %v2331_v33 = vmul.f32 %v4044_v25, %v5313_v41 }
 0x524   : > { %v2183_v47 = vadd.f32 %v2181_v45, %v2166_v43  ;;  %v2182_v10 = vadd.f32 %v2180_v55, %v2165_v44  ;;  %v4043_v43 = vld [vmem:[#allocation8 + $0xb] ss:$0 sm:$0xff]  ;;  %v2351_v44 = vmul.f32 %v4045_v8, %v5342_v50  ;;  %v2308_v45 = vmul.f32 %v4042_v19, %v5385_v62 }
 0x525   : > { %v2207_v53 = vpop.permute.xlu1 %2206  ;;  %v2205_v57 = vpop.permute.xlu0 %2204  ;;  %v2307_v55 = vmul.f32 %v4042_v19, %v5387_v24  ;;  %v2337_v48 = vrot.slane %v2331_v33, 2  ;;  %v2341_v62 = vsel %vm647_vm7, %v2338_v42, %v2340_v0 }
 0x526   : > { %v2198_v46 = vadd.f32 %v2196_v3, %v2183_v47  ;;  %v2211_v1 = vmul.f32 %v4037_v59, %v2207_v53  ;;  %v2197_v2 = vadd.f32 %v2195_v54, %v2182_v10  ;;  %v2210_v58 = vmul.f32 %v4037_v59, %v2205_v57  ;;  %v4046_v53 = vld [vmem:[#allocation8 + $0xe] ss:$0 sm:$0xff] }
 0x527   : > { %v2357_v52 = vrot.slane %v2351_v44, 2  ;;  %v2339_v24 = vsel %vm647_vm7, %v2337_v48, %v2338_v42 }
 0x528   : > { %v2213_v18 = vadd.f32 %v2211_v1, %v2198_v46  ;;  %v2212_v11 = vadd.f32 %v2210_v58, %v2197_v2  ;;  %v2361_v2 = vsel %vm647_vm7, %v2358_v6, %v2360_v12  ;;  %v4047_v58 = vld [vmem:[#allocation8 + $0xf] ss:$0 sm:$0xff] }
 0x529   : > { %v2379_v60 = vpop.permute.xlu1 %2378  ;;  %v2377_v13 = vpop.permute.xlu0 %2376  ;;  %v2359_v15 = vsel %vm647_vm7, %v2357_v52, %v2358_v6 }
 0x52a   : > { %v2233_v5 = vadd.f32 %v2229_v4, %v2213_v18  ;;  %v2232_v22 = vadd.f32 %v2227_v21, %v2212_v11  ;;  %v2383_v16 = vmul.f32 %v4046_v53, %v2379_v60  ;;  %v2382_v17 = vmul.f32 %v4046_v53, %v2377_v13 }
 0x52c   : > { %v2253_v29 = vadd.f32 %v2249_v14, %v2233_v5  ;;  %v2252_v63 = vadd.f32 %v2247_v27, %v2232_v22  ;;  %v4049_v14 = vld [vmem:[#allocation8 + $0x11] ss:$0 sm:$0xff] }
 0x52d   : > { %v2289_v30 = vpop.permute.xlu1 %2288  ;;  %v2287_v9 = vpop.permute.xlu0 %2286 }
 0x52e   : > { %v2274_v34 = vadd.f32 %v2272_v7, %v2253_v29  ;;  %v2293_v35 = vmul.f32 %v4041_v26, %v2289_v30  ;;  %v2273_v36 = vadd.f32 %v2271_v28, %v2252_v63  ;;  %v2292_v38 = vmul.f32 %v4041_v26, %v2287_v9  ;;  %v4050_v9 = vld [vmem:[%s6174_s8] ss:$0 sm:$0xff] }
 0x530   : > { %v2295_v40 = vadd.f32 %v2293_v35, %v2274_v34  ;;  %v2294_v59 = vadd.f32 %v2292_v38, %v2273_v36 }
 0x531   : > { %v2319_v41 = vpop.permute.xlu1 %2318  ;;  %v2317_v49 = vpop.permute.xlu0 %2316 }
 0x532   : > { %v2310_v3 = vadd.f32 %v2308_v45, %v2295_v40  ;;  %v2323_v54 = vmul.f32 %v4043_v43, %v2319_v41  ;;  %v2309_v47 = vadd.f32 %v2307_v55, %v2294_v59  ;;  %v2322_v10 = vmul.f32 %v4043_v43, %v2317_v49 }
 0x534   : > { %v2325_v51 = vadd.f32 %v2323_v54, %v2310_v3  ;;  %v2324_v50 = vadd.f32 %v2322_v10, %v2309_v47 }
 0x535   : > { %v2414_v56 = vpop.permute.xlu1 %2413  ;;  %v2412_v57 = vpop.permute.xlu0 %2411 }
 0x536   : > { %v2345_v46 = vadd.f32 %v2341_v62, %v2325_v51  ;;  %v2344_v1 = vadd.f32 %v2339_v24, %v2324_v50  ;;  %v2418_v27 = vmul.f32 %v4048_v20, %v2414_v56  ;;  %v2417_v7 = vmul.f32 %v4048_v20, %v2412_v57 }
 0x538   : > { %v2365_v18 = vadd.f32 %v2361_v2, %v2345_v46  ;;  %v2364_v11 = vadd.f32 %v2359_v15, %v2344_v1 }
 0x539   : > { %v2399_v4 = vpop.permute.xlu1 %2398  ;;  %v2397_v21 = vpop.permute.xlu0 %2396 }
 0x53a   : > { %v2385_v5 = vadd.f32 %v2383_v16, %v2365_v18  ;;  %v2403_v22 = vmul.f32 %v4047_v58, %v2399_v4  ;;  %v2384_v25 = vadd.f32 %v2382_v17, %v2364_v11  ;;  %v2402_v26 = vmul.f32 %v4047_v58, %v2397_v21 }
 0x53c   : > { %v2405_v28 = vadd.f32 %v2403_v22, %v2385_v5  ;;  %v2404_v29 = vadd.f32 %v2402_v26, %v2384_v25 }
 0x53d   : > { %v2429_v63 = vpop.permute.xlu1 %2428  ;;  %v2427_v8 = vpop.permute.xlu0 %2426 }
 0x53e   : > { %v2420_v19 = vadd.f32 %v2418_v27, %v2405_v28  ;;  %v2433_v30 = vmul.f32 %v4049_v14, %v2429_v63  ;;  %v2419_v60 = vadd.f32 %v2417_v7, %v2404_v29  ;;  %v2432_v13 = vmul.f32 %v4049_v14, %v2427_v8 }
 0x540   : > { %v2435_v31 = vadd.f32 %v2433_v30, %v2420_v19  ;;  %v2434_v32 = vadd.f32 %v2432_v13, %v2419_v60 }
 0x542   : > { %v2444_v33 = vadd.f32 %v4050_v9, %v2435_v31  ;;  %v2443_v34 = vadd.f32 %v4050_v9, %v2434_v32 }
 0x544   : > { %v2446_v35 = vmul.f32 0.2, %v2444_v33  ;;  %v2445_v36 = vmul.f32 0.2, %v2443_v34 }
 0x546   : > { %v2448_v38 = vmax.f32 %v2444_v33, %v2446_v35  ;;  %v2447_v43 = vmax.f32 %v2443_v34, %v2445_v36 }
 0x548   : > { %2453 = vrot.lane.b32.xlu1 %v2448_v38, %s6217_s0  ;;  %2451 = vrot.lane.b32.xlu0 %v2447_v43, %s6217_s0 }
 0x54c   : > { %2461 = vrot.lane.b32.xlu1 %v2448_v38, %s6218_s1  ;;  %2459 = vrot.lane.b32.xlu0 %v2447_v43, %s6218_s1  ;;  %s3842_s1 = sshll.u32 %s475_s24, 4  ;;  %s6123_s1 = int_to_ptr.vmem [resolvable:$true] %s3842_s1 }
 0x550   : > { %2469 = vrot.lane.b32.xlu1 %v2448_v38, %s6219_s22  ;;  %2467 = vrot.lane.b32.xlu0 %v2447_v43, %s6219_s22 }
 0x554   : > { %2485 = vrot.lane.b32.xlu1 %v2448_v38, %s6221_s21  ;;  %2483 = vrot.lane.b32.xlu0 %v2447_v43, %s6221_s21 }
 0x558   : > { %2477 = vrot.lane.b32.xlu1 %v2448_v38, %s6220_s16  ;;  %2475 = vrot.lane.b32.xlu0 %v2447_v43, %s6220_s16 }
 0x55c   : > { %2499 = vrot.lane.b32.xlu1 %v2448_v38, %s6213_s23  ;;  %2497 = vrot.lane.b32.xlu0 %v2447_v43, %s6213_s23 }
 0x560   : > { %2513 = vrot.lane.b32.xlu1 %v2448_v38, %s6214_s4  ;;  %2511 = vrot.lane.b32.xlu0 %v2447_v43, %s6214_s4 }
 0x5ba   : > { %v2454_v61 = vpop.permute.xlu1 %2453  ;;  %v2452_v23 = vpop.permute.xlu0 %2451 }
 0x5bb   : > { %2458 = vst.msk [vmem:[#allocation2 + $0x9] sm:$0xff] %vm505_vm2, %v2454_v61  ;;  %2457 = vst.msk [vmem:[#allocation2 + $0x1] sm:$0xff] %vm505_vm2, %v2452_v23 }
 0x5be   : > { %v2462_v44 = vpop.permute.xlu1 %2461  ;;  %v2460_v45 = vpop.permute.xlu0 %2459 }
 0x5bf   : > { %2466 = vst.msk [vmem:[#allocation2 + $0x9] sm:$0xff] %vm514_vm3, %v2462_v44  ;;  %2465 = vst.msk [vmem:[#allocation2 + $0x1] sm:$0xff] %vm514_vm3, %v2460_v45 }
 0x5c2   : > { %v2470_v55 = vpop.permute.xlu1 %2469  ;;  %v2468_v40 = vpop.permute.xlu0 %2467 }
 0x5c3   : > { %2474 = vst.msk [vmem:[#allocation2 + $0x9] sm:$0xff] %vm523_vm4, %v2470_v55  ;;  %2473 = vst.msk [vmem:[#allocation2 + $0x1] sm:$0xff] %vm523_vm4, %v2468_v40 }
 0x5c6   : > { %v2486_v59 = vpop.permute.xlu1 %2485  ;;  %v2484_v42 = vpop.permute.xlu0 %2483 }
 0x5c7   : > { %2490 = vst.msk [vmem:[#allocation2 + $0x21] sm:$0xff] %vm505_vm2, %v2486_v59  ;;  %2489 = vst.msk [vmem:[#allocation2 + $0x19] sm:$0xff] %vm505_vm2, %v2484_v42 }
 0x5c8   : > { %2492 = vst.msk [vmem:[#allocation2 + $0x21] sm:$0xff] %vm514_vm3, %v2454_v61  ;;  %2491 = vst.msk [vmem:[#allocation2 + $0x19] sm:$0xff] %vm514_vm3, %v2452_v23 }
 0x5c9   : > { %2494 = vst.msk [vmem:[#allocation2 + $0x21] sm:$0xff] %vm523_vm4, %v2462_v44  ;;  %2493 = vst.msk [vmem:[#allocation2 + $0x19] sm:$0xff] %vm523_vm4, %v2460_v45 }
 0x5ca   : > { %2496 = vst.msk [vmem:[#allocation2 + $0x21] sm:$0xff] %vm532_vm5, %v2470_v55  ;;  %2495 = vst.msk [vmem:[#allocation2 + $0x19] sm:$0xff] %vm532_vm5, %v2468_v40  ;;  %v2478_v0 = vpop.permute.xlu1 %2477  ;;  %v2476_v41 = vpop.permute.xlu0 %2475 }
 0x5cb   : > { %2482 = vst.msk [vmem:[#allocation2 + $0x9] sm:$0xff] %vm532_vm5, %v2478_v0  ;;  %2481 = vst.msk [vmem:[#allocation2 + $0x1] sm:$0xff] %vm532_vm5, %v2476_v41 }
 0x5ce   : > { %v2500_v48 = vpop.permute.xlu1 %2499  ;;  %v2498_v49 = vpop.permute.xlu0 %2497 }
 0x5cf   : > { %2504 = vst.msk [vmem:[#allocation2 + $0x39] sm:$0xff] %vm505_vm2, %v2500_v48  ;;  %2503 = vst.msk [vmem:[#allocation2 + $0x31] sm:$0xff] %vm505_vm2, %v2498_v49 }
 0x5d0   : > { %2506 = vst.msk [vmem:[#allocation2 + $0x39] sm:$0xff] %vm514_vm3, %v2486_v59  ;;  %2505 = vst.msk [vmem:[#allocation2 + $0x31] sm:$0xff] %vm514_vm3, %v2484_v42 }
 0x5d1   : > { %2508 = vst.msk [vmem:[#allocation2 + $0x39] sm:$0xff] %vm523_vm4, %v2454_v61  ;;  %2507 = vst.msk [vmem:[#allocation2 + $0x31] sm:$0xff] %vm523_vm4, %v2452_v23  ;;  %v5468_v6 = vld [vmem:[#allocation2 + $0x20] sm:$0xff]  ;;  %v5470_v12 = vld [vmem:[#allocation2 + $0x18] sm:$0xff] }
 0x5d2   : > { %2510 = vst.msk [vmem:[#allocation2 + $0x39] sm:$0xff] %vm532_vm5, %v2462_v44  ;;  %2509 = vst.msk [vmem:[#allocation2 + $0x31] sm:$0xff] %vm532_vm5, %v2460_v45  ;;  %v2514_v3 = vpop.permute.xlu1 %2513  ;;  %v2512_v54 = vpop.permute.xlu0 %2511  ;;  %v5452_v47 = vld [vmem:[#allocation2 + $0x8] sm:$0xff]  ;;  %v5454_v10 = vld [vmem:[#allocation2] sm:$0xff]  ;;  %v2809_v1 = vrot.slane %v5468_v6, 1  ;;  %v2808_v16 = vrot.slane %v5470_v12, 1 }
 0x5d3   : > { %2518 = vst.msk [vmem:[#allocation2 + $0x51] sm:$0xff] %vm505_vm2, %v2514_v3  ;;  %2517 = vst.msk [vmem:[#allocation2 + $0x49] sm:$0xff] %vm505_vm2, %v2512_v54  ;;  %2582 = vrot.lane.b32.xlu1 %v5452_v47, %s6215_s15  ;;  %2580 = vrot.lane.b32.xlu0 %v5454_v10, %s6215_s15  ;;  %v5504_v62 = vld [vmem:[#allocation2 + $0x10] sm:$0x3]  ;;  %v2788_v24 = vrot.slane %v5452_v47, 1  ;;  %v2787_v57 = vrot.slane %v5454_v10, 1 }
 0x5d4   : > { %2520 = vst.msk [vmem:[#allocation2 + $0x51] sm:$0xff] %vm514_vm3, %v2500_v48  ;;  %2519 = vst.msk [vmem:[#allocation2 + $0x49] sm:$0xff] %vm514_vm3, %v2498_v49  ;;  %v2790_v56 = vrot.slane %v5504_v62, 1  ;;  %v5513_v46 = vld [vmem:[#allocation2 + $0x28] sm:$0x3]  ;;  %v2810_v4 = vsel %vm590_vm6, %v2808_v16, %v2809_v1  ;;  %v3011_v29 = vrot.slane %v5452_v47, 2 }
 0x5d5   : > { %2522 = vst.msk [vmem:[#allocation2 + $0x51] sm:$0xff] %vm523_vm4, %v2486_v59  ;;  %2521 = vst.msk [vmem:[#allocation2 + $0x49] sm:$0xff] %vm523_vm4, %v2484_v42  ;;  %v2789_v58 = vsel %vm590_vm6, %v2787_v57, %v2788_v24  ;;  %v2811_v15 = vrot.slane %v5513_v46, 1  ;;  %v3013_v63 = vrot.slane %v5504_v62, 2  ;;  %v3010_v8 = vrot.slane %v5454_v10, 2 }
 0x5d6   : > { %2524 = vst.msk [vmem:[#allocation2 + $0x51] sm:$0xff] %vm532_vm5, %v2454_v61  ;;  %2523 = vst.msk [vmem:[#allocation2 + $0x49] sm:$0xff] %vm532_vm5, %v2452_v23  ;;  %v2791_v2 = vsel %vm590_vm6, %v2788_v24, %v2790_v56  ;;  %v3031_v19 = vrot.slane %v5468_v6, 2  ;;  %v3033_v13 = vrot.slane %v5513_v46, 2  ;;  %v3030_v9 = vrot.slane %v5470_v12, 2 }
 0x5d7   : > { %2599 = vrot.lane.b32.xlu1 %v5468_v6, %s6215_s15  ;;  %2597 = vrot.lane.b32.xlu0 %v5470_v12, %s6215_s15  ;;  %v2812_v20 = vsel %vm590_vm6, %v2809_v1, %v2811_v15  ;;  %v3014_v30 = vsel %vm647_vm7, %v3011_v29, %v3013_v63  ;;  %v3012_v60 = vsel %vm647_vm7, %v3010_v8, %v3011_v29  ;;  %v4051_v59 = vld [vmem:[%s6175_s9] ss:$0 sm:$0xff]  ;;  %v4052_v42 = vld [vmem:[%s6175_s9 + $0x1] ss:$0 sm:$0xff] }
 0x5d8   : > { %v3034_v33 = vsel %vm647_vm7, %v3031_v19, %v3033_v13  ;;  %v3032_v34 = vsel %vm647_vm7, %v3030_v9, %v3031_v19  ;;  %v4053_v48 = vld [vmem:[%s6175_s9 + $0x2] ss:$0 sm:$0xff]  ;;  %v2552_v49 = vmul.f32 %v4052_v42, %v5468_v6  ;;  %v2543_v3 = vmul.f32 %v4051_v59, %v5452_v47  ;;  %v4054_v56 = vld [vmem:[%s6175_s9 + $0x3] ss:$0 sm:$0xff]  ;;  %v4055_v15 = vld [vmem:[%s6175_s9 + $0x4] ss:$0 sm:$0xff] }
 0x5d9   : > { %v5476_v52 = vld [vmem:[#allocation2 + $0x38] sm:$0xff]  ;;  %v5478_v51 = vld [vmem:[#allocation2 + $0x30] sm:$0xff]  ;;  %v5520_v17 = vld [vmem:[#allocation2 + $0x40] sm:$0x3]  ;;  %v2542_v54 = vmul.f32 %v4051_v59, %v5454_v10  ;;  %v2551_v24 = vmul.f32 %v4052_v42, %v5470_v12 }
 0x5da   : > { %v2830_v18 = vrot.slane %v5476_v52, 1  ;;  %v2832_v11 = vrot.slane %v5520_v17, 1  ;;  %v2829_v21 = vrot.slane %v5478_v51, 1  ;;  %v3051_v31 = vrot.slane %v5476_v52, 2  ;;  %v4058_v19 = vld [vmem:[%s6175_s9 + $0x7] ss:$0 sm:$0xff] }
 0x5db   : > { %2616 = vrot.lane.b32.xlu1 %v5476_v52, %s6215_s15  ;;  %2614 = vrot.lane.b32.xlu0 %v5478_v51, %s6215_s15  ;;  %v3053_v32 = vrot.slane %v5520_v17, 2  ;;  %v3050_v35 = vrot.slane %v5478_v51, 2  ;;  %v2554_v16 = vadd.f32 %v2552_v49, %v2543_v3 }
 0x5dc   : > { %v2833_v22 = vsel %vm590_vm6, %v2830_v18, %v2832_v11  ;;  %v2831_v25 = vsel %vm590_vm6, %v2829_v21, %v2830_v18  ;;  %v2553_v11 = vadd.f32 %v2551_v24, %v2542_v54 }
 0x5dd   : > { %v5484_v50 = vld [vmem:[#allocation2 + $0x50] sm:$0xff]  ;;  %v5486_v53 = vld [vmem:[#allocation2 + $0x48] sm:$0xff]  ;;  %v5531_v5 = vld [vmem:[#allocation2 + $0x58] sm:$0x3]  ;;  %v3054_v36 = vsel %vm647_vm7, %v3051_v31, %v3053_v32  ;;  %v3052_v38 = vsel %vm647_vm7, %v3050_v35, %v3051_v31 }
 0x5de   : > { %v2851_v26 = vrot.slane %v5484_v50, 1  ;;  %v2853_v14 = vrot.slane %v5531_v5, 1  ;;  %v2850_v27 = vrot.slane %v5486_v53, 1  ;;  %v3071_v43 = vrot.slane %v5484_v50, 2 }
 0x5df   : > { %2633 = vrot.lane.b32.xlu1 %v5484_v50, %s6215_s15  ;;  %2631 = vrot.lane.b32.xlu0 %v5486_v53, %s6215_s15  ;;  %v3073_v61 = vrot.slane %v5531_v5, 2  ;;  %v3070_v23 = vrot.slane %v5486_v53, 2  ;;  %v2570_v18 = vmul.f32 %v4054_v56, %v5484_v50 }
 0x5e0   : > { %v2854_v7 = vsel %vm590_vm6, %v2851_v26, %v2853_v14  ;;  %v2852_v28 = vsel %vm590_vm6, %v2850_v27, %v2851_v26 }
 0x5e1   : > { %v3074_v44 = vsel %vm647_vm7, %v3071_v43, %v3073_v61  ;;  %v3072_v45 = vsel %vm647_vm7, %v3070_v23, %v3071_v43  ;;  %v4063_v43 = vld [vmem:[%s6175_s9 + $0xc] ss:$0 sm:$0xff]  ;;  %v4064_v61 = vld [vmem:[%s6175_s9 + $0xd] ss:$0 sm:$0xff]  ;;  %v4060_v23 = vld [vmem:[%s6175_s9 + $0x9] ss:$0 sm:$0xff] }
 0x5e2   : > { %v2727_v49 = vmul.f32 %v4064_v61, %v5468_v6  ;;  %v2728_v3 = vmul.f32 %v4064_v61, %v5513_v46 }
 0x5e3   : > { %2648 = vrot.lane.b32.xlu1 %v5452_v47, %s6216_s30  ;;  %2646 = vrot.lane.b32.xlu0 %v5454_v10, %s6216_s30 }
 0x5e7   : > { %2663 = vrot.lane.b32.xlu1 %v5468_v6, %s6216_s30  ;;  %2661 = vrot.lane.b32.xlu0 %v5470_v12, %s6216_s30 }
 0x5eb   : > { %2678 = vrot.lane.b32.xlu1 %v5476_v52, %s6216_s30  ;;  %2676 = vrot.lane.b32.xlu0 %v5478_v51, %s6216_s30 }
 0x5ef   : > { %2693 = vrot.lane.b32.xlu1 %v5484_v50, %s6216_s30  ;;  %2691 = vrot.lane.b32.xlu0 %v5486_v53, %s6216_s30 }
 0x5f3   : > { %2794 = vrot.lane.b32.xlu1 %v2791_v2, %s6215_s15  ;;  %2792 = vrot.lane.b32.xlu0 %v2789_v58, %s6215_s15 }
 0x5f7   : > { %2815 = vrot.lane.b32.xlu1 %v2812_v20, %s6215_s15  ;;  %2813 = vrot.lane.b32.xlu0 %v2810_v4, %s6215_s15 }
 0x5fb   : > { %2836 = vrot.lane.b32.xlu1 %v2833_v22, %s6215_s15  ;;  %2834 = vrot.lane.b32.xlu0 %v2831_v25, %s6215_s15 }
 0x5ff   : > { %2857 = vrot.lane.b32.xlu1 %v2854_v7, %s6215_s15  ;;  %2855 = vrot.lane.b32.xlu0 %v2852_v28, %s6215_s15 }
 0x603   : > { %2872 = vrot.lane.b32.xlu1 %v2791_v2, %s6216_s30  ;;  %2870 = vrot.lane.b32.xlu0 %v2789_v58, %s6216_s30  ;;  %v2561_v2 = vmul.f32 %v4053_v48, %v5476_v52  ;;  %v2560_v58 = vmul.f32 %v4053_v48, %v5478_v51  ;;  %v2708_v48 = vmul.f32 %v4063_v43, %v5504_v62 }
 0x605   : > { %v2562_v14 = vadd.f32 %v2560_v58, %v2553_v11  ;;  %v2706_v58 = vmul.f32 %v4063_v43, %v5454_v10 }
 0x607   : > { %2887 = vrot.lane.b32.xlu1 %v2812_v20, %s6216_s30  ;;  %2885 = vrot.lane.b32.xlu0 %v2810_v4, %s6216_s30  ;;  %v2569_v20 = vmul.f32 %v4054_v56, %v5486_v53  ;;  %v4056_v4 = vld [vmem:[%s6175_s9 + $0x5] ss:$0 sm:$0xff] }
 0x609   : > { %v2571_v29 = vadd.f32 %v2569_v20, %v2562_v14  ;;  %v4065_v20 = vld [vmem:[%s6175_s9 + $0xe] ss:$0 sm:$0xff] }
 0x60b   : > { %2902 = vrot.lane.b32.xlu1 %v2833_v22, %s6216_s30  ;;  %2900 = vrot.lane.b32.xlu0 %v2831_v25, %s6216_s30  ;;  %v2563_v25 = vadd.f32 %v2561_v2, %v2554_v16 }
 0x60f   : > { %2917 = vrot.lane.b32.xlu1 %v2854_v7, %s6216_s30  ;;  %2915 = vrot.lane.b32.xlu0 %v2852_v28, %s6216_s30  ;;  %v4057_v7 = vld [vmem:[%s6175_s9 + $0x6] ss:$0 sm:$0xff]  ;;  %v2572_v28 = vadd.f32 %v2570_v18, %v2563_v25  ;;  %v2726_v25 = vmul.f32 %v4064_v61, %v5470_v12 }
 0x613   : > { %3017 = vrot.lane.b32.xlu1 %v3014_v30, %s6215_s15  ;;  %3015 = vrot.lane.b32.xlu0 %v3012_v60, %s6215_s15 }
 0x617   : > { %3037 = vrot.lane.b32.xlu1 %v3034_v33, %s6215_s15  ;;  %3035 = vrot.lane.b32.xlu0 %v3032_v34, %s6215_s15 }
 0x61b   : > { %3057 = vrot.lane.b32.xlu1 %v3054_v36, %s6215_s15  ;;  %3055 = vrot.lane.b32.xlu0 %v3052_v38, %s6215_s15 }
 0x61f   : > { %3077 = vrot.lane.b32.xlu1 %v3074_v44, %s6215_s15  ;;  %3075 = vrot.lane.b32.xlu0 %v3072_v45, %s6215_s15 }
 0x623   : > { %3092 = vrot.lane.b32.xlu1 %v3014_v30, %s6216_s30  ;;  %3090 = vrot.lane.b32.xlu0 %v3012_v60, %s6216_s30 }
 0x627   : > { %3107 = vrot.lane.b32.xlu1 %v3034_v33, %s6216_s30  ;;  %3105 = vrot.lane.b32.xlu0 %v3032_v34, %s6216_s30  ;;  %v4059_v33 = vld [vmem:[%s6175_s9 + $0x8] ss:$0 sm:$0xff] }
 0x62b   : > { %3122 = vrot.lane.b32.xlu1 %v3054_v36, %s6216_s30  ;;  %3120 = vrot.lane.b32.xlu0 %v3052_v38, %s6216_s30 }
 0x62f   : > { %3137 = vrot.lane.b32.xlu1 %v3074_v44, %s6216_s30  ;;  %3135 = vrot.lane.b32.xlu0 %v3072_v45, %s6216_s30 }
 0x645   : > { %v2583_v55 = vpop.permute.xlu1 %2582  ;;  %v2581_v40 = vpop.permute.xlu0 %2580 }
 0x646   : > { %v2587_v26 = vmul.f32 %v4055_v15, %v2583_v55  ;;  %v2586_v27 = vmul.f32 %v4055_v15, %v2581_v40 }
 0x648   : > { %v2589_v13 = vadd.f32 %v2587_v26, %v2572_v28  ;;  %v2588_v9 = vadd.f32 %v2586_v27, %v2571_v29  ;;  %v2733_v27 = vrot.slane %v2727_v49, 1  ;;  %v4066_v28 = vld [vmem:[%s6175_s9 + $0xf] ss:$0 sm:$0xff] }
 0x649   : > { %v2600_v0 = vpop.permute.xlu1 %2599  ;;  %v2598_v41 = vpop.permute.xlu0 %2597 }
 0x64a   : > { %v2604_v63 = vmul.f32 %v4056_v4, %v2600_v0  ;;  %v2603_v8 = vmul.f32 %v4056_v4, %v2598_v41  ;;  %v4061_v0 = vld [vmem:[%s6175_s9 + $0xa] ss:$0 sm:$0xff]  ;;  %v2707_v41 = vmul.f32 %v4063_v43, %v5452_v47  ;;  %v4062_v4 = vld [vmem:[%s6175_s9 + $0xb] ss:$0 sm:$0xff] }
 0x64c   : > { %v2606_v34 = vadd.f32 %v2604_v63, %v2589_v13  ;;  %v2605_v35 = vadd.f32 %v2603_v8, %v2588_v9  ;;  %v2712_v63 = vrot.slane %v2706_v58, 1 }
 0x64d   : > { %v2617_v57 = vpop.permute.xlu1 %2616  ;;  %v2615_v1 = vpop.permute.xlu0 %2614 }
 0x64e   : > { %v2621_v31 = vmul.f32 %v4057_v7, %v2617_v57  ;;  %v2620_v32 = vmul.f32 %v4057_v7, %v2615_v1  ;;  %v2735_v7 = vrot.slane %v2728_v3, 1 }
 0x650   : > { %v2623_v55 = vadd.f32 %v2621_v31, %v2606_v34  ;;  %v2622_v40 = vadd.f32 %v2620_v32, %v2605_v35  ;;  %v2768_v34 = vmul.f32 %v4066_v28, %v5531_v5  ;;  %v2767_v35 = vmul.f32 %v4066_v28, %v5484_v50 }
 0x651   : > { %v2634_v21 = vpop.permute.xlu1 %2633  ;;  %v2632_v22 = vpop.permute.xlu0 %2631 }
 0x652   : > { %v2638_v36 = vmul.f32 %v4058_v19, %v2634_v21  ;;  %v2637_v38 = vmul.f32 %v4058_v19, %v2632_v22  ;;  %v2713_v21 = vrot.slane %v2707_v41, 1  ;;  %v2715_v22 = vrot.slane %v2708_v48, 1 }
 0x653   : > { %v2747_v19 = vmul.f32 %v4065_v20, %v5476_v52  ;;  %v2775_v49 = vrot.slane %v2768_v34, 1  ;;  %v2773_v3 = vrot.slane %v2767_v35, 1  ;;  %v4071_v35 = vld [vmem:[%s6175_s9 + $0x14] ss:$0 sm:$0xff] }
 0x654   : > { %v2640_v54 = vadd.f32 %v2638_v36, %v2623_v55  ;;  %v2639_v24 = vadd.f32 %v2637_v38, %v2622_v40  ;;  %v2766_v36 = vmul.f32 %v4066_v28, %v5486_v53  ;;  %v2716_v38 = vsel %vm590_vm6, %v2713_v21, %v2715_v22 }
 0x655   : > { %v2649_v30 = vpop.permute.xlu1 %2648  ;;  %v2647_v60 = vpop.permute.xlu0 %2646 }
 0x656   : > { %v2653_v59 = vmul.f32 %v4059_v33, %v2649_v30  ;;  %v2652_v42 = vmul.f32 %v4059_v33, %v2647_v60  ;;  %v2748_v30 = vmul.f32 %v4065_v20, %v5520_v17  ;;  %v2746_v60 = vmul.f32 %v4065_v20, %v5478_v51 }
 0x657   : > { %v2732_v33 = vrot.slane %v2726_v25, 1 }
 0x658   : > { %v2655_v15 = vadd.f32 %v2653_v59, %v2640_v54  ;;  %v2654_v16 = vadd.f32 %v2652_v42, %v2639_v24  ;;  %v2752_v40 = vrot.slane %v2746_v60, 1  ;;  %v2736_v42 = vsel %vm590_vm6, %v2733_v27, %v2735_v7 }
 0x659   : > { %v2664_v44 = vpop.permute.xlu1 %2663  ;;  %v2662_v45 = vpop.permute.xlu0 %2661  ;;  %v2734_v48 = vsel %vm590_vm6, %v2732_v33, %v2733_v27  ;;  %v2772_v54 = vrot.slane %v2766_v36, 1  ;;  %v4068_v27 = vld [vmem:[%s6175_s9 + $0x11] ss:$0 sm:$0xff] }
 0x65a   : > { %v2668_v56 = vmul.f32 %v4060_v23, %v2664_v44  ;;  %v2667_v57 = vmul.f32 %v4060_v23, %v2662_v45  ;;  %v2714_v23 = vsel %vm590_vm6, %v2712_v63, %v2713_v21  ;;  %v2753_v44 = vrot.slane %v2747_v19, 1 }
 0x65b   : > { %v2755_v45 = vrot.slane %v2748_v30, 1  ;;  %v2774_v20 = vsel %vm590_vm6, %v2772_v54, %v2773_v3  ;;  %v4069_v30 = vld [vmem:[%s6175_s9 + $0x12] ss:$0 sm:$0xff] }
 0x65c   : > { %v2670_v26 = vadd.f32 %v2668_v56, %v2655_v15  ;;  %v2669_v14 = vadd.f32 %v2667_v57, %v2654_v16 }
 0x65d   : > { %v2679_v1 = vpop.permute.xlu1 %2678  ;;  %v2677_v2 = vpop.permute.xlu0 %2676  ;;  %v2756_v57 = vsel %vm590_vm6, %v2753_v44, %v2755_v45  ;;  %v4072_v45 = vld [vmem:[%s6175_s9 + $0x15] ss:$0 sm:$0xff] }
 0x65e   : > { %v2683_v18 = vmul.f32 %v4061_v0, %v2679_v1  ;;  %v2682_v11 = vmul.f32 %v4061_v0, %v2677_v2  ;;  %v2754_v1 = vsel %vm590_vm6, %v2752_v40, %v2753_v44  ;;  %v4076_v44 = vld [vmem:[%s6175_s9 + $0x19] ss:$0 sm:$0xff] }
 0x660   : > { %v2685_v13 = vadd.f32 %v2683_v18, %v2670_v26  ;;  %v2684_v9 = vadd.f32 %v2682_v11, %v2669_v14  ;;  %v4067_v18 = vld [vmem:[%s6175_s9 + $0x10] ss:$0 sm:$0xff]  ;;  %v2776_v11 = vsel %vm590_vm6, %v2773_v3, %v2775_v49  ;;  %v2951_v49 = vmul.f32 %v4076_v44, %v5468_v6  ;;  %v4074_v6 = vld [vmem:[%s6175_s9 + $0x17] ss:$0 sm:$0xff] }
 0x661   : > { %v2694_v29 = vpop.permute.xlu1 %2693  ;;  %v2692_v8 = vpop.permute.xlu0 %2691  ;;  %v2952_v3 = vmul.f32 %v4076_v44, %v5513_v46 }
 0x662   : > { %v2698_v31 = vmul.f32 %v4062_v4, %v2694_v29  ;;  %v2697_v32 = vmul.f32 %v4062_v4, %v2692_v8 }
 0x664   : > { %v2700_v43 = vadd.f32 %v2698_v31, %v2685_v13  ;;  %v2699_v61 = vadd.f32 %v2697_v32, %v2684_v9  ;;  %v4070_v9 = vld [vmem:[%s6175_s9 + $0x13] ss:$0 sm:$0xff] }
 0x665   : > { %v2795_v55 = vpop.permute.xlu1 %2794  ;;  %v2793_v59 = vpop.permute.xlu0 %2792 }
 0x666   : > { %v2720_v0 = vadd.f32 %v2716_v38, %v2700_v43  ;;  %v2719_v41 = vadd.f32 %v2714_v23, %v2699_v61  ;;  %v2799_v26 = vmul.f32 %v4067_v18, %v2795_v55  ;;  %v2798_v14 = vmul.f32 %v4067_v18, %v2793_v59  ;;  %v4075_v23 = vld [vmem:[%s6175_s9 + $0x18] ss:$0 sm:$0xff] }
 0x668   : > { %v2740_v24 = vadd.f32 %v2736_v42, %v2720_v0  ;;  %v2739_v56 = vadd.f32 %v2734_v48, %v2719_v41  ;;  %v4073_v0 = vld [vmem:[%s6175_s9 + $0x16] ss:$0 sm:$0xff]  ;;  %v2931_v41 = vmul.f32 %v4075_v23, %v5452_v47  ;;  %v2932_v48 = vmul.f32 %v4075_v23, %v5504_v62  ;;  %v4077_v47 = vld [vmem:[%s6175_s9 + $0x1a] ss:$0 sm:$0xff] }
 0x669   : > { %v2816_v2 = vpop.permute.xlu1 %2815  ;;  %v2814_v58 = vpop.permute.xlu0 %2813 }
 0x66a   : > { %v2760_v15 = vadd.f32 %v2756_v57, %v2740_v24  ;;  %v2759_v16 = vadd.f32 %v2754_v1, %v2739_v56  ;;  %v2820_v8 = vmul.f32 %v4068_v27, %v2816_v2  ;;  %v2819_v19 = vmul.f32 %v4068_v27, %v2814_v58 }
 0x66b   : > { %v2930_v58 = vmul.f32 %v4075_v23, %v5454_v10  ;;  %v2937_v62 = vrot.slane %v2931_v41, 2  ;;  %v2939_v46 = vrot.slane %v2932_v48, 2  ;;  %v2959_v10 = vrot.slane %v2952_v3, 2 }
 0x66c   : > { %v2780_v4 = vadd.f32 %v2776_v11, %v2760_v15  ;;  %v2779_v21 = vadd.f32 %v2774_v20, %v2759_v16  ;;  %v2950_v20 = vmul.f32 %v4076_v44, %v5470_v12 }
 0x66d   : > { %v2837_v22 = vpop.permute.xlu1 %2836  ;;  %v2835_v25 = vpop.permute.xlu0 %2834 }
 0x66e   : > { %v2801_v7 = vadd.f32 %v2799_v26, %v2780_v4  ;;  %v2800_v28 = vadd.f32 %v2798_v14, %v2779_v21  ;;  %v2841_v33 = vmul.f32 %v4069_v30, %v2837_v22  ;;  %v2840_v34 = vmul.f32 %v4069_v30, %v2835_v25  ;;  %v4078_v25 = vld [vmem:[%s6175_s9 + $0x1b] ss:$0 sm:$0xff] }
 0x66f   : > { %v2957_v22 = vrot.slane %v2951_v49, 2  ;;  %v2936_v14 = vrot.slane %v2930_v58, 2  ;;  %v2956_v30 = vrot.slane %v2950_v20, 2  ;;  %v4079_v49 = vld [vmem:[%s6175_s9 + $0x1c] ss:$0 sm:$0xff] }
 0x670   : > { %v2822_v60 = vadd.f32 %v2820_v8, %v2801_v7  ;;  %v2821_v13 = vadd.f32 %v2819_v19, %v2800_v28  ;;  %v2971_v7 = vmul.f32 %v4077_v47, %v5476_v52  ;;  %v2972_v28 = vmul.f32 %v4077_v47, %v5520_v17  ;;  %v4080_v58 = vld [vmem:[%s6175_s9 + $0x1d] ss:$0 sm:$0xff] }
 0x671   : > { %v2858_v29 = vpop.permute.xlu1 %2857  ;;  %v2856_v63 = vpop.permute.xlu0 %2855  ;;  %v2938_v52 = vsel %vm647_vm7, %v2936_v14, %v2937_v62 }
 0x672   : > { %v2843_v36 = vadd.f32 %v2841_v33, %v2822_v60  ;;  %v2842_v38 = vadd.f32 %v2840_v34, %v2821_v13  ;;  %v2862_v43 = vmul.f32 %v4070_v9, %v2858_v29  ;;  %v2861_v61 = vmul.f32 %v4070_v9, %v2856_v63 }
 0x673   : > { %v2970_v29 = vmul.f32 %v4077_v47, %v5478_v51  ;;  %v2991_v60 = vmul.f32 %v4078_v25, %v5484_v50  ;;  %v2992_v13 = vmul.f32 %v4078_v25, %v5531_v5  ;;  %v2990_v9 = vmul.f32 %v4078_v25, %v5486_v53 }
 0x674   : > { %v2864_v54 = vadd.f32 %v2862_v43, %v2843_v36  ;;  %v2863_v24 = vadd.f32 %v2861_v61, %v2842_v38  ;;  %v2977_v17 = vrot.slane %v2971_v7, 2  ;;  %v2979_v34 = vrot.slane %v2972_v28, 2 }
 0x675   : > { %v2873_v31 = vpop.permute.xlu1 %2872  ;;  %v2871_v32 = vpop.permute.xlu0 %2870  ;;  %v2960_v38 = vsel %vm647_vm7, %v2957_v22, %v2959_v10  ;;  %v2958_v50 = vsel %vm647_vm7, %v2956_v30, %v2957_v22  ;;  %v2997_v5 = vrot.slane %v2991_v60, 2  ;;  %v2999_v23 = vrot.slane %v2992_v13, 2  ;;  %v4085_v30 = vld [vmem:[%s6175_s9 + $0x22] ss:$0 sm:$0xff] }
 0x676   : > { %v2877_v59 = vmul.f32 %v4071_v35, %v2873_v31  ;;  %v2876_v42 = vmul.f32 %v4071_v35, %v2871_v32  ;;  %v2940_v31 = vsel %vm647_vm7, %v2937_v62, %v2939_v46  ;;  %v2976_v35 = vrot.slane %v2970_v29, 2  ;;  %v4081_v62 = vld [vmem:[%s6175_s9 + $0x1e] ss:$0 sm:$0xff]  ;;  %v4084_v29 = vld [vmem:[%s6175_s9 + $0x21] ss:$0 sm:$0xff] }
 0x677   : > { %v2996_v53 = vrot.slane %v2990_v9, 2  ;;  %v3000_v48 = vsel %vm647_vm7, %v2997_v5, %v2999_v23 }
 0x678   : > { %v2879_v15 = vadd.f32 %v2877_v59, %v2864_v54  ;;  %v2878_v16 = vadd.f32 %v2876_v42, %v2863_v24 }
 0x679   : > { %v2888_v55 = vpop.permute.xlu1 %2887  ;;  %v2886_v40 = vpop.permute.xlu0 %2885  ;;  %v2998_v3 = vsel %vm647_vm7, %v2996_v53, %v2997_v5 }
 0x67a   : > { %v2892_v56 = vmul.f32 %v4072_v45, %v2888_v55  ;;  %v2891_v57 = vmul.f32 %v4072_v45, %v2886_v40  ;;  %v2980_v55 = vsel %vm647_vm7, %v2977_v17, %v2979_v34  ;;  %v2978_v40 = vsel %vm647_vm7, %v2976_v35, %v2977_v17  ;;  %v4086_v35 = vld [vmem:[%s6175_s9 + $0x23] ss:$0 sm:$0xff] }
 0x67c   : > { %v2894_v4 = vadd.f32 %v2892_v56, %v2879_v15  ;;  %v2893_v21 = vadd.f32 %v2891_v57, %v2878_v16 }
 0x67d   : > { %v2903_v1 = vpop.permute.xlu1 %2902  ;;  %v2901_v2 = vpop.permute.xlu0 %2900 }
 0x67e   : > { %v2907_v18 = vmul.f32 %v4073_v0, %v2903_v1  ;;  %v2906_v11 = vmul.f32 %v4073_v0, %v2901_v2 }
 0x680   : > { %v2909_v63 = vadd.f32 %v2907_v18, %v2894_v4  ;;  %v2908_v8 = vadd.f32 %v2906_v11, %v2893_v21  ;;  %v4082_v4 = vld [vmem:[%s6175_s9 + $0x1f] ss:$0 sm:$0xff] }
 0x681   : > { %v2918_v26 = vpop.permute.xlu1 %2917  ;;  %v2916_v27 = vpop.permute.xlu0 %2915 }
 0x682   : > { %v2922_v12 = vmul.f32 %v4074_v6, %v2918_v26  ;;  %v2921_v19 = vmul.f32 %v4074_v6, %v2916_v27  ;;  %v4083_v26 = vld [vmem:[%s6175_s9 + $0x20] ss:$0 sm:$0xff] }
 0x684   : > { %v2924_v32 = vadd.f32 %v2922_v12, %v2909_v63  ;;  %v2923_v33 = vadd.f32 %v2921_v19, %v2908_v8 }
 0x685   : > { %v3018_v51 = vpop.permute.xlu1 %3017  ;;  %v3016_v36 = vpop.permute.xlu0 %3015 }
 0x686   : > { %v2944_v43 = vadd.f32 %v2940_v31, %v2924_v32  ;;  %v2943_v61 = vadd.f32 %v2938_v52, %v2923_v33  ;;  %v3022_v1 = vmul.f32 %v4079_v49, %v3018_v51  ;;  %v3021_v2 = vmul.f32 %v4079_v49, %v3016_v36 }
 0x688   : > { %v2964_v44 = vadd.f32 %v2960_v38, %v2944_v43  ;;  %v2963_v45 = vadd.f32 %v2958_v50, %v2943_v61 }
 0x689   : > { %v3038_v59 = vpop.permute.xlu1 %3037  ;;  %v3036_v42 = vpop.permute.xlu0 %3035 }
 0x68a   : > { %v2984_v0 = vadd.f32 %v2980_v55, %v2964_v44  ;;  %v2983_v41 = vadd.f32 %v2978_v40, %v2963_v45  ;;  %v3042_v47 = vmul.f32 %v4080_v58, %v3038_v59  ;;  %v3041_v6 = vmul.f32 %v4080_v58, %v3036_v42  ;;  %v4087_v44 = vld [vmem:[%s6176_s10] ss:$0 sm:$0xff] }
 0x68c   : > { %v3004_v54 = vadd.f32 %v3000_v48, %v2984_v0  ;;  %v3003_v24 = vadd.f32 %v2998_v3, %v2983_v41 }
 0x68d   : > { %v3058_v56 = vpop.permute.xlu1 %3057  ;;  %v3056_v57 = vpop.permute.xlu0 %3055 }
 0x68e   : > { %v3024_v15 = vadd.f32 %v3022_v1, %v3004_v54  ;;  %v3023_v16 = vadd.f32 %v3021_v2, %v3003_v24  ;;  %v3062_v10 = vmul.f32 %v4081_v62, %v3058_v56  ;;  %v3061_v25 = vmul.f32 %v4081_v62, %v3056_v57  ;;  %v4100_v56 = vld [vmem:[%s6177_s11 + $0xc] ss:$0 sm:$0xff] }
 0x690   : > { %v3044_v46 = vadd.f32 %v3042_v47, %v3024_v15  ;;  %v3043_v20 = vadd.f32 %v3041_v6, %v3023_v16  ;;  %v4088_v16 = vld [vmem:[%s6177_s11] ss:$0 sm:$0xff] }
 0x691   : > { %v3078_v18 = vpop.permute.xlu1 %3077  ;;  %v3076_v11 = vpop.permute.xlu0 %3075 }
 0x692   : > { %v3064_v14 = vadd.f32 %v3062_v10, %v3044_v46  ;;  %v3063_v27 = vadd.f32 %v3061_v25, %v3043_v20  ;;  %v3082_v7 = vmul.f32 %v4082_v4, %v3078_v18  ;;  %v3081_v28 = vmul.f32 %v4082_v4, %v3076_v11  ;;  %v4089_v18 = vld [vmem:[%s6177_s11 + $0x1] ss:$0 sm:$0xff]  ;;  %v4090_v25 = vld [vmem:[%s6177_s11 + $0x2] ss:$0 sm:$0xff] }
 0x694   : > { %v3084_v60 = vadd.f32 %v3082_v7, %v3064_v14  ;;  %v3083_v13 = vadd.f32 %v3081_v28, %v3063_v27 }
 0x695   : > { %v3093_v21 = vpop.permute.xlu1 %3092  ;;  %v3091_v22 = vpop.permute.xlu0 %3090 }
 0x696   : > { %v3097_v12 = vmul.f32 %v4083_v26, %v3093_v21  ;;  %v3096_v19 = vmul.f32 %v4083_v26, %v3091_v22 }
 0x698   : > { %v3099_v52 = vadd.f32 %v3097_v12, %v3084_v60  ;;  %v3098_v17 = vadd.f32 %v3096_v19, %v3083_v13  ;;  %v4091_v19 = vld [vmem:[%s6177_s11 + $0x3] ss:$0 sm:$0xff] }
 0x699   : > { %v3108_v63 = vpop.permute.xlu1 %3107  ;;  %v3106_v8 = vpop.permute.xlu0 %3105 }
 0x69a   : > { %v3112_v9 = vmul.f32 %v4084_v29, %v3108_v63  ;;  %v3111_v31 = vmul.f32 %v4084_v29, %v3106_v8  ;;  %v4101_v63 = vld [vmem:[%s6177_s11 + $0xd] ss:$0 sm:$0xff] }
 0x69c   : > { %v3114_v36 = vadd.f32 %v3112_v9, %v3099_v52  ;;  %v3113_v38 = vadd.f32 %v3111_v31, %v3098_v17  ;;  %v4112_v17 = vld [vmem:[%s6177_s11 + $0x18] ss:$0 sm:$0xff] }
 0x69d   : > { %v3123_v32 = vpop.permute.xlu1 %3122  ;;  %v3121_v33 = vpop.permute.xlu0 %3120 }
 0x69e   : > { %v3127_v34 = vmul.f32 %v4085_v30, %v3123_v32  ;;  %v3126_v51 = vmul.f32 %v4085_v30, %v3121_v33 }
 0x6a0   : > { %v3129_v50 = vadd.f32 %v3127_v34, %v3114_v36  ;;  %v3128_v5 = vadd.f32 %v3126_v51, %v3113_v38  ;;  %v4102_v36 = vld [vmem:[%s6177_s11 + $0xe] ss:$0 sm:$0xff]  ;;  %v4103_v38 = vld [vmem:[%s6177_s11 + $0xf] ss:$0 sm:$0xff] }
 0x6a1   : > { %v3138_v43 = vpop.permute.xlu1 %3137  ;;  %v3136_v61 = vpop.permute.xlu0 %3135 }
 0x6a2   : > { %v3142_v23 = vmul.f32 %v4086_v35, %v3138_v43  ;;  %v3141_v53 = vmul.f32 %v4086_v35, %v3136_v61 }
 0x6a4   : > { %v3144_v45 = vadd.f32 %v3142_v23, %v3129_v50  ;;  %v3143_v55 = vadd.f32 %v3141_v53, %v3128_v5 }
 0x6a6   : > { %v3153_v40 = vadd.f32 %v4087_v44, %v3144_v45  ;;  %v3152_v59 = vadd.f32 %v4087_v44, %v3143_v55 }
 0x6a8   : > { %v3155_v42 = vmul.f32 0.2, %v3153_v40  ;;  %v3154_v0 = vmul.f32 0.2, %v3152_v59 }
 0x6aa   : > { %v3157_v41 = vmax.f32 %v3153_v40, %v3155_v42  ;;  %v3156_v48 = vmax.f32 %v3152_v59, %v3154_v0 }
 0x6ac   : > { %3162 = vrot.lane.b32.xlu1 %v3157_v41, %s6217_s0  ;;  %3160 = vrot.lane.b32.xlu0 %v3156_v48, %s6217_s0  ;;  %s6121_s0 = scalar_lea.hbm %s6179_s13, %s4131_s27 }
 0x6b0   : > { %3170 = vrot.lane.b32.xlu1 %v3157_v41, %s6221_s21  ;;  %3168 = vrot.lane.b32.xlu0 %v3156_v48, %s6221_s21  ;;  %s4304_s21 = scalar_lea.vmem %s6123_s1, 256 }
 0x6b1   : > { %p4305_p9 = scmp.ne.s32.totalorder %s6123_s1, %s4304_s21 }
 0x6b3   : > { %p4306_p10 = pnand %p4305_p9, %p4500_p5 }
 0x6b4   : > { %3178 = vrot.lane.b32.xlu1 %v3157_v41, %s6213_s23  ;;  %3176 = vrot.lane.b32.xlu0 %v3156_v48, %s6213_s23  ;;  %s4389_s23 = smov [#allocation9]  }
 0x6b5   : > { %p4307_p12 = pneg %p4306_p10 }
 0x6b8   : > { %3186 = vrot.lane.b32.xlu1 %v3157_v41, %s6214_s4  ;;  %3184 = vrot.lane.b32.xlu0 %v3156_v48, %s6214_s4  ;;  %s4308_s4 = sshll.u32 %s4389_s23, 4  ;;  %s4309_s4 = int_to_ptr.vmem [resolvable:$false] %s4308_s4 }
 0x6b9   : > { %p4311_p7 = scmp.lt.s32.totalorder %s6123_s1, %s4309_s4 }
 0x71e   : > { %v3163_v49 = vpop.permute.xlu1 %3162  ;;  %v3161_v3 = vpop.permute.xlu0 %3160 }
 0x71f   : > { %3167 = vst.msk [vmem:[#allocation2 + $0x9] sm:$0xff] %vm505_vm2, %v3163_v49  ;;  %3166 = vst.msk [vmem:[#allocation2 + $0x1] sm:$0xff] %vm505_vm2, %v3161_v3 }
 0x722   : > { %v3171_v54 = vpop.permute.xlu1 %3170  ;;  %v3169_v24 = vpop.permute.xlu0 %3168 }
 0x723   : > { %3175 = vst.msk [vmem:[#allocation2 + $0x21] sm:$0xff] %vm505_vm2, %v3171_v54  ;;  %3174 = vst.msk [vmem:[#allocation2 + $0x19] sm:$0xff] %vm505_vm2, %v3169_v24 }
 0x726   : > { %v3179_v57 = vpop.permute.xlu1 %3178  ;;  %v3177_v1 = vpop.permute.xlu0 %3176  ;;  %v5762_v2 = vld [vmem:[#allocation2 + $0x8] sm:$0xff]  ;;  %v5764_v58 = vld [vmem:[#allocation2] sm:$0xff]  ;;  %v5766_v15 = vld [vmem:[#allocation2 + $0x10] sm:$0x3] }
 0x727   : > { %3183 = vst.msk [vmem:[#allocation2 + $0x39] sm:$0xff] %vm505_vm2, %v3179_v57  ;;  %3182 = vst.msk [vmem:[#allocation2 + $0x31] sm:$0xff] %vm505_vm2, %v3177_v1  ;;  %3249 = vrot.lane.b32.xlu1 %v5762_v2, %s6215_s15  ;;  %3247 = vrot.lane.b32.xlu0 %v5764_v58, %s6215_s15  ;;  %v5781_v11 = vmul.f32 %v4100_v56, %v5762_v2  ;;  %v3375_v47 = vmul.f32 %v4100_v56, %v5766_v15  ;;  %v3455_v34 = vrot.slane %v5762_v2, 1  ;;  %v4113_v1 = vld [vmem:[%s6177_s11 + $0x19] ss:$0 sm:$0xff] }
 0x728   : > { %v3210_v4 = vmul.f32 %v4088_v16, %v5762_v2  ;;  %v3209_v22 = vmul.f32 %v4088_v16, %v5764_v58  ;;  %v3373_v52 = vmul.f32 %v4100_v56, %v5764_v58  ;;  %v3457_v43 = vrot.slane %v5766_v15, 1 }
 0x729   : > { %v3380_v26 = vrot.slane %v5781_v11, 1  ;;  %v3382_v14 = vrot.slane %v3375_v47, 1  ;;  %v3454_v53 = vrot.slane %v5764_v58, 1  ;;  %v3598_v55 = vmul.f32 %v4112_v17, %v5762_v2 }
 0x72a   : > { %v3187_v6 = vpop.permute.xlu1 %3186  ;;  %v3185_v62 = vpop.permute.xlu0 %3184  ;;  %v5784_v46 = vld [vmem:[#allocation2 + $0x20] sm:$0xff]  ;;  %v5786_v20 = vld [vmem:[#allocation2 + $0x18] sm:$0xff]  ;;  %v5826_v31 = vld [vmem:[#allocation2 + $0x28] sm:$0x3]  ;;  %v3379_v59 = vrot.slane %v3373_v52, 1 }
 0x72b   : > { %3191 = vst.msk [vmem:[#allocation2 + $0x51] sm:$0xff] %vm505_vm2, %v3187_v6  ;;  %3190 = vst.msk [vmem:[#allocation2 + $0x49] sm:$0xff] %vm505_vm2, %v3185_v62  ;;  %3266 = vrot.lane.b32.xlu1 %v5784_v46, %s6215_s15  ;;  %3264 = vrot.lane.b32.xlu0 %v5786_v20, %s6215_s15  ;;  %v3219_v21 = vmul.f32 %v4089_v18, %v5784_v46  ;;  %v3218_v10 = vmul.f32 %v4089_v18, %v5786_v20 }
 0x72c   : > { %v5819_v30 = vsel %vm590_vm6, %v3380_v26, %v3382_v14  ;;  %v3394_v60 = vmul.f32 %v4101_v63, %v5784_v46  ;;  %v3395_v5 = vmul.f32 %v4101_v63, %v5826_v31  ;;  %v3393_v42 = vmul.f32 %v4101_v63, %v5786_v20 }
 0x72d   : > { %v3221_v28 = vadd.f32 %v3219_v21, %v3210_v4  ;;  %v3220_v29 = vadd.f32 %v3218_v10, %v3209_v22  ;;  %v5871_v24 = vsel %vm590_vm6, %v3379_v59, %v3380_v26  ;;  %v3599_v4 = vmul.f32 %v4112_v17, %v5766_v15  ;;  %v4114_v22 = vld [vmem:[%s6177_s11 + $0x1a] ss:$0 sm:$0xff] }
 0x72e   : > { %v5802_v27 = vld [vmem:[#allocation2 + $0x38] sm:$0xff]  ;;  %v5804_v7 = vld [vmem:[#allocation2 + $0x30] sm:$0xff]  ;;  %v5846_v61 = vld [vmem:[#allocation2 + $0x40] sm:$0x3]  ;;  %v3400_v23 = vrot.slane %v3394_v60, 1  ;;  %v3402_v40 = vrot.slane %v3395_v5, 1  ;;  %v3618_v14 = vmul.f32 %v4113_v1, %v5784_v46  ;;  %v3619_v63 = vmul.f32 %v4113_v1, %v5826_v31 }
 0x72f   : > { %3283 = vrot.lane.b32.xlu1 %v5802_v27, %s6215_s15  ;;  %3281 = vrot.lane.b32.xlu0 %v5804_v7, %s6215_s15  ;;  %v3228_v8 = vmul.f32 %v4090_v25, %v5802_v27  ;;  %v3227_v12 = vmul.f32 %v4090_v25, %v5804_v7  ;;  %v3414_v0 = vmul.f32 %v4102_v36, %v5802_v27  ;;  %v3399_v56 = vrot.slane %v3393_v42, 1 }
 0x730   : > { %v3415_v41 = vmul.f32 %v4102_v36, %v5846_v61  ;;  %v3413_v3 = vmul.f32 %v4102_v36, %v5804_v7  ;;  %v5868_v54 = vsel %vm590_vm6, %v3400_v23, %v3402_v40  ;;  %v3604_v21 = vrot.slane %v3598_v55, 2 }
 0x731   : > { %v3230_v32 = vadd.f32 %v3228_v8, %v3221_v28  ;;  %v3229_v33 = vadd.f32 %v3227_v12, %v3220_v29  ;;  %v3420_v57 = vrot.slane %v3414_v0, 1  ;;  %v5881_v6 = vsel %vm590_vm6, %v3399_v56, %v3400_v23  ;;  %v4115_v12 = vld [vmem:[%s6177_s11 + $0x1b] ss:$0 sm:$0xff] }
 0x732   : > { %v5822_v13 = vld [vmem:[#allocation2 + $0x50] sm:$0xff]  ;;  %v5824_v9 = vld [vmem:[#allocation2 + $0x48] sm:$0xff]  ;;  %v5848_v50 = vld [vmem:[#allocation2 + $0x58] sm:$0x3]  ;;  %v3422_v16 = vrot.slane %v3415_v41, 1  ;;  %v3419_v47 = vrot.slane %v3413_v3, 1  ;;  %v3597_v8 = vmul.f32 %v4112_v17, %v5764_v58  ;;  %v3617_v60 = vmul.f32 %v4113_v1, %v5786_v20 }
 0x733   : > { %3300 = vrot.lane.b32.xlu1 %v5822_v13, %s6215_s15  ;;  %3298 = vrot.lane.b32.xlu0 %v5824_v9, %s6215_s15  ;;  %v3237_v51 = vmul.f32 %v4091_v19, %v5822_v13  ;;  %v3236_v35 = vmul.f32 %v4091_v19, %v5824_v9  ;;  %v3435_v48 = vmul.f32 %v4103_v38, %v5848_v50  ;;  %v3606_v29 = vrot.slane %v3599_v4, 2 }
 0x734   : > { %v3434_v49 = vmul.f32 %v4103_v38, %v5822_v13  ;;  %v3433_v62 = vmul.f32 %v4103_v38, %v5824_v9  ;;  %v5889_v10 = vsel %vm590_vm6, %v3420_v57, %v3422_v16  ;;  %v5895_v26 = vsel %vm590_vm6, %v3419_v47, %v3420_v57 }
 0x735   : > { %v5852_v44 = vadd.f32 %v3237_v51, %v3230_v32  ;;  %v5854_v45 = vadd.f32 %v3236_v35, %v3229_v33  ;;  %v3442_v18 = vrot.slane %v3435_v48, 1  ;;  %v3624_v19 = vrot.slane %v3618_v14, 2 }
 0x736   : > { %v3440_v11 = vrot.slane %v3434_v49, 1  ;;  %v3439_v28 = vrot.slane %v3433_v62, 1  ;;  %v3638_v32 = vmul.f32 %v4114_v22, %v5802_v27  ;;  %v3639_v33 = vmul.f32 %v4114_v22, %v5846_v61 }
 0x737   : > { %3315 = vrot.lane.b32.xlu1 %v5762_v2, %s6216_s30  ;;  %3313 = vrot.lane.b32.xlu0 %v5764_v58, %s6216_s30  ;;  %v5914_v17 = vsel %vm647_vm7, %v3604_v21, %v3606_v29  ;;  %v3626_v51 = vrot.slane %v3619_v63, 2  ;;  %v3603_v35 = vrot.slane %v3597_v8, 2  ;;  %v3623_v36 = vrot.slane %v3617_v60, 2 }
 0x738   : > { %v5892_v25 = vsel %vm590_vm6, %v3440_v11, %v3442_v18  ;;  %v5911_v52 = vsel %vm590_vm6, %v3439_v28, %v3440_v11  ;;  %v3644_v38 = vrot.slane %v3638_v32, 2  ;;  %v3646_v5 = vrot.slane %v3639_v33, 2 }
 0x739   : > { %v3658_v23 = vmul.f32 %v4115_v12, %v5822_v13  ;;  %v5918_v55 = vsel %vm647_vm7, %v3624_v19, %v3626_v51  ;;  %v5921_v40 = vsel %vm647_vm7, %v3603_v35, %v3604_v21  ;;  %v3659_v59 = vmul.f32 %v4115_v12, %v5848_v50 }
 0x73a   : > { %v3637_v42 = vmul.f32 %v4114_v22, %v5804_v7  ;;  %v5926_v0 = vsel %vm647_vm7, %v3623_v36, %v3624_v19  ;;  %v5929_v41 = vsel %vm647_vm7, %v3644_v38, %v3646_v5  ;;  %v3657_v49 = vmul.f32 %v4115_v12, %v5824_v9 }
 0x73b   : > { %3330 = vrot.lane.b32.xlu1 %v5784_v46, %s6216_s30  ;;  %3328 = vrot.lane.b32.xlu0 %v5786_v20, %s6216_s30  ;;  %v3664_v48 = vrot.slane %v3658_v23, 2  ;;  %v3666_v3 = vrot.slane %v3659_v59, 2  ;;  %v3458_v1 = vsel %vm590_vm6, %v3455_v34, %v3457_v43  ;;  %v3456_v16 = vsel %vm590_vm6, %v3454_v53, %v3455_v34 }
 0x73c   : > { %v3643_v56 = vrot.slane %v3637_v42, 2  ;;  %v3663_v57 = vrot.slane %v3657_v49, 2  ;;  %v3476_v47 = vrot.slane %v5784_v46, 1  ;;  %v3478_v62 = vrot.slane %v5826_v31, 1 }
 0x73d   : > { %v5947_v18 = vsel %vm647_vm7, %v3664_v48, %v3666_v3  ;;  %v3475_v4 = vrot.slane %v5786_v20, 1  ;;  %v3497_v34 = vrot.slane %v5802_v27, 1  ;;  %v3499_v53 = vrot.slane %v5846_v61, 1 }
 0x73e   : > { %v5950_v11 = vsel %vm647_vm7, %v3643_v56, %v3644_v38  ;;  %v5956_v43 = vsel %vm647_vm7, %v3663_v57, %v3664_v48  ;;  %v3479_v21 = vsel %vm590_vm6, %v3476_v47, %v3478_v62  ;;  %v3496_v14 = vrot.slane %v5804_v7, 1  ;;  %v4092_v57 = vld [vmem:[%s6177_s11 + $0x4] ss:$0 sm:$0xff] }
 0x73f   : > { %3345 = vrot.lane.b32.xlu1 %v5802_v27, %s6216_s30  ;;  %3343 = vrot.lane.b32.xlu0 %v5804_v7, %s6216_s30  ;;  %v3477_v22 = vsel %vm590_vm6, %v3475_v4, %v3476_v47  ;;  %v3500_v28 = vsel %vm590_vm6, %v3497_v34, %v3499_v53  ;;  %v3518_v63 = vrot.slane %v5822_v13, 1  ;;  %v3520_v8 = vrot.slane %v5848_v50, 1 }
 0x740   : > { %v3498_v29 = vsel %vm590_vm6, %v3496_v14, %v3497_v34  ;;  %v3517_v12 = vrot.slane %v5824_v9, 1  ;;  %v3678_v32 = vrot.slane %v5762_v2, 2  ;;  %v3680_v33 = vrot.slane %v5766_v15, 2  ;;  %v4094_v34 = vld [vmem:[%s6177_s11 + $0x6] ss:$0 sm:$0xff] }
 0x741   : > { %v3521_v19 = vsel %vm590_vm6, %v3518_v63, %v3520_v8  ;;  %v3677_v51 = vrot.slane %v5764_v58, 2  ;;  %v3698_v38 = vrot.slane %v5784_v46, 2  ;;  %v3700_v5 = vrot.slane %v5826_v31, 2 }
 0x742   : > { %v3519_v60 = vsel %vm590_vm6, %v3517_v12, %v3518_v63  ;;  %v3681_v35 = vsel %vm647_vm7, %v3678_v32, %v3680_v33  ;;  %v3697_v23 = vrot.slane %v5786_v20, 2  ;;  %v3718_v2 = vrot.slane %v5802_v27, 2 }
 0x743   : > { %3360 = vrot.lane.b32.xlu1 %v5822_v13, %s6216_s30  ;;  %3358 = vrot.lane.b32.xlu0 %v5824_v9, %s6216_s30  ;;  %v3679_v36 = vsel %vm647_vm7, %v3677_v51, %v3678_v32  ;;  %v3720_v58 = vrot.slane %v5846_v61, 2  ;;  %v3701_v15 = vsel %vm647_vm7, %v3698_v38, %v3700_v5  ;;  %v3717_v42 = vrot.slane %v5804_v7, 2 }
 0x744   : > { %v3699_v59 = vsel %vm647_vm7, %v3697_v23, %v3698_v38  ;;  %v3738_v31 = vrot.slane %v5822_v13, 2  ;;  %v3740_v27 = vrot.slane %v5848_v50, 2  ;;  %v3737_v61 = vrot.slane %v5824_v9, 2 }
 0x745   : > { %v3721_v46 = vsel %vm647_vm7, %v3718_v2, %v3720_v58  ;;  %v3719_v20 = vsel %vm647_vm7, %v3717_v42, %v3718_v2  ;;  %v4098_v2 = vld [vmem:[%s6177_s11 + $0xa] ss:$0 sm:$0xff] }
 0x746   : > { %v3741_v7 = vsel %vm647_vm7, %v3738_v31, %v3740_v27  ;;  %v3739_v48 = vsel %vm647_vm7, %v3737_v61, %v3738_v31 }
 0x747   : > { %3461 = vrot.lane.b32.xlu1 %v3458_v1, %s6215_s15  ;;  %3459 = vrot.lane.b32.xlu0 %v3456_v16, %s6215_s15 }
 0x74b   : > { %3482 = vrot.lane.b32.xlu1 %v3479_v21, %s6215_s15  ;;  %3480 = vrot.lane.b32.xlu0 %v3477_v22, %s6215_s15 }
 0x74f   : > { %3503 = vrot.lane.b32.xlu1 %v3500_v28, %s6215_s15  ;;  %3501 = vrot.lane.b32.xlu0 %v3498_v29, %s6215_s15 }
 0x753   : > { %3524 = vrot.lane.b32.xlu1 %v3521_v19, %s6215_s15  ;;  %3522 = vrot.lane.b32.xlu0 %v3519_v60, %s6215_s15 }
 0x757   : > { %3539 = vrot.lane.b32.xlu1 %v3458_v1, %s6216_s30  ;;  %3537 = vrot.lane.b32.xlu0 %v3456_v16, %s6216_s30  ;;  %v4093_v1 = vld [vmem:[%s6177_s11 + $0x5] ss:$0 sm:$0xff] }
 0x75b   : > { %3554 = vrot.lane.b32.xlu1 %v3479_v21, %s6216_s30  ;;  %3552 = vrot.lane.b32.xlu0 %v3477_v22, %s6216_s30  ;;  %v4095_v22 = vld [vmem:[%s6177_s11 + $0x7] ss:$0 sm:$0xff] }
 0x75f   : > { %3569 = vrot.lane.b32.xlu1 %v3500_v28, %s6216_s30  ;;  %3567 = vrot.lane.b32.xlu0 %v3498_v29, %s6216_s30 }
 0x763   : > { %3584 = vrot.lane.b32.xlu1 %v3521_v19, %s6216_s30  ;;  %3582 = vrot.lane.b32.xlu0 %v3519_v60, %s6216_s30  ;;  %v4096_v19 = vld [vmem:[%s6177_s11 + $0x8] ss:$0 sm:$0xff] }
 0x767   : > { %3684 = vrot.lane.b32.xlu1 %v3681_v35, %s6215_s15  ;;  %3682 = vrot.lane.b32.xlu0 %v3679_v36, %s6215_s15 }
 0x76b   : > { %3704 = vrot.lane.b32.xlu1 %v3701_v15, %s6215_s15  ;;  %3702 = vrot.lane.b32.xlu0 %v3699_v59, %s6215_s15 }
 0x76f   : > { %3724 = vrot.lane.b32.xlu1 %v3721_v46, %s6215_s15  ;;  %3722 = vrot.lane.b32.xlu0 %v3719_v20, %s6215_s15 }
 0x773   : > { %3744 = vrot.lane.b32.xlu1 %v3741_v7, %s6215_s15  ;;  %3742 = vrot.lane.b32.xlu0 %v3739_v48, %s6215_s15 }
 0x777   : > { %3759 = vrot.lane.b32.xlu1 %v3681_v35, %s6216_s30  ;;  %3757 = vrot.lane.b32.xlu0 %v3679_v36, %s6216_s30  ;;  %v4097_v35 = vld [vmem:[%s6177_s11 + $0x9] ss:$0 sm:$0xff] }
 0x77b   : > { %3774 = vrot.lane.b32.xlu1 %v3701_v15, %s6216_s30  ;;  %3772 = vrot.lane.b32.xlu0 %v3699_v59, %s6216_s30 }
 0x77f   : > { %3789 = vrot.lane.b32.xlu1 %v3721_v46, %s6216_s30  ;;  %3787 = vrot.lane.b32.xlu0 %v3719_v20, %s6216_s30 }
 0x783   : > { %3804 = vrot.lane.b32.xlu1 %v3741_v7, %s6216_s30  ;;  %3802 = vrot.lane.b32.xlu0 %v3739_v48, %s6216_s30  ;;  %v4099_v48 = vld [vmem:[%s6177_s11 + $0xb] ss:$0 sm:$0xff]  ;;  %s4310_s30 = scalar_lea.vmem %s4309_s4, 512 }
 0x784   : > { %p4312_p8 = scmp.lt.s32.totalorder %s4310_s30, %s4304_s21 }
 0x786   : > { %p4313_p11 = por %p4312_p8, %p4311_p7 }
 0x788   : > { %p4314_p0 = pnand %p4313_p11, %p4307_p12 }
 0x799   : > { %v3250_v13 = vpop.permute.xlu1 %3249  ;;  %v3248_v9 = vpop.permute.xlu0 %3247 }
 0x79a   : > { %v3254_v62 = vmul.f32 %v4092_v57, %v3250_v13  ;;  %v3253_v4 = vmul.f32 %v4092_v57, %v3248_v9 }
 0x79c   : > { %v3256_v29 = vadd.f32 %v3254_v62, %v5852_v44  ;;  %v3255_v63 = vadd.f32 %v3253_v4, %v5854_v45 }
 0x79d   : > { %v3267_v50 = vpop.permute.xlu1 %3266  ;;  %v3265_v49 = vpop.permute.xlu0 %3264 }
 0x79e   : > { %v3271_v53 = vmul.f32 %v4093_v1, %v3267_v50  ;;  %v3270_v21 = vmul.f32 %v4093_v1, %v3265_v49 }
 0x7a0   : > { %v3273_v60 = vadd.f32 %v3271_v53, %v3256_v29  ;;  %v3272_v32 = vadd.f32 %v3270_v21, %v3255_v63 }
 0x7a1   : > { %v3284_v3 = vpop.permute.xlu1 %3283  ;;  %v3282_v56 = vpop.permute.xlu0 %3281 }
 0x7a2   : > { %v3288_v8 = vmul.f32 %v4094_v34, %v3284_v3  ;;  %v3287_v12 = vmul.f32 %v4094_v34, %v3282_v56 }
 0x7a4   : > { %v3290_v5 = vadd.f32 %v3288_v8, %v3273_v60  ;;  %v3289_v44 = vadd.f32 %v3287_v12, %v3272_v32  ;;  %v4104_v8 = vld [vmem:[%s6177_s11 + $0x10] ss:$0 sm:$0xff] }
 0x7a5   : > { %v3301_v16 = vpop.permute.xlu1 %3300  ;;  %v3299_v47 = vpop.permute.xlu0 %3298 }
 0x7a6   : > { %v3305_v33 = vmul.f32 %v4095_v22, %v3301_v16  ;;  %v3304_v51 = vmul.f32 %v4095_v22, %v3299_v47 }
 0x7a8   : > { %v3307_v58 = vadd.f32 %v3305_v33, %v3290_v5  ;;  %v3306_v15 = vadd.f32 %v3304_v51, %v3289_v44 }
 0x7a9   : > { %v3316_v14 = vpop.permute.xlu1 %3315  ;;  %v3314_v28 = vpop.permute.xlu0 %3313 }
 0x7aa   : > { %v3320_v23 = vmul.f32 %v4096_v19, %v3316_v14  ;;  %v3319_v45 = vmul.f32 %v4096_v19, %v3314_v28 }
 0x7ac   : > { %v3322_v31 = vadd.f32 %v3320_v23, %v3307_v58  ;;  %v3321_v27 = vadd.f32 %v3319_v45, %v3306_v15 }
 0x7ad   : > { %v3331_v36 = vpop.permute.xlu1 %3330  ;;  %v3329_v38 = vpop.permute.xlu0 %3328 }
 0x7ae   : > { %v3335_v59 = vmul.f32 %v4097_v35, %v3331_v36  ;;  %v3334_v42 = vmul.f32 %v4097_v35, %v3329_v38  ;;  %v4107_v38 = vld [vmem:[%s6177_s11 + $0x13] ss:$0 sm:$0xff] }
 0x7b0   : > { %v3337_v13 = vadd.f32 %v3335_v59, %v3322_v31  ;;  %v3336_v9 = vadd.f32 %v3334_v42, %v3321_v27 }
 0x7b1   : > { %v3346_v46 = vpop.permute.xlu1 %3345  ;;  %v3344_v20 = vpop.permute.xlu0 %3343 }
 0x7b2   : > { %v3350_v61 = vmul.f32 %v4098_v2, %v3346_v46  ;;  %v3349_v7 = vmul.f32 %v4098_v2, %v3344_v20  ;;  %v4108_v2 = vld [vmem:[%s6177_s11 + $0x14] ss:$0 sm:$0xff]  ;;  %v4109_v46 = vld [vmem:[%s6177_s11 + $0x15] ss:$0 sm:$0xff] }
 0x7b4   : > { %v3352_v3 = vadd.f32 %v3350_v61, %v3337_v13  ;;  %v3351_v56 = vadd.f32 %v3349_v7, %v3336_v9  ;;  %v4110_v7 = vld [vmem:[%s6177_s11 + $0x16] ss:$0 sm:$0xff] }
 0x7b5   : > { %v3361_v50 = vpop.permute.xlu1 %3360  ;;  %v3359_v49 = vpop.permute.xlu0 %3358 }
 0x7b6   : > { %v3365_v57 = vmul.f32 %v4099_v48, %v3361_v50  ;;  %v3364_v1 = vmul.f32 %v4099_v48, %v3359_v49 }
 0x7b8   : > { %v3367_v16 = vadd.f32 %v3365_v57, %v3352_v3  ;;  %v3366_v47 = vadd.f32 %v3364_v1, %v3351_v56 }
 0x7b9   : > { %v3462_v62 = vpop.permute.xlu1 %3461  ;;  %v3460_v4 = vpop.permute.xlu0 %3459 }
 0x7ba   : > { %v3387_v34 = vadd.f32 %v5819_v30, %v3367_v16  ;;  %v3386_v53 = vadd.f32 %v5871_v24, %v3366_v47  ;;  %v3466_v60 = vmul.f32 %v4104_v8, %v3462_v62  ;;  %v4111_v47 = vld [vmem:[%s6177_s11 + $0x17] ss:$0 sm:$0xff] }
 0x7bc   : > { %v3407_v21 = vadd.f32 %v5868_v54, %v3387_v34  ;;  %v3406_v22 = vadd.f32 %v5881_v6, %v3386_v53  ;;  %v3465_v54 = vmul.f32 %v4104_v8, %v3460_v4  ;;  %v4105_v6 = vld [vmem:[%s6177_s11 + $0x11] ss:$0 sm:$0xff] }
 0x7bd   : > { %v3483_v14 = vpop.permute.xlu1 %3482  ;;  %v3481_v28 = vpop.permute.xlu0 %3480 }
 0x7be   : > { %v3427_v29 = vadd.f32 %v5889_v10, %v3407_v21  ;;  %v3426_v63 = vadd.f32 %v5895_v26, %v3406_v22  ;;  %v3487_v51 = vmul.f32 %v4105_v6, %v3483_v14  ;;  %v3486_v35 = vmul.f32 %v4105_v6, %v3481_v28 }
 0x7c0   : > { %v3447_v12 = vadd.f32 %v5892_v25, %v3427_v29  ;;  %v3446_v30 = vadd.f32 %v5911_v52, %v3426_v63  ;;  %v4106_v25 = vld [vmem:[%s6177_s11 + $0x12] ss:$0 sm:$0xff] }
 0x7c1   : > { %v3504_v19 = vpop.permute.xlu1 %3503  ;;  %v3502_v24 = vpop.permute.xlu0 %3501 }
 0x7c2   : > { %v3468_v32 = vadd.f32 %v3466_v60, %v3447_v12  ;;  %v3467_v10 = vadd.f32 %v3465_v54, %v3446_v30  ;;  %v3508_v23 = vmul.f32 %v4106_v25, %v3504_v19  ;;  %v3507_v45 = vmul.f32 %v4106_v25, %v3502_v24 }
 0x7c4   : > { %v3489_v36 = vadd.f32 %v3487_v51, %v3468_v32  ;;  %v3488_v52 = vadd.f32 %v3486_v35, %v3467_v10 }
 0x7c5   : > { %v3525_v33 = vpop.permute.xlu1 %3524  ;;  %v3523_v26 = vpop.permute.xlu0 %3522 }
 0x7c6   : > { %v3510_v58 = vadd.f32 %v3508_v23, %v3489_v36  ;;  %v3509_v15 = vadd.f32 %v3507_v45, %v3488_v52  ;;  %v3529_v59 = vmul.f32 %v4107_v38, %v3525_v33  ;;  %v3528_v42 = vmul.f32 %v4107_v38, %v3523_v26  ;;  %v4116_v33 = vld [vmem:[%s6177_s11 + $0x1c] ss:$0 sm:$0xff] }
 0x7c8   : > { %v3531_v48 = vadd.f32 %v3529_v59, %v3510_v58  ;;  %v3530_v13 = vadd.f32 %v3528_v42, %v3509_v15  ;;  %v4120_v15 = vld [vmem:[%s6177_s11 + $0x20] ss:$0 sm:$0xff] }
 0x7c9   : > { %v3540_v5 = vpop.permute.xlu1 %3539  ;;  %v3538_v44 = vpop.permute.xlu0 %3537 }
 0x7ca   : > { %v3544_v27 = vmul.f32 %v4108_v2, %v3540_v5  ;;  %v3543_v61 = vmul.f32 %v4108_v2, %v3538_v44  ;;  %v4119_v44 = vld [vmem:[%s6177_s11 + $0x1f] ss:$0 sm:$0xff] }
 0x7cc   : > { %v3546_v56 = vadd.f32 %v3544_v27, %v3531_v48  ;;  %v3545_v57 = vadd.f32 %v3543_v61, %v3530_v13  ;;  %v4122_v13 = vld [vmem:[%s6177_s11 + $0x22] ss:$0 sm:$0xff] }
 0x7cd   : > { %v3555_v20 = vpop.permute.xlu1 %3554  ;;  %v3553_v31 = vpop.permute.xlu0 %3552 }
 0x7ce   : > { %v3559_v9 = vmul.f32 %v4109_v46, %v3555_v20  ;;  %v3558_v50 = vmul.f32 %v4109_v46, %v3553_v31  ;;  %v4121_v31 = vld [vmem:[%s6177_s11 + $0x21] ss:$0 sm:$0xff] }
 0x7d0   : > { %v3561_v62 = vadd.f32 %v3559_v9, %v3546_v56  ;;  %v3560_v4 = vadd.f32 %v3558_v50, %v3545_v57 }
 0x7d1   : > { %v3570_v49 = vpop.permute.xlu1 %3569  ;;  %v3568_v3 = vpop.permute.xlu0 %3567 }
 0x7d2   : > { %v3574_v1 = vmul.f32 %v4110_v7, %v3570_v49  ;;  %v3573_v16 = vmul.f32 %v4110_v7, %v3568_v3 }
 0x7d4   : > { %v3576_v21 = vadd.f32 %v3574_v1, %v3561_v62  ;;  %v3575_v22 = vadd.f32 %v3573_v16, %v3560_v4  ;;  %v4123_v4 = vld [vmem:[%s6177_s11 + $0x23] ss:$0 sm:$0xff] }
 0x7d5   : > { %v3585_v34 = vpop.permute.xlu1 %3584  ;;  %v3583_v53 = vpop.permute.xlu0 %3582 }
 0x7d6   : > { %v3589_v14 = vmul.f32 %v4111_v47, %v3585_v34  ;;  %v3588_v28 = vmul.f32 %v4111_v47, %v3583_v53 }
 0x7d8   : > { %v3591_v29 = vadd.f32 %v3589_v14, %v3576_v21  ;;  %v3590_v63 = vadd.f32 %v3588_v28, %v3575_v22 }
 0x7d9   : > { %v3685_v8 = vpop.permute.xlu1 %3684  ;;  %v3683_v12 = vpop.permute.xlu0 %3682 }
 0x7da   : > { %v3611_v30 = vadd.f32 %v5914_v17, %v3591_v29  ;;  %v3610_v19 = vadd.f32 %v5921_v40, %v3590_v63  ;;  %v3689_v35 = vmul.f32 %v4116_v33, %v3685_v8  ;;  %v4124_v8 = vld [vmem:[%s6178_s12] ss:$0 sm:$0xff] }
 0x7dc   : > { %v3631_v24 = vadd.f32 %v5918_v55, %v3611_v30  ;;  %v3630_v60 = vadd.f32 %v5926_v0, %v3610_v19  ;;  %v3688_v55 = vmul.f32 %v4116_v33, %v3683_v12  ;;  %v4117_v0 = vld [vmem:[%s6177_s11 + $0x1d] ss:$0 sm:$0xff] }
 0x7dd   : > { %v3705_v54 = vpop.permute.xlu1 %3704  ;;  %v3703_v6 = vpop.permute.xlu0 %3702 }
 0x7de   : > { %v3651_v32 = vadd.f32 %v5929_v41, %v3631_v24  ;;  %v3650_v10 = vadd.f32 %v5950_v11, %v3630_v60  ;;  %v3709_v52 = vmul.f32 %v4117_v0, %v3705_v54  ;;  %v3708_v38 = vmul.f32 %v4117_v0, %v3703_v6 }
 0x7e0   : > { %v3671_v26 = vadd.f32 %v5947_v18, %v3651_v32  ;;  %v3670_v17 = vadd.f32 %v5956_v43, %v3650_v10  ;;  %v4118_v18 = vld [vmem:[%s6177_s11 + $0x1e] ss:$0 sm:$0xff] }
 0x7e1   : > { %v3725_v51 = vpop.permute.xlu1 %3724  ;;  %v3723_v40 = vpop.permute.xlu0 %3722 }
 0x7e2   : > { %v3691_v25 = vadd.f32 %v3689_v35, %v3671_v26  ;;  %v3690_v41 = vadd.f32 %v3688_v55, %v3670_v17  ;;  %v3729_v2 = vmul.f32 %v4118_v18, %v3725_v51  ;;  %v3728_v58 = vmul.f32 %v4118_v18, %v3723_v40 }
 0x7e4   : > { %v3711_v5 = vadd.f32 %v3709_v52, %v3691_v25  ;;  %v3710_v43 = vadd.f32 %v3708_v38, %v3690_v41 }
 0x7e5   : > { %v3745_v36 = vpop.permute.xlu1 %3744  ;;  %v3743_v11 = vpop.permute.xlu0 %3742 }
 0x7e6   : > { %v3731_v59 = vadd.f32 %v3729_v2, %v3711_v5  ;;  %v3730_v42 = vadd.f32 %v3728_v58, %v3710_v43  ;;  %v3749_v46 = vmul.f32 %v4119_v44, %v3745_v36  ;;  %v3748_v20 = vmul.f32 %v4119_v44, %v3743_v11 }
 0x7e8   : > { %v3751_v9 = vadd.f32 %v3749_v46, %v3731_v59  ;;  %v3750_v50 = vadd.f32 %v3748_v20, %v3730_v42 }
 0x7e9   : > { %v3760_v23 = vpop.permute.xlu1 %3759  ;;  %v3758_v45 = vpop.permute.xlu0 %3757 }
 0x7ea   : > { %v3764_v7 = vmul.f32 %v4120_v15, %v3760_v23  ;;  %v3763_v48 = vmul.f32 %v4120_v15, %v3758_v45 }
 0x7ec   : > { %v3766_v1 = vadd.f32 %v3764_v7, %v3751_v9  ;;  %v3765_v16 = vadd.f32 %v3763_v48, %v3750_v50 }
 0x7ed   : > { %v3775_v27 = vpop.permute.xlu1 %3774  ;;  %v3773_v61 = vpop.permute.xlu0 %3772 }
 0x7ee   : > { %v3779_v49 = vmul.f32 %v4121_v31, %v3775_v27  ;;  %v3778_v3 = vmul.f32 %v4121_v31, %v3773_v61 }
 0x7f0   : > { %v3781_v34 = vadd.f32 %v3779_v49, %v3766_v1  ;;  %v3780_v53 = vadd.f32 %v3778_v3, %v3765_v16 }
 0x7f1   : > { %v3790_v56 = vpop.permute.xlu1 %3789  ;;  %v3788_v57 = vpop.permute.xlu0 %3787 }
 0x7f2   : > { %v3794_v47 = vmul.f32 %v4122_v13, %v3790_v56  ;;  %v3793_v62 = vmul.f32 %v4122_v13, %v3788_v57 }
 0x7f4   : > { %v3796_v14 = vadd.f32 %v3794_v47, %v3781_v34  ;;  %v3795_v28 = vadd.f32 %v3793_v62, %v3780_v53 }
 0x7f5   : > { %v3805_v21 = vpop.permute.xlu1 %3804  ;;  %v3803_v22 = vpop.permute.xlu0 %3802 }
 0x7f6   : > { %v3809_v29 = vmul.f32 %v4123_v4, %v3805_v21  ;;  %v3808_v63 = vmul.f32 %v4123_v4, %v3803_v22 }
 0x7f8   : > { %v3811_v12 = vadd.f32 %v3809_v29, %v3796_v14  ;;  %v3810_v30 = vadd.f32 %v3808_v63, %v3795_v28 }
 0x7fa   : > { %v3820_v19 = vadd.f32 %v4124_v8, %v3811_v12  ;;  %v3819_v24 = vadd.f32 %v4124_v8, %v3810_v30 }
 0x7fc   : > { %4220 = vtanh.f32 %v3820_v19 }
 0x7fd   : > { %4222 = vtanh.f32 %v3819_v24 }
 0x809   : > { %v4221_v60 = vpop.eup %4220 }
 0x80a   : > { %v4223_v54 = vpop.eup %4222  ;;  %v3824_v6 = vsub.f32 %v5288_v37, %v4221_v60 }
 0x80b   : > { %v3823_v32 = vsub.f32 %v5291_v39, %v4223_v54 }
 0x80c   : > { %3827 = vst.msk [vmem:[%s475_s24 + $0x8] sm:$0xff] %vm3825_vm8, %v3824_v6 }
 0x80d   : > { %3826 = vst.msk [vmem:[%s475_s24] sm:$0xff] %vm3825_vm8, %v3823_v32 }
 0x80e   : > { %4317 = shalt.err (!%p4314_p0)
}
 0x80f   : > { %s4318_s2 = scalar_lea.hbm %s6121_s0, 256  ;;  %s4322_s17 = scalar_lea.hbm %s6179_s13, 512 }
 0x810   : > { %p4319_p3 = scmp.ne.s32.totalorder %s6121_s0, %s4318_s2  ;;  %p4323_p4 = scmp.lt.s32.totalorder %s6121_s0, %s6179_s13 }
 0x811   : > { %p4324_p13 = scmp.lt.s32.totalorder %s4322_s17, %s4318_s2 }
 0x812   : > { %p4320_p1 = pnand %p4319_p3, %p4500_p5 }
 0x813   : > { %p4325_p9 = por %p4324_p13, %p4323_p4 }
 0x814   : > { %p4321_p2 = pneg %p4320_p1 }
 0x816   : > { %p4326_p10 = pnand %p4325_p9, %p4321_p2 }
 0x818   : > { %4329 = shalt.err (!%p4326_p10)
}
 0x819   : > { %s4390_s22 = smov 128   ;;  %s4391_s15 = smov 8  }
 0x81a   : > { %4144 = dma.vmem_to_hbm [thread:$0]  (%p4500_p5), %s6123_s1, 256, %s6121_s0, %s6126_s29, %s4390_s22, %s4390_s22, %s4391_s15  }
 0x81b PF: > { %p4166_p12 = scmp.ge.s32.totalorder %s4372_s28, 2  ;;  %s3857_s21 = sand.u32 1, %s4360_s25  }
 0x81c   : > { %s3858_s23 = scalar_lea.sflag [#allocation5], %s3857_s21 }
 0x81d   : > { %p4157_p7 = pnand %p4166_p12, %p4504_p6 }
 0x81f   : > { %p4158_p8 = pneg %p4157_p7 }
 0x821   : > { %4355 = dma.done.wait (%p4158_p8), %s3858_s23, 256  }
 0x822   : > { %4357 = vsyncadd (%p4158_p8), %s3858_s23, 4294967040  ;;  %s6222_s4 = sld [smem:[#allocation13_spill]]  ;;  %p25_p11 = scmp.ge.s32.totalorder %s4487_s14, 4  }
 0x823   : > { %s6223_s27 = sld [smem:[#allocation14_spill]]  ;;  %s6224_s25 = smov %s4364_s26 }
 0x824   : > { %s6226_s28 = smov %s4487_s14  ;;  %27 = sbr.rel (!%p25_p11) target bundleno = 10 (0xa), region = 123 }
 0x828   : > { %s6225_s26 = smov %s6222_s4 }
 0x829   :  { %3863 = vsyncpa [#allocation4], 1 }
 0x82a   :  { %3865 = vsyncpa [#allocation4 + $0x1], 1 }
 0x82b   :  { %3866 = vsyncpa [#allocation7], 1 }
 0x82c   :  { %3867 = vsyncpa [#allocation5], 1 }
 0x82d   :  { %3869 = vsyncpa [#allocation5 + $0x1], 1 }

</bundles_post_ra>
